<compile_context>
chip_gen: v7x
topology: tpu7x:2x2x1
jax: 0.10.0
libtpu: 0.0.40
codegen_flags: <defaults>
</compile_context>

<pallas_src>
import functools

import jax
import jax.numpy as jnp
from jax.experimental import pallas as pl
from jax.experimental.pallas import tpu as pltpu


def _ffn_kernel(x_ref, w13_ref, w2_ref, wc_ref, bc_ref, o_ref, *, gate_bf16):
    # Fused hot path: [x @ (w1|w3)] -> SiLU gate -> [@ w2] -> [@ wc + bias].
    # All matmuls take bf16 operands and accumulate in f32 on the MXU.
    hidden = w13_ref.shape[1] // 2
    x = x_ref[...].astype(jnp.bfloat16)                                # in-kernel cast (VPU filler)
    y = jnp.dot(x, w13_ref[...], preferred_element_type=jnp.float32)  # f32 (tm, 2*hidden)
    h1 = y[:, :hidden]                                                 # lane-aligned slices
    h3 = y[:, hidden:]
    if gate_bf16:
        # v6e/v7x: bf16 VPU/EUP -> halve gate-intermediate VMEM traffic.
        h1 = h1.astype(jnp.bfloat16)
        h3 = h3.astype(jnp.bfloat16)
    h = (h1 * jax.nn.sigmoid(h1)) * h3                                 # silu(w1 x) * (w3 x)
    a = jnp.dot(h.astype(jnp.bfloat16), w2_ref[...],
                preferred_element_type=jnp.float32)                    # f32 (tm, dim)
    out = jnp.dot(a.astype(jnp.bfloat16), wc_ref[...],
                  preferred_element_type=jnp.float32) + bc_ref[...]    # classifier + bias (f32)
    o_ref[...] = out.astype(o_ref.dtype)


def _round_up(n, m):
    return ((n + m - 1) // m) * m


def _choose_tile(n_tokens, tm_max):
    # Tile is a multiple of 256 (MXU-native M on v6e/v7x; also fine on v5e's
    # 128-wide MXU).  Tiny inputs get a single 128/256-row block; medium inputs
    # are split so the grid has >= 2 steps (v7x megacore gets both TCs busy).
    tm_max = max(256, _round_up(tm_max, 256))
    if n_tokens <= 256:
        return min(256, _round_up(n_tokens, 128))
    half = _round_up(pl.cdiv(n_tokens, 2), 256)
    return min(tm_max, half)


@functools.partial(jax.jit, static_argnames=("tm", "gate_bf16"))
def _feed_forward(x, w13, w2, wc, bc, *, tm, gate_bf16):
    n_tokens, dim = x.shape
    hidden2 = w13.shape[1]
    out_cls = wc.shape[1]

    tm_eff = _choose_tile(n_tokens, tm)
    grid = (pl.cdiv(n_tokens, tm_eff),)   # ragged last block: no pad, no slice

    kernel = functools.partial(_ffn_kernel, gate_bf16=gate_bf16)
    return pl.pallas_call(
        kernel,
        out_shape=jax.ShapeDtypeStruct((n_tokens, out_cls), jnp.float32),
        grid_spec=pltpu.PrefetchScalarGridSpec(
            num_scalar_prefetch=0,
            grid=grid,
            in_specs=[
                # x tile: pipelined (double-buffered) f32, cast to bf16 in-kernel.
                pl.BlockSpec((tm_eff, dim), lambda i: (i, 0)),
                # Resident weights / bias: constant index_map -> single buffer.
                pl.BlockSpec((dim, hidden2), lambda i: (0, 0),
                             pipeline_mode=pl.Buffered(1)),              # fused w1|w3
                pl.BlockSpec((hidden2 // 2, dim), lambda i: (0, 0),
                             pipeline_mode=pl.Buffered(1)),              # w2
                pl.BlockSpec((dim, out_cls), lambda i: (0, 0),
                             pipeline_mode=pl.Buffered(1)),              # classifier W
                pl.BlockSpec((1, out_cls), lambda i: (0, 0),
                             pipeline_mode=pl.Buffered(1)),              # classifier bias
            ],
            out_specs=pl.BlockSpec((tm_eff, out_cls), lambda i: (i, 0)),  # lane-dense (128)
        ),
        compiler_params=pltpu.CompilerParams(
            dimension_semantics=("parallel",),   # shards grid steps across TCs (v7x megacore)
            vmem_limit_bytes=32 * 1024 * 1024,
        ),
    )(x, w13, w2, wc, bc)


def _gate_bf16_default():
    # v5e and older have no bf16 VPU/EUP -> keep the SiLU gate in f32 there.
    kind = jax.devices()[0].device_kind.lower()
    return not any(tag in kind for tag in ("v2", "v3", "v4", "v5"))


def feed_forward(x, w13, w2, wc, bc, *, tm=512, gate_bf16=None):
    """x: (N, dim) f32/bf16; w13: (dim, 2*hidden) bf16; w2: (hidden, dim) bf16;
    wc: (dim, out_cls) bf16; bc: (1, out_cls) f32.

    Weights are stored (in_features, out_features) so the kernel does plain
    x @ W (equivalent to PyTorch's x @ W_pt.T).
    """
    n_tokens, dim = x.shape
    hidden2 = w13.shape[1]
    out_cls = wc.shape[1]
    # Guard lane-aligned assumptions so a future shape change doesn't silently
    # introduce cross-tile slice copies or masked (sub-128 lane) stores.
    assert dim % 128 == 0, "dim must be a multiple of 128 (lane width)"
    assert hidden2 % 256 == 0, "hidden_dim must be a multiple of 128 for the w1|w3 split"
    assert out_cls % 128 == 0, "classifier output width must be a multiple of 128"
    assert w2.shape == (hidden2 // 2, dim)
    assert wc.shape == (dim, out_cls) and bc.shape == (1, out_cls)
    if gate_bf16 is None:
        gate_bf16 = _gate_bf16_default()
    return _feed_forward(x, w13, w2, wc, bc, tm=int(tm), gate_bf16=bool(gate_bf16))


if __name__ == "__main__":
    # ModelArgs: dim=768 (forced by classifier's hard-coded 768 in_features),
    # hidden_dim=512, num_labels=16, moe.num_experts=8 -> classifier out = 128.
    dim = 768
    hidden_dim = 512
    num_experts = 8
    num_labels = 16
    out_cls = num_experts * num_labels

    batch, seq = 2, 64
    n_tokens = batch * seq

    key = jax.random.PRNGKey(0)
    kx, k1, k2, k3, kc, kb = jax.random.split(key, 6)

    x = jax.random.normal(kx, (n_tokens, dim), dtype=jnp.float32)
    # Deterministic param init, stored as (in_features, out_features).
    w1 = jax.random.normal(k1, (dim, hidden_dim), dtype=jnp.float32) * 0.02
    w3 = jax.random.normal(k3, (dim, hidden_dim), dtype=jnp.float32) * 0.02
    w2 = jax.random.normal(k2, (hidden_dim, dim), dtype=jnp.float32) * 0.02
    wc = jax.random.normal(kc, (dim, out_cls), dtype=jnp.float32) * 0.02
    bc = jax.random.normal(kb, (1, out_cls), dtype=jnp.float32) * 0.02

    # Kernel-side weights: fused gate/up projection, bf16 for the MXU.
    w13_bf = jnp.concatenate([w1, w3], axis=1).astype(jnp.bfloat16)
    w2_bf = w2.astype(jnp.bfloat16)
    wc_bf = wc.astype(jnp.bfloat16)

    out = feed_forward(x, w13_bf, w2_bf, wc_bf, bc)   # f32 x goes straight in
    out = jax.block_until_ready(out)

    # Pure-JAX f32 reference using the same bf16-quantized weights and the same
    # bf16-quantized activations; remaining difference is the in-kernel bf16
    # intermediate casts (and bf16 gate math on v6e/v7x).
    xf = x.astype(jnp.bfloat16).astype(jnp.float32)
    w1f = w13_bf[:, :hidden_dim].astype(jnp.float32)
    w3f = w13_bf[:, hidden_dim:].astype(jnp.float32)
    w2f = w2_bf.astype(jnp.float32)
    wcf = wc_bf.astype(jnp.float32)
    h = jax.nn.silu(xf @ w1f) * (xf @ w3f)
    ref = (h @ w2f) @ wcf + bc

    assert out.shape == (n_tokens, out_cls)
    assert jnp.allclose(out, ref, atol=2e-2, rtol=2e-2), float(jnp.max(jnp.abs(out - ref)))

    print("KERNEL_OK")
</pallas_src>

<mosaic_0001>
module attributes {stable_mosaic.version = 11 : i64} {
  func.func @_ffn_kernel(%arg0: i32, %arg1: memref<128x768xf32, #tpu.memory_space<vmem>>, %arg2: memref<768x1024xbf16, #tpu.memory_space<vmem>>, %arg3: memref<512x768xbf16, #tpu.memory_space<vmem>>, %arg4: memref<768x128xbf16, #tpu.memory_space<vmem>>, %arg5: memref<1x128xf32, #tpu.memory_space<vmem>>, %arg6: memref<128x128xf32, #tpu.memory_space<vmem>>) attributes {dimension_semantics = [#tpu.dimension_semantics<parallel>], iteration_bounds = array<i64: 1>, scalar_prefetch = 0 : i64, scratch_operands = 0 : i64, tpu.core_type = #tpu.core_type<tc>, window_params = [{transform_indices = @transform_0, window_bounds = array<i64: 128, 768>}, {pipeline_mode = #tpu.pipeline_mode<synchronous>, transform_indices = @transform_1, window_bounds = array<i64: 768, 1024>}, {pipeline_mode = #tpu.pipeline_mode<synchronous>, transform_indices = @transform_2, window_bounds = array<i64: 512, 768>}, {pipeline_mode = #tpu.pipeline_mode<synchronous>, transform_indices = @transform_3, window_bounds = array<i64: 768, 128>}, {pipeline_mode = #tpu.pipeline_mode<synchronous>, transform_indices = @transform_4, window_bounds = array<i64: 1, 128>}, {transform_indices = @transform_5, window_bounds = array<i64: 128, 128>}]} {
    %c0 = arith.constant 0 : index
    %c0_0 = arith.constant 0 : index
    %0 = vector.load %arg1[%c0, %c0_0] : memref<128x768xf32, #tpu.memory_space<vmem>>, vector<128x768xf32>
    %1 = arith.truncf %0 : vector<128x768xf32> to vector<128x768xbf16>
    %c0_1 = arith.constant 0 : index
    %c0_2 = arith.constant 0 : index
    %2 = vector.load %arg2[%c0_1, %c0_2] : memref<768x1024xbf16, #tpu.memory_space<vmem>>, vector<768x1024xbf16>
    %cst = arith.constant dense<0.000000e+00> : vector<128x1024xf32>
    %3 = tpu.matmul %1, %2, %cst {dimension_numbers = #tpu.dot_dimension_numbers<[1], [0], [0], [1], [0, 0, 1, 1], [], []>} : vector<128x768xbf16>, vector<768x1024xbf16>, vector<128x1024xf32> -> vector<128x1024xf32>
    %4 = vector.extract_strided_slice %3 {offsets = [0, 0], sizes = [128, 512], strides = [1, 1]} : vector<128x1024xf32> to vector<128x512xf32>
    %5 = vector.extract_strided_slice %3 {offsets = [0, 512], sizes = [128, 512], strides = [1, 1]} : vector<128x1024xf32> to vector<128x512xf32>
    %6 = arith.truncf %4 : vector<128x512xf32> to vector<128x512xbf16>
    %7 = arith.truncf %5 : vector<128x512xf32> to vector<128x512xbf16>
    %8 = arith.negf %6 : vector<128x512xbf16>
    %9 = math.exp %8 : vector<128x512xbf16>
    %cst_3 = arith.constant 1.000000e+00 : bf16
    %10 = vector.broadcast %cst_3 : bf16 to vector<128x512xbf16>
    %11 = arith.addf %10, %9 : vector<128x512xbf16>
    %12 = arith.divf %10, %11 : vector<128x512xbf16>
    %13 = arith.mulf %6, %12 : vector<128x512xbf16>
    %14 = arith.mulf %13, %7 : vector<128x512xbf16>
    %c0_4 = arith.constant 0 : index
    %c0_5 = arith.constant 0 : index
    %15 = vector.load %arg3[%c0_4, %c0_5] : memref<512x768xbf16, #tpu.memory_space<vmem>>, vector<512x768xbf16>
    %cst_6 = arith.constant dense<0.000000e+00> : vector<128x768xf32>
    %16 = tpu.matmul %14, %15, %cst_6 {dimension_numbers = #tpu.dot_dimension_numbers<[1], [0], [0], [1], [0, 0, 1, 1], [], []>} : vector<128x512xbf16>, vector<512x768xbf16>, vector<128x768xf32> -> vector<128x768xf32>
    %17 = arith.truncf %16 : vector<128x768xf32> to vector<128x768xbf16>
    %c0_7 = arith.constant 0 : index
    %c0_8 = arith.constant 0 : index
    %18 = vector.load %arg4[%c0_7, %c0_8] : memref<768x128xbf16, #tpu.memory_space<vmem>>, vector<768x128xbf16>
    %cst_9 = arith.constant dense<0.000000e+00> : vector<128x128xf32>
    %19 = tpu.matmul %17, %18, %cst_9 {dimension_numbers = #tpu.dot_dimension_numbers<[1], [0], [0], [1], [0, 0, 1, 1], [], []>} : vector<128x768xbf16>, vector<768x128xbf16>, vector<128x128xf32> -> vector<128x128xf32>
    %c0_10 = arith.constant 0 : index
    %c0_11 = arith.constant 0 : index
    %20 = vector.load %arg5[%c0_10, %c0_11] : memref<1x128xf32, #tpu.memory_space<vmem>>, vector<1x128xf32>
    %21 = vector.broadcast %20 : vector<1x128xf32> to vector<128x128xf32>
    %22 = arith.addf %19, %21 : vector<128x128xf32>
    %c0_12 = arith.constant 0 : index
    %c0_13 = arith.constant 0 : index
    %23 = vector.load %arg6[%c0_12, %c0_13] : memref<128x128xf32, #tpu.memory_space<vmem>>, vector<128x128xf32>
    tpu.vector_store %arg6[%c0_12, %c0_13], %22 {strides = array<i32>} : memref<128x128xf32, #tpu.memory_space<vmem>>, vector<128x128xf32>,
    return
  }
  func.func @transform_0(%arg0: i32) -> (i32, i32) {
    %c0_i32 = arith.constant 0 : i32
    %c0_i32_0 = arith.constant 0 : i32
    return %arg0, %c0_i32 : i32, i32
  }
  func.func @transform_1(%arg0: i32) -> (i32, i32) {
    %c0_i32 = arith.constant 0 : i32
    %c0_i32_0 = arith.constant 0 : i32
    %c0_i32_1 = arith.constant 0 : i32
    return %c0_i32, %c0_i32_0 : i32, i32
  }
  func.func @transform_2(%arg0: i32) -> (i32, i32) {
    %c0_i32 = arith.constant 0 : i32
    %c0_i32_0 = arith.constant 0 : i32
    %c0_i32_1 = arith.constant 0 : i32
    return %c0_i32, %c0_i32_0 : i32, i32
  }
  func.func @transform_3(%arg0: i32) -> (i32, i32) {
    %c0_i32 = arith.constant 0 : i32
    %c0_i32_0 = arith.constant 0 : i32
    %c0_i32_1 = arith.constant 0 : i32
    return %c0_i32, %c0_i32_0 : i32, i32
  }
  func.func @transform_4(%arg0: i32) -> (i32, i32) {
    %c0_i32 = arith.constant 0 : i32
    %c0_i32_0 = arith.constant 0 : i32
    %c0_i32_1 = arith.constant 0 : i32
    return %c0_i32, %c0_i32_0 : i32, i32
  }
  func.func @transform_5(%arg0: i32) -> (i32, i32) {
    %c0_i32 = arith.constant 0 : i32
    %c0_i32_0 = arith.constant 0 : i32
    return %arg0, %c0_i32 : i32, i32
  }
}

</mosaic_0001>

<bundles_post_ra>
// kernel: _feed_forward.1
= control target key start
LH: loop header
LB: loop body
LE: loop exit
PB: predicated region body
PF: predicated region fallthrough
CT: control target
= control target key end

     0   :  { %10 = vsyncpa [#allocation3], 0  ;;  %s9867_s0 = inlined_call_operand.hbm [shape: f32[128,768], index: 0, kind: input, shape index: {}]   ;;  %s9868_s1 = inlined_call_operand.hbm [shape: bf16[768,1024], index: 1, kind: input, shape index: {}]   ;;  %s9869_s2 = inlined_call_operand.hbm [shape: bf16[512,768], index: 2, kind: input, shape index: {}]   ;;  %s9870_s3 = inlined_call_operand.hbm [shape: bf16[768,128], index: 3, kind: input, shape index: {}]   ;;  %s9871_s4 = inlined_call_operand.hbm [shape: f32[1,128], index: 4, kind: input, shape index: {}]   ;;  %s9872_s5 = inlined_call_operand.hbm [shape: f32[128,128], index: 5, kind: output, shape index: {}]  }
   0x1   :  { %11 = vsyncpa [#allocation6], 0 }
   0x2   :  { %12 = vsyncpa [#allocation9], 0 }
   0x3   :  { %13 = vsyncpa [#allocation4], 0  ;;  %s8693_s18 = smov [#allocation5]   ;;  %s8553_s22 = scalar_lea.hbm %s9868_s1, 49152 }
   0x4   :  { %s31_s19 = sshll.u32 %s8693_s18, 4  ;;  %p8554_p0 = scmp.ne.s32.totalorder %s9868_s1, %s8553_s22  ;;  %s32_s19 = int_to_ptr.vmem [resolvable:$true] %s31_s19 }
   0x5   :  { %p8557_p1 = scmp.lt.u32.totalorder %s8553_s22, %s9868_s1 }
   0x7   :  { %p8559_p2 = pnand %p8557_p1, %p8554_p0 }
   0x9   :  { %8562 = shalt.err (!%p8559_p2)
}
   0xa   :  { %s8563_s27 = scalar_lea.vmem %s32_s19, 49152  ;;  %p8568_p4 = scmp.lt.s32.totalorder %s32_s19, %s32_s19 }
   0xb   :  { %p8564_p3 = scmp.ne.s32.totalorder %s32_s19, %s8563_s27  ;;  %p8569_p5 = scmp.lt.s32.totalorder %s8563_s27, %s8563_s27 }
   0xd   :  { %p8570_p6 = por %p8569_p5, %p8568_p4 }
   0xf   :  { %p8571_p7 = pnand %p8570_p6, %p8564_p3 }
  0x11   :  { %8574 = shalt.err (!%p8571_p7)
}
  0x12   :  { %s8694_s28 = smov 512   ;;  %s8695_s29 = smov 32  }
  0x13   :  { %37 = dma.hbm_to_vmem [thread:$0]  %s9868_s1, 49152, %s32_s19, [#allocation6], %s8694_s28, %s8694_s28, %s8695_s29  }
  0x14   :  { %s8696_s7 = smov [#allocation8]   ;;  %s8575_s11 = scalar_lea.hbm %s9870_s3, 6144 }
  0x15   :  { %s55_s8 = sshll.u32 %s8696_s7, 4  ;;  %p8576_p8 = scmp.ne.s32.totalorder %s9870_s3, %s8575_s11  ;;  %s56_s8 = int_to_ptr.vmem [resolvable:$true] %s55_s8 }
  0x16   :  { %p8579_p9 = scmp.lt.u32.totalorder %s8575_s11, %s9870_s3 }
  0x18   :  { %p8581_p10 = pnand %p8579_p9, %p8576_p8 }
  0x1a   :  { %8584 = shalt.err (!%p8581_p10)
}
  0x1b   :  { %s8585_s16 = scalar_lea.vmem %s56_s8, 6144  ;;  %p8590_p12 = scmp.lt.s32.totalorder %s56_s8, %s56_s8 }
  0x1c   :  { %p8586_p11 = scmp.ne.s32.totalorder %s56_s8, %s8585_s16  ;;  %p8591_p13 = scmp.lt.s32.totalorder %s8585_s16, %s8585_s16 }
  0x1e   :  { %p8592_p0 = por %p8591_p13, %p8590_p12 }
  0x20   :  { %p8593_p1 = pnand %p8592_p0, %p8586_p11 }
  0x22   :  { %8596 = shalt.err (!%p8593_p1)
}
  0x23   :  { %s8697_s1 = smov 64   ;;  %s8698_s17 = smov 4  }
  0x24   :  { %61 = dma.hbm_to_vmem [thread:$0]  %s9870_s3, 6144, %s56_s8, [#allocation9], %s8697_s1, %s8697_s1, %s8698_s17  }
  0x25   :  { %s8699_s20 = smov [#allocation2]   ;;  %s8597_s24 = scalar_lea.hbm %s9867_s0, 12288 }
  0x26   :  { %s19_s21 = sshll.u32 %s8699_s20, 4  ;;  %p8598_p2 = scmp.ne.s32.totalorder %s9867_s0, %s8597_s24  ;;  %s20_s21 = int_to_ptr.vmem [resolvable:$true] %s19_s21 }
  0x27   :  { %p8601_p3 = scmp.lt.u32.totalorder %s8597_s24, %s9867_s0 }
  0x29   :  { %p8603_p4 = pnand %p8601_p3, %p8598_p2 }
  0x2b   :  { %8606 = shalt.err (!%p8603_p4)
}
  0x2c   :  { %s8607_s29 = scalar_lea.vmem %s20_s21, 12288  ;;  %p8612_p6 = scmp.lt.s32.totalorder %s20_s21, %s20_s21 }
  0x2d   :  { %p8608_p5 = scmp.ne.s32.totalorder %s20_s21, %s8607_s29  ;;  %p8613_p7 = scmp.lt.s32.totalorder %s8607_s29, %s8607_s29 }
  0x2f   :  { %p8614_p8 = por %p8613_p7, %p8612_p6 }
  0x31   :  { %p8615_p9 = pnand %p8614_p8, %p8608_p5 }
  0x33   :  { %8618 = shalt.err (!%p8615_p9)
}
  0x34   :  { %s8700_s3 = smov 768   ;;  %s8701_s30 = smov 48  }
  0x35   :  { %25 = dma.hbm_to_vmem [thread:$0]  %s9867_s0, 12288, %s20_s21, [#allocation3], %s8700_s3, %s8700_s3, %s8701_s30  }
  0x36   :  { %s8702_s8 = smov [#allocation7]   ;;  %s8619_s12 = scalar_lea.hbm %s9869_s2, 24576 }
  0x37   :  { %s43_s9 = sshll.u32 %s8702_s8, 4  ;;  %p8620_p10 = scmp.ne.s32.totalorder %s9869_s2, %s8619_s12  ;;  %s44_s9 = int_to_ptr.vmem [resolvable:$true] %s43_s9 }
  0x38   :  { %p8623_p11 = scmp.lt.u32.totalorder %s8619_s12, %s9869_s2 }
  0x3a   :  { %p8625_p12 = pnand %p8623_p11, %p8620_p10 }
  0x3c   :  { %8628 = shalt.err (!%p8625_p12)
}
  0x3d   :  { %s8629_s1 = scalar_lea.vmem %s44_s9, 24576  ;;  %p8634_p0 = scmp.lt.s32.totalorder %s44_s9, %s44_s9 }
  0x3e   :  { %p8630_p13 = scmp.ne.s32.totalorder %s44_s9, %s8629_s1  ;;  %p8635_p1 = scmp.lt.s32.totalorder %s8629_s1, %s8629_s1 }
  0x40   :  { %p8636_p2 = por %p8635_p1, %p8634_p0 }
  0x42   :  { %p8637_p3 = pnand %p8636_p2, %p8630_p13 }
  0x44   :  { %8640 = shalt.err (!%p8637_p3)
}
  0x45   :  { %s8703_s0 = smov 384   ;;  %s8704_s17 = smov 24  }
  0x46   :  { %49 = dma.hbm_to_vmem [thread:$0]  %s9869_s2, 24576, %s44_s9, [#allocation6], %s8703_s0, %s8703_s0, %s8704_s17  }
  0x47   :  { %s8705_s20 = smov [#allocation10]   ;;  %s8641_s24 = scalar_lea.hbm %s9871_s4, 16 }
  0x48   :  { %s68_s21 = sshll.u32 %s8705_s20, 4  ;;  %p8642_p4 = scmp.ne.s32.totalorder %s9871_s4, %s8641_s24  ;;  %s69_s21 = int_to_ptr.vmem [resolvable:$true] %s68_s21 }
  0x49   :  { %p8645_p5 = scmp.lt.u32.totalorder %s8641_s24, %s9871_s4 }
  0x4b   :  { %p8647_p6 = pnand %p8645_p5, %p8642_p4 }
  0x4d   :  { %8650 = shalt.err (!%p8647_p6)
}
  0x4e   :  { %s8651_s29 = scalar_lea.vmem %s69_s21, 16  ;;  %s8655_s2 = scalar_lea.vmem %s69_s21, 32 }
  0x4f   :  { %p8652_p7 = scmp.ne.s32.totalorder %s69_s21, %s8651_s29  ;;  %p8656_p8 = scmp.lt.s32.totalorder %s69_s21, %s69_s21 }
  0x50   :  { %p8657_p9 = scmp.lt.s32.totalorder %s8655_s2, %s8651_s29 }
  0x52   :  { %p8658_p10 = por %p8657_p9, %p8656_p8 }
  0x54   :  { %p8659_p11 = pnand %p8658_p10, %p8652_p7 }
  0x56   :  { %8662 = shalt.err (!%p8659_p11)
}
  0x57   :  { %71 = dma.hbm_to_vmem [thread:$0]  %s9871_s4, 16, %s69_s21, [#allocation9]  }
  0x58   :  { %8685 = dma.done.wait [#allocation3], 12288  }
  0x59   :  { %8686 = vsyncadd [#allocation3], 4294955008 }
  0x5a   :  { %8687 = dma.done.wait [#allocation6], 73728  }
  0x5b   :  { %8688 = vsyncadd [#allocation6], 4294893568 }
  0x5c   :  { %8689 = dma.done.wait [#allocation9], 6160  }
  0x5d   :  { %8690 = vsyncadd [#allocation9], 4294961136  ;;  %v233_v0 = vld [vmem:[#allocation5] sm:$0xff]  ;;  %v234_v2 = vld [vmem:[#allocation5 + $0x8] sm:$0xff]  ;;  %s8706_s4 = smov [#allocation11]  }
  0x5e   :  { %v237_v1 = vld [vmem:[#allocation5 + $0x20] sm:$0xff]  ;;  %v238_v4 = vld [vmem:[#allocation5 + $0x28] sm:$0xff]  ;;  %v96_v54 = vld [vmem:[#allocation2 + $0x38] sm:$0xff]  ;;  %s6826_s6 = sshll.u32 %s8706_s4, 4  ;;  %s6827_s6 = int_to_ptr.vmem [resolvable:$true] %s6826_s6 }
  0x5f   :  { %v6841_v3 = vcombine.high %v233_v0, %v237_v1  ;;  %v6840_v5 = vcombine.low %v233_v0, %v237_v1  ;;  %v241_v6 = vld [vmem:[#allocation5 + $0x40] sm:$0xff]  ;;  %v6843_v8 = vcombine.high %v234_v2, %v238_v4  ;;  %v6842_v9 = vcombine.low %v234_v2, %v238_v4  ;;  %v242_v11 = vld [vmem:[#allocation5 + $0x48] sm:$0xff]  ;;  %s8663_s7 = scalar_lea.vmem %s6827_s6, 2048  ;;  %p8668_p13 = scmp.lt.s32.totalorder %s6827_s6, %s6827_s6 }
  0x60   :  { %v245_v7 = vld [vmem:[#allocation5 + $0x60] sm:$0xff]  ;;  %v246_v12 = vld [vmem:[#allocation5 + $0x68] sm:$0xff]  ;;  %p8664_p12 = scmp.ne.s32.totalorder %s6827_s6, %s8663_s7  ;;  %p8669_p0 = scmp.lt.s32.totalorder %s8663_s7, %s8663_s7 }
  0x61   :  { %v6849_v10 = vcombine.high %v241_v6, %v245_v7  ;;  %v249_v13 = vld [vmem:[#allocation5 + $0x80] sm:$0xff]  ;;  %2537 = vmatprep.subr.bf16.mxu0 %v6841_v3  ;;  %v6851_v14 = vcombine.high %v242_v11, %v246_v12  ;;  %v250_v16 = vld [vmem:[#allocation5 + $0x88] sm:$0xff]  ;;  %2876 = vmatprep.subr.bf16.mxu1 %v6843_v8  ;;  %v6848_v18 = vcombine.low %v241_v6, %v245_v7 }
  0x62   :  { %v253_v15 = vld [vmem:[#allocation5 + $0xa0] sm:$0xff]  ;;  %v254_v17 = vld [vmem:[#allocation5 + $0xa8] sm:$0xff]  ;;  %2538 = vmatpush1.bf16.msra.mxu0 %v6840_v5  ;;  %2877 = vmatpush1.bf16.msra.mxu1 %v6842_v9  ;;  %v6850_v19 = vcombine.low %v242_v11, %v246_v12  ;;  %p8670_p1 = por %p8669_p0, %p8668_p13 }
  0x63   :  { %2539 = vmatprep.subr.bf16.mxu0 %v6849_v10  ;;  %v6857_v20 = vcombine.high %v249_v13, %v253_v15  ;;  %2878 = vmatprep.subr.bf16.mxu1 %v6851_v14  ;;  %v6859_v21 = vcombine.high %v250_v16, %v254_v17  ;;  %v257_v22 = vld [vmem:[#allocation5 + $0xc0] sm:$0xff]  ;;  %v258_v24 = vld [vmem:[#allocation5 + $0xc8] sm:$0xff]  ;;  %v6856_v26 = vcombine.low %v249_v13, %v253_v15 }
  0x64   :  { %v261_v23 = vld [vmem:[#allocation5 + $0xe0] sm:$0xff]  ;;  %v262_v25 = vld [vmem:[#allocation5 + $0xe8] sm:$0xff]  ;;  %v6858_v27 = vcombine.low %v250_v16, %v254_v17  ;;  %p8671_p2 = pnand %p8670_p1, %p8664_p12 }
  0x65   :  { %v6865_v28 = vcombine.high %v257_v22, %v261_v23  ;;  %v6867_v29 = vcombine.high %v258_v24, %v262_v25  ;;  %v265_v30 = vld [vmem:[#allocation5 + $0x100] sm:$0xff]  ;;  %v266_v32 = vld [vmem:[#allocation5 + $0x108] sm:$0xff]  ;;  %v6864_v34 = vcombine.low %v257_v22, %v261_v23  ;;  %v6866_v35 = vcombine.low %v258_v24, %v262_v25 }
  0x66   :  { %2540 = vmatpush1.bf16.msra.mxu0 %v6848_v18  ;;  %2879 = vmatpush1.bf16.msra.mxu1 %v6850_v19  ;;  %v269_v31 = vld [vmem:[#allocation5 + $0x120] sm:$0xff]  ;;  %v270_v33 = vld [vmem:[#allocation5 + $0x128] sm:$0xff] }
  0x67   :  { %2541 = vmatprep.subr.bf16.mxu0 %v6857_v20  ;;  %2880 = vmatprep.subr.bf16.mxu1 %v6859_v21  ;;  %v6873_v36 = vcombine.high %v265_v30, %v269_v31  ;;  %v6875_v37 = vcombine.high %v266_v32, %v270_v33  ;;  %v273_v38 = vld [vmem:[#allocation5 + $0x140] sm:$0xff]  ;;  %v274_v40 = vld [vmem:[#allocation5 + $0x148] sm:$0xff]  ;;  %v6872_v42 = vcombine.low %v265_v30, %v269_v31 }
  0x68   :  { %v277_v39 = vld [vmem:[#allocation5 + $0x160] sm:$0xff]  ;;  %v278_v41 = vld [vmem:[#allocation5 + $0x168] sm:$0xff]  ;;  %v6874_v43 = vcombine.low %v266_v32, %v270_v33 }
  0x69   :  { %v6881_v44 = vcombine.high %v273_v38, %v277_v39  ;;  %v6883_v45 = vcombine.high %v274_v40, %v278_v41  ;;  %v281_v46 = vld [vmem:[#allocation5 + $0x180] sm:$0xff]  ;;  %v282_v48 = vld [vmem:[#allocation5 + $0x188] sm:$0xff]  ;;  %v6880_v50 = vcombine.low %v273_v38, %v277_v39  ;;  %v6882_v51 = vcombine.low %v274_v40, %v278_v41 }
  0x6a   :  { %2542 = vmatpush1.bf16.msra.mxu0 %v6856_v26  ;;  %2881 = vmatpush1.bf16.msra.mxu1 %v6858_v27  ;;  %v285_v47 = vld [vmem:[#allocation5 + $0x1a0] sm:$0xff]  ;;  %v286_v49 = vld [vmem:[#allocation5 + $0x1a8] sm:$0xff] }
  0x6b   :  { %2543 = vmatprep.subr.bf16.mxu0 %v6865_v28  ;;  %2882 = vmatprep.subr.bf16.mxu1 %v6867_v29  ;;  %v6889_v52 = vcombine.high %v281_v46, %v285_v47  ;;  %v90_v53 = vld [vmem:[#allocation2 + $0x8] sm:$0xff]  ;;  %v6891_v55 = vcombine.high %v282_v48, %v286_v49  ;;  %v289_v56 = vld [vmem:[#allocation5 + $0x1c0] sm:$0xff]  ;;  %v6888_v61 = vcombine.low %v281_v46, %v285_v47 }
  0x6c   :  { %v293_v57 = vld [vmem:[#allocation5 + $0x1e0] sm:$0xff]  ;;  %v8799_v58 = vpack.c.bf16 %v96_v54, %v90_v53  ;;  %v290_v59 = vld [vmem:[#allocation5 + $0x1c8] sm:$0xff]  ;;  %v6890_v62 = vcombine.low %v282_v48, %v286_v49 }
  0x6d   :  { %v294_v60 = vld [vmem:[#allocation5 + $0x1e8] sm:$0xff]  ;;  %v6897_v63 = vcombine.high %v289_v56, %v293_v57  ;;  %v297_v1 = vld [vmem:[#allocation5 + $0x200] sm:$0xff]  ;;  %v6896_v5 = vcombine.low %v289_v56, %v293_v57 }
  0x6e   :  { %2544 = vmatpush1.bf16.msra.mxu0 %v6864_v34  ;;  %2883 = vmatpush1.bf16.msra.mxu1 %v6866_v35  ;;  %v6899_v0 = vcombine.high %v290_v59, %v294_v60  ;;  %v301_v2 = vld [vmem:[#allocation5 + $0x220] sm:$0xff]  ;;  %v298_v3 = vld [vmem:[#allocation5 + $0x208] sm:$0xff]  ;;  %v6898_v6 = vcombine.low %v290_v59, %v294_v60 }
  0x6f   :  { %2545 = vmatprep.subr.bf16.mxu0 %v6873_v36  ;;  %2884 = vmatprep.subr.bf16.mxu1 %v6875_v37  ;;  %v302_v4 = vld [vmem:[#allocation5 + $0x228] sm:$0xff]  ;;  %v6905_v7 = vcombine.high %v297_v1, %v301_v2  ;;  %v305_v9 = vld [vmem:[#allocation5 + $0x240] sm:$0xff]  ;;  %v6904_v13 = vcombine.low %v297_v1, %v301_v2 }
  0x70   :  { %2569 = vmatprep.mubr.bf16.mxu0 %v8799_v58  ;;  %2908 = vmatprep.mubr.bf16.mxu1 %v8799_v58  ;;  %v6907_v8 = vcombine.high %v298_v3, %v302_v4  ;;  %v309_v10 = vld [vmem:[#allocation5 + $0x260] sm:$0xff]  ;;  %v306_v11 = vld [vmem:[#allocation5 + $0x248] sm:$0xff]  ;;  %v6906_v14 = vcombine.low %v298_v3, %v302_v4 }
  0x71   :  { %v310_v12 = vld [vmem:[#allocation5 + $0x268] sm:$0xff]  ;;  %v6913_v15 = vcombine.high %v305_v9, %v309_v10  ;;  %v313_v17 = vld [vmem:[#allocation5 + $0x280] sm:$0xff]  ;;  %v6912_v21 = vcombine.low %v305_v9, %v309_v10 }
  0x72   :  { %2546 = vmatpush1.bf16.msra.mxu0 %v6872_v42  ;;  %2885 = vmatpush1.bf16.msra.mxu1 %v6874_v43  ;;  %v6915_v16 = vcombine.high %v306_v11, %v310_v12  ;;  %v317_v18 = vld [vmem:[#allocation5 + $0x2a0] sm:$0xff]  ;;  %v314_v19 = vld [vmem:[#allocation5 + $0x288] sm:$0xff]  ;;  %v6914_v22 = vcombine.low %v306_v11, %v310_v12 }
  0x73   :  { %2547 = vmatprep.subr.bf16.mxu0 %v6881_v44  ;;  %2886 = vmatprep.subr.bf16.mxu1 %v6883_v45  ;;  %v318_v20 = vld [vmem:[#allocation5 + $0x2a8] sm:$0xff]  ;;  %v6921_v23 = vcombine.high %v313_v17, %v317_v18  ;;  %v321_v25 = vld [vmem:[#allocation5 + $0x2c0] sm:$0xff]  ;;  %v6920_v29 = vcombine.low %v313_v17, %v317_v18  ;;  %v108_v18 = vld [vmem:[#allocation2 + $0x98] sm:$0xff] }
  0x74   :  { %v6923_v24 = vcombine.high %v314_v19, %v318_v20  ;;  %v325_v26 = vld [vmem:[#allocation5 + $0x2e0] sm:$0xff]  ;;  %v322_v27 = vld [vmem:[#allocation5 + $0x2c8] sm:$0xff]  ;;  %v6922_v30 = vcombine.low %v314_v19, %v318_v20 }
  0x75   :  { %v326_v28 = vld [vmem:[#allocation5 + $0x2e8] sm:$0xff]  ;;  %v6929_v31 = vcombine.high %v321_v25, %v325_v26  ;;  %v329_v33 = vld [vmem:[#allocation5 + $0x300] sm:$0xff]  ;;  %v6928_v37 = vcombine.low %v321_v25, %v325_v26 }
  0x76   :  { %2548 = vmatpush1.bf16.msra.mxu0 %v6880_v50  ;;  %2887 = vmatpush1.bf16.msra.mxu1 %v6882_v51  ;;  %v6931_v32 = vcombine.high %v322_v27, %v326_v28  ;;  %v333_v34 = vld [vmem:[#allocation5 + $0x320] sm:$0xff]  ;;  %v330_v35 = vld [vmem:[#allocation5 + $0x308] sm:$0xff]  ;;  %v6930_v38 = vcombine.low %v322_v27, %v326_v28 }
  0x77   :  { %2549 = vmatprep.subr.bf16.mxu0 %v6889_v52  ;;  %2888 = vmatprep.subr.bf16.mxu1 %v6891_v55  ;;  %v334_v36 = vld [vmem:[#allocation5 + $0x328] sm:$0xff]  ;;  %v6937_v39 = vcombine.high %v329_v33, %v333_v34  ;;  %v337_v41 = vld [vmem:[#allocation5 + $0x340] sm:$0xff]  ;;  %v6936_v45 = vcombine.low %v329_v33, %v333_v34 }
  0x78   :  { %v6939_v40 = vcombine.high %v330_v35, %v334_v36  ;;  %v341_v42 = vld [vmem:[#allocation5 + $0x360] sm:$0xff]  ;;  %v338_v43 = vld [vmem:[#allocation5 + $0x348] sm:$0xff]  ;;  %v6938_v46 = vcombine.low %v330_v35, %v334_v36 }
  0x79   :  { %v342_v44 = vld [vmem:[#allocation5 + $0x368] sm:$0xff]  ;;  %v6945_v47 = vcombine.high %v337_v41, %v341_v42  ;;  %v345_v49 = vld [vmem:[#allocation5 + $0x380] sm:$0xff]  ;;  %v6944_v53 = vcombine.low %v337_v41, %v341_v42 }
  0x7a   :  { %2550 = vmatpush1.bf16.msra.mxu0 %v6888_v61  ;;  %2889 = vmatpush1.bf16.msra.mxu1 %v6890_v62  ;;  %v6947_v48 = vcombine.high %v338_v43, %v342_v44  ;;  %v349_v50 = vld [vmem:[#allocation5 + $0x3a0] sm:$0xff]  ;;  %v346_v51 = vld [vmem:[#allocation5 + $0x388] sm:$0xff]  ;;  %v6946_v54 = vcombine.low %v338_v43, %v342_v44 }
  0x7b   :  { %2551 = vmatprep.subr.bf16.mxu0 %v6897_v63  ;;  %2890 = vmatprep.subr.bf16.mxu1 %v6899_v0  ;;  %v350_v52 = vld [vmem:[#allocation5 + $0x3a8] sm:$0xff]  ;;  %v6953_v55 = vcombine.high %v345_v49, %v349_v50  ;;  %v353_v57 = vld [vmem:[#allocation5 + $0x3c0] sm:$0xff]  ;;  %v6952_v62 = vcombine.low %v345_v49, %v349_v50 }
  0x7c   :  { %v6955_v56 = vcombine.high %v346_v51, %v350_v52  ;;  %v357_v59 = vld [vmem:[#allocation5 + $0x3e0] sm:$0xff]  ;;  %v354_v60 = vld [vmem:[#allocation5 + $0x3c8] sm:$0xff]  ;;  %v6954_v63 = vcombine.low %v346_v51, %v350_v52  ;;  %v119_v52 = vld [vmem:[#allocation2 + $0xf0] sm:$0xff] }
  0x7d   :  { %v358_v61 = vld [vmem:[#allocation5 + $0x3e8] sm:$0xff]  ;;  %v6961_v0 = vcombine.high %v353_v57, %v357_v59  ;;  %v361_v2 = vld [vmem:[#allocation5 + $0x400] sm:$0xff] }
  0x7e   :  { %2552 = vmatpush1.bf16.msra.mxu0 %v6896_v5  ;;  %2891 = vmatpush1.bf16.msra.mxu1 %v6898_v6  ;;  %v6963_v1 = vcombine.high %v354_v60, %v358_v61  ;;  %v365_v3 = vld [vmem:[#allocation5 + $0x420] sm:$0xff]  ;;  %v362_v4 = vld [vmem:[#allocation5 + $0x408] sm:$0xff]  ;;  %v6960_v6 = vcombine.low %v353_v57, %v357_v59  ;;  %v6962_v9 = vcombine.low %v354_v60, %v358_v61 }
  0x7f   :  { %2553 = vmatprep.subr.bf16.mxu0 %v6905_v7  ;;  %2892 = vmatprep.subr.bf16.mxu1 %v6907_v8  ;;  %v366_v5 = vld [vmem:[#allocation5 + $0x428] sm:$0xff]  ;;  %v89_v7 = vld [vmem:[#allocation2] sm:$0xff]  ;;  %v95_v8 = vld [vmem:[#allocation2 + $0x30] sm:$0xff]  ;;  %v6969_v10 = vcombine.high %v361_v2, %v365_v3  ;;  %v6968_v19 = vcombine.low %v361_v2, %v365_v3 }
  0x80   :  { %v6971_v11 = vcombine.high %v362_v4, %v366_v5  ;;  %v369_v12 = vld [vmem:[#allocation5 + $0x440] sm:$0xff]  ;;  %v102_v17 = vld [vmem:[#allocation2 + $0x68] sm:$0xff]  ;;  %v6970_v20 = vcombine.low %v362_v4, %v366_v5 }
  0x81   :  { %v381_v25 = vld [vmem:[#allocation5 + $0x4a0] sm:$0xff]  ;;  %v378_v26 = vld [vmem:[#allocation5 + $0x488] sm:$0xff] }
  0x82   :  { %2554 = vmatpush1.bf16.msra.mxu0 %v6904_v13  ;;  %2893 = vmatpush1.bf16.msra.mxu1 %v6906_v14  ;;  %v373_v13 = vld [vmem:[#allocation5 + $0x460] sm:$0xff]  ;;  %v370_v14 = vld [vmem:[#allocation5 + $0x448] sm:$0xff] }
  0x83   :  { %2555 = vmatprep.subr.bf16.mxu0 %v6913_v15  ;;  %2894 = vmatprep.subr.bf16.mxu1 %v6915_v16  ;;  %v8803_v15 = vpack.c.bf16 %v95_v8, %v89_v7  ;;  %v374_v16 = vld [vmem:[#allocation5 + $0x468] sm:$0xff]  ;;  %v6976_v28 = vcombine.low %v369_v12, %v373_v13  ;;  %v385_v34 = vld [vmem:[#allocation5 + $0x4c0] sm:$0xff] }
  0x84   :  { %v382_v27 = vld [vmem:[#allocation5 + $0x4a8] sm:$0xff]  ;;  %v389_v35 = vld [vmem:[#allocation5 + $0x4e0] sm:$0xff] }
  0x85   :  { %v6987_v33 = vcombine.high %v378_v26, %v382_v27  ;;  %v386_v36 = vld [vmem:[#allocation5 + $0x4c8] sm:$0xff]  ;;  %v6986_v42 = vcombine.low %v378_v26, %v382_v27  ;;  %v6993_v43 = vcombine.high %v385_v34, %v389_v35  ;;  %v6992_v50 = vcombine.low %v385_v34, %v389_v35  ;;  %v113_v51 = vld [vmem:[#allocation2 + $0xc0] sm:$0xff]  ;;  %v143_v35 = vld [vmem:[#allocation2 + $0x1b0] sm:$0xff] }
  0x86   :  { %2556 = vmatpush1.bf16.msra.mxu0 %v6912_v21  ;;  %2895 = vmatpush1.bf16.msra.mxu1 %v6914_v22  ;;  %v6977_v21 = vcombine.high %v369_v12, %v373_v13  ;;  %v6979_v22 = vcombine.high %v370_v14, %v374_v16  ;;  %v398_v49 = vld [vmem:[#allocation5 + $0x528] sm:$0xff]  ;;  %v405_v57 = vld [vmem:[#allocation5 + $0x560] sm:$0xff]  ;;  %v8819_v60 = vpack.c.bf16 %v119_v52, %v113_v51 }
  0x87   :  { %2557 = vmatprep.subr.bf16.mxu0 %v6921_v23  ;;  %2896 = vmatprep.subr.bf16.mxu1 %v6923_v24  ;;  %v8805_v23 = vpack.c.bf16 %v108_v18, %v102_v17  ;;  %v377_v24 = vld [vmem:[#allocation5 + $0x480] sm:$0xff]  ;;  %v402_v59 = vld [vmem:[#allocation5 + $0x548] sm:$0xff] }
  0x88   :  { %v6984_v41 = vcombine.low %v377_v24, %v381_v25  ;;  %v406_v61 = vld [vmem:[#allocation5 + $0x568] sm:$0xff]  ;;  %v409_v5 = vld [vmem:[#allocation5 + $0x580] sm:$0xff] }
  0x89   :  { %v7011_v3 = vcombine.high %v402_v59, %v406_v61  ;;  %v410_v7 = vld [vmem:[#allocation5 + $0x588] sm:$0xff]  ;;  %v7010_v12 = vcombine.low %v402_v59, %v406_v61  ;;  %v421_v17 = vld [vmem:[#allocation5 + $0x5e0] sm:$0xff]  ;;  %v155_v61 = vld [vmem:[#allocation2 + $0x210] sm:$0xff] }
  0x8a   :  { %2558 = vmatpush1.bf16.msra.mxu0 %v6920_v29  ;;  %2897 = vmatpush1.bf16.msra.mxu1 %v6922_v30  ;;  %v101_v29 = vld [vmem:[#allocation2 + $0x60] sm:$0xff]  ;;  %v107_v30 = vld [vmem:[#allocation2 + $0x90] sm:$0xff]  ;;  %v414_v8 = vld [vmem:[#allocation5 + $0x5a8] sm:$0xff] }
  0x8b   :  { %2559 = vmatprep.subr.bf16.mxu0 %v6929_v31  ;;  %2898 = vmatprep.subr.bf16.mxu1 %v6931_v32  ;;  %v6978_v31 = vcombine.low %v370_v14, %v374_v16  ;;  %v6985_v32 = vcombine.high %v377_v24, %v381_v25  ;;  %v7019_v14 = vcombine.high %v410_v7, %v414_v8  ;;  %v417_v16 = vld [vmem:[#allocation5 + $0x5c0] sm:$0xff]  ;;  %v418_v18 = vld [vmem:[#allocation5 + $0x5c8] sm:$0xff] }
  0x8c   :  { %v7018_v25 = vcombine.low %v410_v7, %v414_v8  ;;  %v7025_v26 = vcombine.high %v417_v16, %v421_v17  ;;  %v137_v34 = vld [vmem:[#allocation2 + $0x180] sm:$0xff]  ;;  %v162_v7 = vld [vmem:[#allocation2 + $0x248] sm:$0xff]  ;;  %v168_v8 = vld [vmem:[#allocation2 + $0x278] sm:$0xff] }
  0x8d   :  { %v149_v59 = vld [vmem:[#allocation2 + $0x1e0] sm:$0xff] }
  0x8e   :  { %2560 = vmatpush1.bf16.msra.mxu0 %v6928_v37  ;;  %2899 = vmatpush1.bf16.msra.mxu1 %v6930_v38  ;;  %v8811_v37 = vpack.c.bf16 %v107_v30, %v101_v29  ;;  %v390_v38 = vld [vmem:[#allocation5 + $0x4e8] sm:$0xff]  ;;  %v425_v29 = vld [vmem:[#allocation5 + $0x600] sm:$0xff] }
  0x8f   :  { %2561 = vmatprep.subr.bf16.mxu0 %v6937_v39  ;;  %2900 = vmatprep.subr.bf16.mxu1 %v6939_v40  ;;  %v114_v39 = vld [vmem:[#allocation2 + $0xc8] sm:$0xff]  ;;  %v120_v40 = vld [vmem:[#allocation2 + $0xf8] sm:$0xff]  ;;  %v6995_v44 = vcombine.high %v386_v36, %v390_v38  ;;  %v429_v30 = vld [vmem:[#allocation5 + $0x620] sm:$0xff] }
  0x92   :  { %2562 = vmatpush1.bf16.msra.mxu0 %v6936_v45  ;;  %2901 = vmatpush1.bf16.msra.mxu1 %v6938_v46  ;;  %v8813_v45 = vpack.c.bf16 %v120_v40, %v114_v39  ;;  %v393_v46 = vld [vmem:[#allocation5 + $0x500] sm:$0xff] }
  0x93   :  { %2563 = vmatprep.subr.bf16.mxu0 %v6945_v47  ;;  %2902 = vmatprep.subr.bf16.mxu1 %v6947_v48  ;;  %v397_v47 = vld [vmem:[#allocation5 + $0x520] sm:$0xff]  ;;  %v394_v48 = vld [vmem:[#allocation5 + $0x508] sm:$0xff] }
  0x94   :  { %v433_v40 = vld [vmem:[#allocation5 + $0x640] sm:$0xff] }
  0x96   :  { %2564 = vmatpush1.bf16.msra.mxu0 %v6944_v53  ;;  %2903 = vmatpush1.bf16.msra.mxu1 %v6946_v54  ;;  %v6994_v53 = vcombine.low %v386_v36, %v390_v38  ;;  %v7001_v54 = vcombine.high %v393_v46, %v397_v47  ;;  %v7033_v38 = vcombine.high %v425_v29, %v429_v30 }
  0x97   :  { %2565 = vmatprep.subr.bf16.mxu0 %v6953_v55  ;;  %2904 = vmatprep.subr.bf16.mxu1 %v6955_v56  ;;  %v7003_v55 = vcombine.high %v394_v48, %v398_v49  ;;  %v401_v56 = vld [vmem:[#allocation5 + $0x540] sm:$0xff] }
  0x98   :  { %v7009_v2 = vcombine.high %v401_v56, %v405_v57 }
  0x9a   :  { %2566 = vmatpush1.bf16.msra.mxu0 %v6952_v62  ;;  %2905 = vmatpush1.bf16.msra.mxu1 %v6954_v63  ;;  %v126_v62 = vld [vmem:[#allocation2 + $0x128] sm:$0xff]  ;;  %v132_v63 = vld [vmem:[#allocation2 + $0x158] sm:$0xff] }
  0x9b   :  { %2567 = vmatprep.subr.bf16.mxu0 %v6961_v0  ;;  %2906 = vmatprep.subr.bf16.mxu1 %v6963_v1  ;;  %v7000_v0 = vcombine.low %v393_v46, %v397_v47  ;;  %v7002_v1 = vcombine.low %v394_v48, %v398_v49  ;;  %v8821_v4 = vpack.c.bf16 %v132_v63, %v126_v62  ;;  %v150_v46 = vld [vmem:[#allocation2 + $0x1e8] sm:$0xff]  ;;  %v156_v47 = vld [vmem:[#allocation2 + $0x218] sm:$0xff] }
  0x9c   :  { %v7032_v48 = vcombine.low %v425_v29, %v429_v30  ;;  %v8837_v52 = vpack.c.bf16 %v156_v47, %v150_v46  ;;  %v466_v29 = vld [vmem:[#allocation5 + $0x748] sm:$0xff]  ;;  %v477_v46 = vld [vmem:[#allocation5 + $0x7a0] sm:$0xff] }
  0x9d   :  { %v470_v30 = vld [vmem:[#allocation5 + $0x768] sm:$0xff] }
  0x9e   :  { %2568 = vmatpush1.bf16.msra.mxu0 %v6960_v6  ;;  %2907 = vmatpush1.bf16.msra.mxu1 %v6962_v9  ;;  %v413_v6 = vld [vmem:[#allocation5 + $0x5a0] sm:$0xff]  ;;  %v7008_v9 = vcombine.low %v401_v56, %v405_v57  ;;  %v446_v56 = vld [vmem:[#allocation5 + $0x6a8] sm:$0xff] }
  0x9f   :  { %2650 = vmatprep.subr.bf16.mxu0 %v6969_v10  ;;  %2989 = vmatprep.subr.bf16.mxu1 %v6971_v11  ;;  %v125_v10 = vld [vmem:[#allocation2 + $0x120] sm:$0xff]  ;;  %v131_v11 = vld [vmem:[#allocation2 + $0x150] sm:$0xff]  ;;  %v7017_v13 = vcombine.high %v409_v5, %v413_v6  ;;  %v7016_v24 = vcombine.low %v409_v5, %v413_v6  ;;  %v8843_v5 = vpack.c.bf16 %v155_v61, %v149_v59  ;;  %v454_v6 = vld [vmem:[#allocation5 + $0x6e8] sm:$0xff] }
  0xa0   :  { %v474_v47 = vld [vmem:[#allocation5 + $0x788] sm:$0xff] }
  0xa1   :  { %2570 = vmatmul.mubr.bf16.vlgmr.msra.gmra.mrb[0].mxu0 %v8803_v15  ;;  %2909 = vmatmul.mubr.bf16.vlgmr.msra.gmra.mrb[0].mxu1 %v8803_v15  ;;  %v98_v61 = vld [vmem:[#allocation2 + $0x48] sm:$0xff] }
  0xa2   :  { %2651 = vmatpush1.bf16.msra.mxu0 %v6968_v19  ;;  %2990 = vmatpush1.bf16.msra.mxu1 %v6970_v20  ;;  %v8827_v19 = vpack.c.bf16 %v131_v11, %v125_v10  ;;  %v422_v20 = vld [vmem:[#allocation5 + $0x5e8] sm:$0xff] }
  0xa3   :  { %2652 = vmatprep.subr.bf16.mxu0 %v6977_v21  ;;  %2991 = vmatprep.subr.bf16.mxu1 %v6979_v22  ;;  %v138_v21 = vld [vmem:[#allocation2 + $0x188] sm:$0xff]  ;;  %v144_v22 = vld [vmem:[#allocation2 + $0x1b8] sm:$0xff]  ;;  %v7027_v27 = vcombine.high %v418_v18, %v422_v20  ;;  %v7026_v36 = vcombine.low %v418_v18, %v422_v20  ;;  %v167_v18 = vld [vmem:[#allocation2 + $0x270] sm:$0xff] }
  0xa4   :  { %2579 = vmatprep.mubr.bf16.mxu0 %v8805_v23  ;;  %2918 = vmatprep.mubr.bf16.mxu1 %v8805_v23  ;;  %v458_v20 = vld [vmem:[#allocation5 + $0x708] sm:$0xff] }
  0xa6   :  { %2653 = vmatpush1.bf16.msra.mxu0 %v6976_v28  ;;  %2992 = vmatpush1.bf16.msra.mxu1 %v6978_v31  ;;  %v8829_v28 = vpack.c.bf16 %v144_v22, %v138_v21  ;;  %v426_v31 = vld [vmem:[#allocation5 + $0x608] sm:$0xff] }
  0xa7   :  { %2654 = vmatprep.subr.bf16.mxu0 %v6985_v32  ;;  %2993 = vmatprep.subr.bf16.mxu1 %v6987_v33  ;;  %v430_v32 = vld [vmem:[#allocation5 + $0x628] sm:$0xff]  ;;  %v7024_v33 = vcombine.low %v417_v16, %v421_v17  ;;  %v457_v16 = vld [vmem:[#allocation5 + $0x700] sm:$0xff] }
  0xa8   :  { %v7035_v39 = vcombine.high %v426_v31, %v430_v32  ;;  %v7034_v49 = vcombine.low %v426_v31, %v430_v32  ;;  %v461_v17 = vld [vmem:[#allocation5 + $0x720] sm:$0xff]  ;;  %v462_v21 = vld [vmem:[#allocation5 + $0x728] sm:$0xff] }
  0xa9   :  { %2580 = vmatmul.mubr.bf16.gmra.mrb[4].mxu0 %v8811_v37  ;;  %2919 = vmatmul.mubr.bf16.gmra.mrb[4].mxu1 %v8811_v37  ;;  %v174_v31 = vld [vmem:[#allocation2 + $0x2a8] sm:$0xff]  ;;  %v7067_v32 = vcombine.high %v458_v20, %v462_v21 }
  0xaa   :  { %2655 = vmatpush1.bf16.msra.mxu0 %v6984_v41  ;;  %2994 = vmatpush1.bf16.msra.mxu1 %v6986_v42  ;;  %v437_v41 = vld [vmem:[#allocation5 + $0x660] sm:$0xff]  ;;  %v434_v42 = vld [vmem:[#allocation5 + $0x648] sm:$0xff] }
  0xab   :  { %2656 = vmatprep.subr.bf16.mxu0 %v6993_v43  ;;  %2995 = vmatprep.subr.bf16.mxu1 %v6995_v44  ;;  %v8835_v43 = vpack.c.bf16 %v143_v35, %v137_v34  ;;  %v438_v44 = vld [vmem:[#allocation5 + $0x668] sm:$0xff]  ;;  %v7040_v57 = vcombine.low %v433_v40, %v437_v41  ;;  %v7064_v35 = vcombine.low %v457_v16, %v461_v17 }
  0xac   :  { %2589 = vmatprep.mubr.bf16.mxu0 %v8813_v45  ;;  %2928 = vmatprep.mubr.bf16.mxu1 %v8813_v45  ;;  %v7043_v51 = vcombine.high %v434_v42, %v438_v44  ;;  %v7042_v62 = vcombine.low %v434_v42, %v438_v44  ;;  %v173_v42 = vld [vmem:[#allocation2 + $0x2a0] sm:$0xff]  ;;  %v179_v44 = vld [vmem:[#allocation2 + $0x2d0] sm:$0xff] }
  0xae   :  { %2657 = vmatpush1.bf16.msra.mxu0 %v6992_v50  ;;  %2996 = vmatpush1.bf16.msra.mxu1 %v6994_v53  ;;  %v7041_v50 = vcombine.high %v433_v40, %v437_v41  ;;  %v441_v53 = vld [vmem:[#allocation5 + $0x680] sm:$0xff]  ;;  %v7075_v40 = vcombine.high %v466_v29, %v470_v30 }
  0xaf   :  { %2658 = vmatprep.subr.bf16.mxu0 %v7001_v54  ;;  %2997 = vmatprep.subr.bf16.mxu1 %v7003_v55  ;;  %v445_v54 = vld [vmem:[#allocation5 + $0x6a0] sm:$0xff]  ;;  %v442_v55 = vld [vmem:[#allocation5 + $0x688] sm:$0xff] }
  0xb0   :  { %v7049_v63 = vcombine.high %v441_v53, %v445_v54  ;;  %v7050_v10 = vcombine.low %v442_v55, %v446_v56 }
  0xb1   :  { %2590 = vmatmul.mubr.bf16.gmra.mrb[8].mxu0 %v8819_v60  ;;  %2929 = vmatmul.mubr.bf16.gmra.mrb[8].mxu1 %v8819_v60 }
  0xb2   :  { %2659 = vmatpush1.bf16.msra.mxu0 %v7000_v0  ;;  %2998 = vmatpush1.bf16.msra.mxu1 %v7002_v1  ;;  %v7051_v0 = vcombine.high %v442_v55, %v446_v56  ;;  %v449_v1 = vld [vmem:[#allocation5 + $0x6c0] sm:$0xff]  ;;  %v482_v55 = vld [vmem:[#allocation5 + $0x7c8] sm:$0xff] }
  0xb3   :  { %2660 = vmatprep.subr.bf16.mxu0 %v7009_v2  ;;  %2999 = vmatprep.subr.bf16.mxu1 %v7011_v3  ;;  %v453_v2 = vld [vmem:[#allocation5 + $0x6e0] sm:$0xff]  ;;  %v450_v3 = vld [vmem:[#allocation5 + $0x6c8] sm:$0xff] }
  0xb4   :  { %2599 = vmatprep.mubr.bf16.mxu0 %v8821_v4  ;;  %2938 = vmatprep.mubr.bf16.mxu1 %v8821_v4  ;;  %v7057_v11 = vcombine.high %v449_v1, %v453_v2  ;;  %v7056_v22 = vcombine.low %v449_v1, %v453_v2  ;;  %v486_v56 = vld [vmem:[#allocation5 + $0x7e8] sm:$0xff]  ;;  %v489_v2 = vld [vmem:[#allocation5 + $0x800] sm:$0xff] }
  0xb6   :  { %2661 = vmatpush1.bf16.msra.mxu0 %v7008_v9  ;;  %3000 = vmatpush1.bf16.msra.mxu1 %v7010_v12  ;;  %v7048_v9 = vcombine.low %v441_v53, %v445_v54  ;;  %v7059_v12 = vcombine.high %v450_v3, %v454_v6  ;;  %v7074_v53 = vcombine.low %v466_v29, %v470_v30 }
  0xb7   :  { %2662 = vmatprep.subr.bf16.mxu0 %v7017_v13  ;;  %3001 = vmatprep.subr.bf16.mxu1 %v7019_v14  ;;  %v8845_v13 = vpack.c.bf16 %v168_v8, %v162_v7  ;;  %v161_v14 = vld [vmem:[#allocation2 + $0x240] sm:$0xff]  ;;  %v91_v7 = vld [vmem:[#allocation2 + $0x10] sm:$0xff] }
  0xb8   :  { %v8851_v34 = vpack.c.bf16 %v167_v18, %v161_v14  ;;  %v97_v8 = vld [vmem:[#allocation2 + $0x40] sm:$0xff] }
  0xb9   :  { %2600 = vmatmul.mubr.bf16.gmra.mrb[12].mxu0 %v8827_v19  ;;  %2939 = vmatmul.mubr.bf16.gmra.mrb[12].mxu1 %v8827_v19  ;;  %v497_v14 = vld [vmem:[#allocation5 + $0x840] sm:$0xff] }
  0xba   :  { %2663 = vmatpush1.bf16.msra.mxu0 %v7016_v24  ;;  %3002 = vmatpush1.bf16.msra.mxu1 %v7018_v25  ;;  %v465_v24 = vld [vmem:[#allocation5 + $0x740] sm:$0xff] }
  0xbb   :  { %2664 = vmatprep.subr.bf16.mxu0 %v7025_v26  ;;  %3003 = vmatprep.subr.bf16.mxu1 %v7027_v27  ;;  %v469_v25 = vld [vmem:[#allocation5 + $0x760] sm:$0xff]  ;;  %v7058_v26 = vcombine.low %v450_v3, %v454_v6  ;;  %v7065_v27 = vcombine.high %v457_v16, %v461_v17  ;;  %v7091_v3 = vcombine.high %v482_v55, %v486_v56 }
  0xbc   :  { %2609 = vmatprep.mubr.bf16.mxu0 %v8829_v28  ;;  %2948 = vmatprep.mubr.bf16.mxu1 %v8829_v28  ;;  %v501_v16 = vld [vmem:[#allocation5 + $0x860] sm:$0xff]  ;;  %v7090_v17 = vcombine.low %v482_v55, %v486_v56 }
  0xbd   :  { %v7105_v30 = vcombine.high %v497_v14, %v501_v16 }
  0xbe   :  { %2665 = vmatpush1.bf16.msra.mxu0 %v7024_v33  ;;  %3004 = vmatpush1.bf16.msra.mxu1 %v7026_v36  ;;  %v180_v33 = vld [vmem:[#allocation2 + $0x2d8] sm:$0xff]  ;;  %v7066_v36 = vcombine.low %v458_v20, %v462_v21  ;;  %v498_v20 = vld [vmem:[#allocation5 + $0x848] sm:$0xff] }
  0xbf   :  { %2666 = vmatprep.subr.bf16.mxu0 %v7033_v38  ;;  %3005 = vmatprep.subr.bf16.mxu1 %v7035_v39  ;;  %v7073_v38 = vcombine.high %v465_v24, %v469_v25  ;;  %v473_v39 = vld [vmem:[#allocation5 + $0x780] sm:$0xff]  ;;  %v8853_v41 = vpack.c.bf16 %v180_v33, %v174_v31  ;;  %v502_v21 = vld [vmem:[#allocation5 + $0x868] sm:$0xff] }
  0xc0   :  { %v7081_v54 = vcombine.high %v473_v39, %v477_v46  ;;  %v505_v31 = vld [vmem:[#allocation5 + $0x880] sm:$0xff]  ;;  %v506_v33 = vld [vmem:[#allocation5 + $0x888] sm:$0xff] }
  0xc1   :  { %2610 = vmatmul.mubr.bf16.gmra.mrb[16].mxu0 %v8835_v43  ;;  %2949 = vmatmul.mubr.bf16.gmra.mrb[16].mxu1 %v8835_v43 }
  0xc2   :  { %2667 = vmatpush1.bf16.msra.mxu0 %v7032_v48  ;;  %3006 = vmatpush1.bf16.msra.mxu1 %v7034_v49  ;;  %v478_v48 = vld [vmem:[#allocation5 + $0x7a8] sm:$0xff]  ;;  %v7072_v49 = vcombine.low %v465_v24, %v469_v25 }
  0xc3   :  { %2668 = vmatprep.subr.bf16.mxu0 %v7041_v50  ;;  %3007 = vmatprep.subr.bf16.mxu1 %v7043_v51  ;;  %v481_v50 = vld [vmem:[#allocation5 + $0x7c0] sm:$0xff]  ;;  %v7083_v59 = vcombine.high %v474_v47, %v478_v48  ;;  %v110_v25 = vld [vmem:[#allocation2 + $0xa8] sm:$0xff] }
  0xc4   :  { %2619 = vmatprep.mubr.bf16.mxu0 %v8837_v52  ;;  %2958 = vmatprep.mubr.bf16.mxu1 %v8837_v52  ;;  %v485_v51 = vld [vmem:[#allocation5 + $0x7e0] sm:$0xff] }
  0xc5   :  { %v7089_v1 = vcombine.high %v481_v50, %v485_v51 }
  0xc6   :  { %2669 = vmatpush1.bf16.msra.mxu0 %v7040_v57  ;;  %3008 = vmatpush1.bf16.msra.mxu1 %v7042_v62  ;;  %v92_v57 = vld [vmem:[#allocation2 + $0x18] sm:$0xff]  ;;  %v8859_v62 = vpack.c.bf16 %v179_v44, %v173_v42  ;;  %v7104_v42 = vcombine.low %v497_v14, %v501_v16  ;;  %v513_v44 = vld [vmem:[#allocation5 + $0x8c0] sm:$0xff]  ;;  %v530_v16 = vld [vmem:[#allocation5 + $0x948] sm:$0xff] }
  0xc7   :  { %2670 = vmatprep.subr.bf16.mxu0 %v7049_v63  ;;  %3009 = vmatprep.subr.bf16.mxu1 %v7051_v0  ;;  %v7080_v63 = vcombine.low %v473_v39, %v477_v46  ;;  %v7082_v0 = vcombine.low %v474_v47, %v478_v48  ;;  %v8861_v6 = vpack.c.bf16 %v98_v61, %v92_v57  ;;  %v109_v39 = vld [vmem:[#allocation2 + $0xa0] sm:$0xff] }
  0xc8   :  { %v517_v46 = vld [vmem:[#allocation5 + $0x8e0] sm:$0xff]  ;;  %v7106_v47 = vcombine.low %v498_v20, %v502_v21 }
  0xc9   :  { %2620 = vmatmul.mubr.bf16.gmra.mrb[20].mxu0 %v8843_v5  ;;  %2959 = vmatmul.mubr.bf16.gmra.mrb[20].mxu1 %v8843_v5  ;;  %v521_v61 = vld [vmem:[#allocation5 + $0x900] sm:$0xff] }
  0xca   :  { %2671 = vmatpush1.bf16.msra.mxu0 %v7048_v9  ;;  %3010 = vmatpush1.bf16.msra.mxu1 %v7050_v10  ;;  %v493_v9 = vld [vmem:[#allocation5 + $0x820] sm:$0xff]  ;;  %v490_v10 = vld [vmem:[#allocation5 + $0x808] sm:$0xff] }
  0xcb   :  { %2672 = vmatprep.subr.bf16.mxu0 %v7057_v11  ;;  %3011 = vmatprep.subr.bf16.mxu1 %v7059_v12  ;;  %v494_v11 = vld [vmem:[#allocation5 + $0x828] sm:$0xff]  ;;  %v7088_v12 = vcombine.low %v481_v50, %v485_v51  ;;  %v7097_v18 = vcombine.high %v489_v2, %v493_v9  ;;  %v116_v51 = vld [vmem:[#allocation2 + $0xd8] sm:$0xff] }
  0xcc   :  { %2629 = vmatprep.mubr.bf16.mxu0 %v8845_v13  ;;  %2968 = vmatprep.mubr.bf16.mxu1 %v8845_v13  ;;  %v7099_v24 = vcombine.high %v490_v10, %v494_v11  ;;  %v7098_v29 = vcombine.low %v490_v10, %v494_v11  ;;  %v518_v50 = vld [vmem:[#allocation5 + $0x8e8] sm:$0xff]  ;;  %v529_v10 = vld [vmem:[#allocation5 + $0x940] sm:$0xff] }
  0xcd   :  { %v533_v11 = vld [vmem:[#allocation5 + $0x960] sm:$0xff] }
  0xce   :  { %2673 = vmatpush1.bf16.msra.mxu0 %v7056_v22  ;;  %3012 = vmatpush1.bf16.msra.mxu1 %v7058_v26  ;;  %v104_v22 = vld [vmem:[#allocation2 + $0x78] sm:$0xff]  ;;  %v8867_v26 = vpack.c.bf16 %v97_v8, %v91_v7  ;;  %v121_v7 = vld [vmem:[#allocation2 + $0x100] sm:$0xff]  ;;  %v526_v8 = vld [vmem:[#allocation5 + $0x928] sm:$0xff] }
  0xcf   :  { %2674 = vmatprep.subr.bf16.mxu0 %v7065_v27  ;;  %3013 = vmatprep.subr.bf16.mxu1 %v7067_v32  ;;  %v7096_v27 = vcombine.low %v489_v2, %v493_v9  ;;  %v509_v32 = vld [vmem:[#allocation5 + $0x8a0] sm:$0xff]  ;;  %v7120_v9 = vcombine.low %v513_v44, %v517_v46 }
  0xd0   :  { %v7113_v48 = vcombine.high %v505_v31, %v509_v32  ;;  %v7112_v56 = vcombine.low %v505_v31, %v509_v32  ;;  %v538_v31 = vld [vmem:[#allocation5 + $0x988] sm:$0xff] }
  0xd1   :  { %2630 = vmatmul.mubr.bf16.gmra.mrb[24].mxu0 %v8851_v34  ;;  %2969 = vmatmul.mubr.bf16.gmra.mrb[24].mxu1 %v8851_v34 }
  0xd2   :  { %2675 = vmatpush1.bf16.msra.mxu0 %v7064_v35  ;;  %3014 = vmatpush1.bf16.msra.mxu1 %v7066_v36  ;;  %v7107_v35 = vcombine.high %v498_v20, %v502_v21  ;;  %v8869_v36 = vpack.c.bf16 %v110_v25, %v104_v22  ;;  %v134_v21 = vld [vmem:[#allocation2 + $0x168] sm:$0xff] }
  0xd3   :  { %2676 = vmatprep.subr.bf16.mxu0 %v7073_v38  ;;  %3015 = vmatprep.subr.bf16.mxu1 %v7075_v40  ;;  %v103_v38 = vld [vmem:[#allocation2 + $0x70] sm:$0xff]  ;;  %v510_v40 = vld [vmem:[#allocation5 + $0x8a8] sm:$0xff] }
  0xd4   :  { %2639 = vmatprep.mubr.bf16.mxu0 %v8853_v41  ;;  %2978 = vmatprep.mubr.bf16.mxu1 %v8853_v41  ;;  %v8875_v55 = vpack.c.bf16 %v109_v39, %v103_v38  ;;  %v7114_v57 = vcombine.low %v506_v33, %v510_v40  ;;  %v133_v38 = vld [vmem:[#allocation2 + $0x160] sm:$0xff]  ;;  %v542_v39 = vld [vmem:[#allocation5 + $0x9a8] sm:$0xff] }
  0xd6   :  { %2677 = vmatpush1.bf16.msra.mxu0 %v7072_v49  ;;  %3016 = vmatpush1.bf16.msra.mxu1 %v7074_v53  ;;  %v514_v49 = vld [vmem:[#allocation5 + $0x8c8] sm:$0xff]  ;;  %v7115_v53 = vcombine.high %v506_v33, %v510_v40  ;;  %v7136_v40 = vcombine.low %v529_v10, %v533_v11 }
  0xd7   :  { %2678 = vmatprep.subr.bf16.mxu0 %v7081_v54  ;;  %3017 = vmatprep.subr.bf16.mxu1 %v7083_v59  ;;  %v122_v54 = vld [vmem:[#allocation2 + $0x108] sm:$0xff]  ;;  %v7121_v59 = vcombine.high %v513_v44, %v517_v46  ;;  %v549_v44 = vld [vmem:[#allocation5 + $0x9e0] sm:$0xff] }
  0xd8   :  { %v8877_v2 = vpack.c.bf16 %v122_v54, %v116_v51  ;;  %v7147_v51 = vcombine.high %v538_v31, %v542_v39 }
  0xd9   :  { %2640 = vmatmul.mubr.bf16.gmra.mrb[28].mxu0 %v8859_v62  ;;  %2979 = vmatmul.mubr.bf16.gmra.mrb[28].mxu1 %v8859_v62 }
  0xda   :  { %2679 = vmatpush1.bf16.msra.mxu0 %v7080_v63  ;;  %3018 = vmatpush1.bf16.msra.mxu1 %v7082_v0  ;;  %v525_v63 = vld [vmem:[#allocation5 + $0x920] sm:$0xff]  ;;  %v522_v0 = vld [vmem:[#allocation5 + $0x908] sm:$0xff] }
  0xdb   :  { %2680 = vmatprep.subr.bf16.mxu0 %v7089_v1  ;;  %3019 = vmatprep.subr.bf16.mxu1 %v7091_v3  ;;  %v7123_v1 = vcombine.high %v514_v49, %v518_v50  ;;  %v115_v3 = vld [vmem:[#allocation2 + $0xd0] sm:$0xff]  ;;  %v7129_v14 = vcombine.high %v521_v61, %v525_v63  ;;  %v7131_v20 = vcombine.high %v522_v0, %v526_v8 }
  0xdc   :  { %2682 = vmatprep.mubr.bf16.mxu0 %v8861_v6  ;;  %3021 = vmatprep.mubr.bf16.mxu1 %v8861_v6  ;;  %v8883_v22 = vpack.c.bf16 %v121_v7, %v115_v3  ;;  %v7130_v25 = vcombine.low %v522_v0, %v526_v8  ;;  %v554_v0 = vld [vmem:[#allocation5 + $0xa08] sm:$0xff]  ;;  %v139_v7 = vld [vmem:[#allocation2 + $0x190] sm:$0xff]  ;;  %v145_v8 = vld [vmem:[#allocation2 + $0x1c0] sm:$0xff] }
  0xde   :  { %2681 = vmatpush1.bf16.msra.mxu0 %v7088_v12  ;;  %3020 = vmatpush1.bf16.msra.mxu1 %v7090_v17  ;;  %v7122_v12 = vcombine.low %v514_v49, %v518_v50  ;;  %v534_v17 = vld [vmem:[#allocation5 + $0x968] sm:$0xff]  ;;  %v140_v50 = vld [vmem:[#allocation2 + $0x198] sm:$0xff] }
  0xdf   :  { %2763 = vmatprep.subr.bf16.mxu0 %v7097_v18  ;;  %3102 = vmatprep.subr.bf16.mxu1 %v7099_v24  ;;  %v128_v18 = vld [vmem:[#allocation2 + $0x138] sm:$0xff]  ;;  %v7128_v24 = vcombine.low %v521_v61, %v525_v63  ;;  %v7139_v32 = vcombine.high %v530_v16, %v534_v17  ;;  %v7138_v46 = vcombine.low %v530_v16, %v534_v17  ;;  %v550_v49 = vld [vmem:[#allocation5 + $0x9e8] sm:$0xff]  ;;  %v553_v61 = vld [vmem:[#allocation5 + $0xa00] sm:$0xff] }
  0xe0   :  { %v8885_v33 = vpack.c.bf16 %v134_v21, %v128_v18  ;;  %v557_v63 = vld [vmem:[#allocation5 + $0xa20] sm:$0xff]  ;;  %v562_v17 = vld [vmem:[#allocation5 + $0xa48] sm:$0xff] }
  0xe1   :  { %2683 = vmatmul.mubr.bf16.vlgmr.msra.gmra.mrb[0].mxu0 %v8867_v26  ;;  %3022 = vmatmul.mubr.bf16.vlgmr.msra.gmra.mrb[0].mxu1 %v8867_v26  ;;  %v7161_v16 = vcombine.high %v553_v61, %v557_v63  ;;  %v566_v18 = vld [vmem:[#allocation5 + $0xa68] sm:$0xff] }
  0xe2   :  { %2764 = vmatpush1.bf16.msra.mxu0 %v7096_v27  ;;  %3103 = vmatpush1.bf16.msra.mxu1 %v7098_v29  ;;  %v7137_v27 = vcombine.high %v529_v10, %v533_v11  ;;  %v537_v29 = vld [vmem:[#allocation5 + $0x980] sm:$0xff] }
  0xe3   :  { %2765 = vmatprep.subr.bf16.mxu0 %v7105_v30  ;;  %3104 = vmatprep.subr.bf16.mxu1 %v7107_v35  ;;  %v541_v30 = vld [vmem:[#allocation5 + $0x9a0] sm:$0xff]  ;;  %v127_v35 = vld [vmem:[#allocation2 + $0x130] sm:$0xff] }
  0xe4   :  { %2692 = vmatprep.mubr.bf16.mxu0 %v8869_v36  ;;  %3031 = vmatprep.mubr.bf16.mxu1 %v8869_v36  ;;  %v8891_v54 = vpack.c.bf16 %v133_v38, %v127_v35  ;;  %v561_v11 = vld [vmem:[#allocation5 + $0xa40] sm:$0xff]  ;;  %v570_v35 = vld [vmem:[#allocation5 + $0xa88] sm:$0xff]  ;;  %v7171_v38 = vcombine.high %v562_v17, %v566_v18 }
  0xe6   :  { %2766 = vmatpush1.bf16.msra.mxu0 %v7104_v42  ;;  %3105 = vmatpush1.bf16.msra.mxu1 %v7106_v47  ;;  %v545_v42 = vld [vmem:[#allocation5 + $0x9c0] sm:$0xff]  ;;  %v7145_v47 = vcombine.high %v537_v29, %v541_v30 }
  0xe7   :  { %2767 = vmatprep.subr.bf16.mxu0 %v7113_v48  ;;  %3106 = vmatprep.subr.bf16.mxu1 %v7115_v53  ;;  %v546_v48 = vld [vmem:[#allocation5 + $0x9c8] sm:$0xff]  ;;  %v7152_v10 = vcombine.low %v545_v42, %v549_v44 }
  0xe8   :  { %v146_v53 = vld [vmem:[#allocation2 + $0x1c8] sm:$0xff] }
  0xe9   :  { %2693 = vmatmul.mubr.bf16.gmra.mrb[4].mxu0 %v8875_v55  ;;  %3032 = vmatmul.mubr.bf16.gmra.mrb[4].mxu1 %v8875_v55  ;;  %v8893_v3 = vpack.c.bf16 %v146_v53, %v140_v50  ;;  %v582_v53 = vld [vmem:[#allocation5 + $0xae8] sm:$0xff] }
  0xea   :  { %2768 = vmatpush1.bf16.msra.mxu0 %v7112_v56  ;;  %3107 = vmatpush1.bf16.msra.mxu1 %v7114_v57  ;;  %v7144_v56 = vcombine.low %v537_v29, %v541_v30  ;;  %v7146_v57 = vcombine.low %v538_v31, %v542_v39  ;;  %v569_v31 = vld [vmem:[#allocation5 + $0xa80] sm:$0xff] }
  0xeb   :  { %2769 = vmatprep.subr.bf16.mxu0 %v7121_v59  ;;  %3108 = vmatprep.subr.bf16.mxu1 %v7123_v1  ;;  %v7153_v59 = vcombine.high %v545_v42, %v549_v44  ;;  %v7155_v1 = vcombine.high %v546_v48, %v550_v49  ;;  %v157_v42 = vld [vmem:[#allocation2 + $0x220] sm:$0xff]  ;;  %v574_v44 = vld [vmem:[#allocation5 + $0xaa8] sm:$0xff] }
  0xec   :  { %2702 = vmatprep.mubr.bf16.mxu0 %v8877_v2  ;;  %3041 = vmatprep.mubr.bf16.mxu1 %v8877_v2 }
  0xee   :  { %2770 = vmatpush1.bf16.msra.mxu0 %v7120_v9  ;;  %3109 = vmatpush1.bf16.msra.mxu1 %v7122_v12  ;;  %v558_v9 = vld [vmem:[#allocation5 + $0xa28] sm:$0xff]  ;;  %v565_v12 = vld [vmem:[#allocation5 + $0xa60] sm:$0xff] }
  0xef   :  { %2771 = vmatprep.subr.bf16.mxu0 %v7129_v14  ;;  %3110 = vmatprep.subr.bf16.mxu1 %v7131_v20  ;;  %v7154_v14 = vcombine.low %v546_v48, %v550_v49  ;;  %v152_v20 = vld [vmem:[#allocation2 + $0x1f8] sm:$0xff]  ;;  %v7163_v21 = vcombine.high %v554_v0, %v558_v9  ;;  %v7162_v29 = vcombine.low %v554_v0, %v558_v9  ;;  %v581_v48 = vld [vmem:[#allocation5 + $0xae0] sm:$0xff]  ;;  %v586_v9 = vld [vmem:[#allocation5 + $0xb08] sm:$0xff] }
  0xf0   :  { %v7169_v30 = vcombine.high %v561_v11, %v565_v12  ;;  %v7170_v49 = vcombine.low %v562_v17, %v566_v18  ;;  %v7178_v0 = vcombine.low %v570_v35, %v574_v44  ;;  %v593_v18 = vld [vmem:[#allocation5 + $0xb40] sm:$0xff] }
  0xf1   :  { %2703 = vmatmul.mubr.bf16.gmra.mrb[8].mxu0 %v8883_v22  ;;  %3042 = vmatmul.mubr.bf16.gmra.mrb[8].mxu1 %v8883_v22 }
  0xf2   :  { %2772 = vmatpush1.bf16.msra.mxu0 %v7128_v24  ;;  %3111 = vmatpush1.bf16.msra.mxu1 %v7130_v25  ;;  %v158_v24 = vld [vmem:[#allocation2 + $0x228] sm:$0xff]  ;;  %v8899_v25 = vpack.c.bf16 %v145_v8, %v139_v7  ;;  %v585_v7 = vld [vmem:[#allocation5 + $0xb00] sm:$0xff] }
  0xf3   :  { %2773 = vmatprep.subr.bf16.mxu0 %v7137_v27  ;;  %3112 = vmatprep.subr.bf16.mxu1 %v7139_v32  ;;  %v7160_v27 = vcombine.low %v553_v61, %v557_v63  ;;  %v573_v32 = vld [vmem:[#allocation5 + $0xaa0] sm:$0xff]  ;;  %v8901_v39 = vpack.c.bf16 %v158_v24, %v152_v20 }
  0xf4   :  { %2712 = vmatprep.mubr.bf16.mxu0 %v8885_v33  ;;  %3051 = vmatprep.mubr.bf16.mxu1 %v8885_v33  ;;  %v7177_v50 = vcombine.high %v569_v31, %v573_v32  ;;  %v7176_v63 = vcombine.low %v569_v31, %v573_v32  ;;  %v589_v8 = vld [vmem:[#allocation5 + $0xb20] sm:$0xff]  ;;  %v182_v32 = vld [vmem:[#allocation2 + $0x2e8] sm:$0xff] }
  0xf5   :  { %v597_v20 = vld [vmem:[#allocation5 + $0xb60] sm:$0xff]  ;;  %v7193_v24 = vcombine.high %v585_v7, %v589_v8 }
  0xf6   :  { %2774 = vmatpush1.bf16.msra.mxu0 %v7136_v40  ;;  %3113 = vmatpush1.bf16.msra.mxu1 %v7138_v46  ;;  %v151_v40 = vld [vmem:[#allocation2 + $0x1f0] sm:$0xff]  ;;  %v7168_v46 = vcombine.low %v561_v11, %v565_v12 }
  0xf7   :  { %2775 = vmatprep.subr.bf16.mxu0 %v7145_v47  ;;  %3114 = vmatprep.subr.bf16.mxu1 %v7147_v51  ;;  %v577_v47 = vld [vmem:[#allocation5 + $0xac0] sm:$0xff]  ;;  %v578_v51 = vld [vmem:[#allocation5 + $0xac8] sm:$0xff]  ;;  %v8907_v61 = vpack.c.bf16 %v157_v42, %v151_v40  ;;  %v163_v12 = vld [vmem:[#allocation2 + $0x250] sm:$0xff]  ;;  %v7201_v42 = vcombine.high %v593_v18, %v597_v20 }
  0xf8   :  { %v7184_v17 = vcombine.low %v577_v47, %v581_v48 }
  0xf9   :  { %2713 = vmatmul.mubr.bf16.gmra.mrb[12].mxu0 %v8891_v54  ;;  %3052 = vmatmul.mubr.bf16.gmra.mrb[12].mxu1 %v8891_v54 }
  0xfa   :  { %2776 = vmatpush1.bf16.msra.mxu0 %v7144_v56  ;;  %3115 = vmatpush1.bf16.msra.mxu1 %v7146_v57  ;;  %v164_v56 = vld [vmem:[#allocation2 + $0x258] sm:$0xff]  ;;  %v7179_v57 = vcombine.high %v570_v35, %v574_v44  ;;  %v601_v44 = vld [vmem:[#allocation5 + $0xb80] sm:$0xff] }
  0xfb   :  { %2777 = vmatprep.subr.bf16.mxu0 %v7153_v59  ;;  %3116 = vmatprep.subr.bf16.mxu1 %v7155_v1  ;;  %v170_v59 = vld [vmem:[#allocation2 + $0x288] sm:$0xff]  ;;  %v7185_v1 = vcombine.high %v577_v47, %v581_v48 }
  0xfc   :  { %2722 = vmatprep.mubr.bf16.mxu0 %v8893_v3  ;;  %3061 = vmatprep.mubr.bf16.mxu1 %v8893_v3  ;;  %v8909_v11 = vpack.c.bf16 %v170_v59, %v164_v56  ;;  %v602_v47 = vld [vmem:[#allocation5 + $0xb88] sm:$0xff]  ;;  %v7200_v56 = vcombine.low %v593_v18, %v597_v20  ;;  %v613_v59 = vld [vmem:[#allocation5 + $0xbe0] sm:$0xff]  ;;  %v235_v18 = vld [vmem:[#allocation5 + $0x10] sm:$0xff] }
  0xfd   :  { %v239_v20 = vld [vmem:[#allocation5 + $0x30] sm:$0xff] }
  0xfe   :  { %2778 = vmatpush1.bf16.msra.mxu0 %v7152_v10  ;;  %3117 = vmatpush1.bf16.msra.mxu1 %v7154_v14  ;;  %v7187_v10 = vcombine.high %v578_v51, %v582_v53  ;;  %v169_v14 = vld [vmem:[#allocation2 + $0x280] sm:$0xff] }
  0xff   :  { %2779 = vmatprep.subr.bf16.mxu0 %v7161_v16  ;;  %3118 = vmatprep.subr.bf16.mxu1 %v7163_v21  ;;  %v590_v16 = vld [vmem:[#allocation5 + $0xb28] sm:$0xff]  ;;  %v7186_v21 = vcombine.low %v578_v51, %v582_v53  ;;  %v8915_v35 = vpack.c.bf16 %v169_v14, %v163_v12  ;;  %v181_v51 = vld [vmem:[#allocation2 + $0x2e0] sm:$0xff] }
 0x100   :  { %v7195_v31 = vcombine.high %v586_v9, %v590_v16  ;;  %v7194_v40 = vcombine.low %v586_v9, %v590_v16  ;;  %v606_v53 = vld [vmem:[#allocation5 + $0xba8] sm:$0xff] }
 0x101   :  { %2723 = vmatmul.mubr.bf16.gmra.mrb[16].mxu0 %v8899_v25  ;;  %3062 = vmatmul.mubr.bf16.gmra.mrb[16].mxu1 %v8899_v25  ;;  %v7211_v9 = vcombine.high %v602_v47, %v606_v53  ;;  %v7210_v16 = vcombine.low %v602_v47, %v606_v53  ;;  %v248_v47 = vld [vmem:[#allocation5 + $0x78] sm:$0xff] }
 0x102   :  { %2780 = vmatpush1.bf16.msra.mxu0 %v7160_v27  ;;  %3119 = vmatpush1.bf16.msra.mxu1 %v7162_v29  ;;  %v594_v27 = vld [vmem:[#allocation5 + $0xb48] sm:$0xff] }
 0x103   :  { %2781 = vmatprep.subr.bf16.mxu0 %v7169_v30  ;;  %3120 = vmatprep.subr.bf16.mxu1 %v7171_v38  ;;  %v598_v29 = vld [vmem:[#allocation5 + $0xb68] sm:$0xff]  ;;  %v176_v30 = vld [vmem:[#allocation2 + $0x2b8] sm:$0xff]  ;;  %v7192_v38 = vcombine.low %v585_v7, %v589_v8 }
 0x104   :  { %2732 = vmatprep.mubr.bf16.mxu0 %v8901_v39  ;;  %3071 = vmatprep.mubr.bf16.mxu1 %v8901_v39  ;;  %v7203_v48 = vcombine.high %v594_v27, %v598_v29  ;;  %v614_v7 = vld [vmem:[#allocation5 + $0xbe8] sm:$0xff] }
 0x105   :  { %v94_v8 = vld [vmem:[#allocation2 + $0x28] sm:$0xff] }
 0x106   :  { %2782 = vmatpush1.bf16.msra.mxu0 %v7168_v46  ;;  %3121 = vmatpush1.bf16.msra.mxu1 %v7170_v49  ;;  %v605_v46 = vld [vmem:[#allocation5 + $0xba0] sm:$0xff]  ;;  %v8917_v49 = vpack.c.bf16 %v182_v32, %v176_v30  ;;  %v99_v30 = vld [vmem:[#allocation2 + $0x50] sm:$0xff] }
 0x107   :  { %2783 = vmatprep.subr.bf16.mxu0 %v7177_v50  ;;  %3122 = vmatprep.subr.bf16.mxu1 %v7179_v57  ;;  %v175_v50 = vld [vmem:[#allocation2 + $0x2b0] sm:$0xff]  ;;  %v609_v57 = vld [vmem:[#allocation5 + $0xbc0] sm:$0xff]  ;;  %v7208_v14 = vcombine.low %v601_v44, %v605_v46 }
 0x108   :  { %v8923_v12 = vpack.c.bf16 %v181_v51, %v175_v50  ;;  %v7216_v32 = vcombine.low %v609_v57, %v613_v59  ;;  %v112_v51 = vld [vmem:[#allocation2 + $0xb8] sm:$0xff] }
 0x109   :  { %2733 = vmatmul.mubr.bf16.gmra.mrb[20].mxu0 %v8907_v61  ;;  %3072 = vmatmul.mubr.bf16.gmra.mrb[20].mxu1 %v8907_v61 }
 0x10a   :  { %2784 = vmatpush1.bf16.msra.mxu0 %v7176_v63  ;;  %3123 = vmatpush1.bf16.msra.mxu1 %v7178_v0  ;;  %v7202_v63 = vcombine.low %v594_v27, %v598_v29  ;;  %v7209_v0 = vcombine.high %v601_v44, %v605_v46  ;;  %v93_v29 = vld [vmem:[#allocation2 + $0x20] sm:$0xff]  ;;  %v6845_v44 = vcombine.high %v235_v18, %v239_v20  ;;  %v244_v46 = vld [vmem:[#allocation5 + $0x58] sm:$0xff] }
 0x10b   :  { %2785 = vmatprep.subr.bf16.mxu0 %v7185_v1  ;;  %3124 = vmatprep.subr.bf16.mxu1 %v7187_v10  ;;  %v610_v1 = vld [vmem:[#allocation5 + $0xbc8] sm:$0xff]  ;;  %v100_v10 = vld [vmem:[#allocation2 + $0x58] sm:$0xff]  ;;  %v8931_v53 = vpack.c.bf16 %v99_v30, %v93_v29 }
 0x10c   :  { %2742 = vmatprep.mubr.bf16.mxu0 %v8909_v11  ;;  %3081 = vmatprep.mubr.bf16.mxu1 %v8909_v11  ;;  %v8925_v27 = vpack.c.bf16 %v100_v10, %v94_v8  ;;  %v111_v10 = vld [vmem:[#allocation2 + $0xb0] sm:$0xff]  ;;  %v264_v29 = vld [vmem:[#allocation5 + $0xf8] sm:$0xff]  ;;  %v118_v30 = vld [vmem:[#allocation2 + $0xe8] sm:$0xff] }
 0x10e   :  { %2786 = vmatpush1.bf16.msra.mxu0 %v7184_v17  ;;  %3125 = vmatpush1.bf16.msra.mxu1 %v7186_v21  ;;  %v7217_v17 = vcombine.high %v609_v57, %v613_v59  ;;  %v236_v21 = vld [vmem:[#allocation5 + $0x18] sm:$0xff] }
 0x10f   :  { %2787 = vmatprep.subr.bf16.mxu0 %v7193_v24  ;;  %3126 = vmatprep.subr.bf16.mxu1 %v7195_v31  ;;  %v7219_v24 = vcombine.high %v610_v1, %v614_v7  ;;  %v240_v31 = vld [vmem:[#allocation5 + $0x38] sm:$0xff] }
 0x110   :  { %v6847_v50 = vcombine.high %v236_v21, %v240_v31  ;;  %v6846_v57 = vcombine.low %v236_v21, %v240_v31 }
 0x111   :  { %2743 = vmatmul.mubr.bf16.gmra.mrb[24].mxu0 %v8915_v35  ;;  %3082 = vmatmul.mubr.bf16.gmra.mrb[24].mxu1 %v8915_v35 }
 0x112   :  { %2788 = vmatpush1.bf16.msra.mxu0 %v7192_v38  ;;  %3127 = vmatpush1.bf16.msra.mxu1 %v7194_v40  ;;  %v243_v38 = vld [vmem:[#allocation5 + $0x50] sm:$0xff] }
 0x113   :  { %2789 = vmatprep.subr.bf16.mxu0 %v7201_v42  ;;  %3128 = vmatprep.subr.bf16.mxu1 %v7203_v48  ;;  %v247_v40 = vld [vmem:[#allocation5 + $0x70] sm:$0xff]  ;;  %v7218_v42 = vcombine.low %v610_v1, %v614_v7  ;;  %v106_v48 = vld [vmem:[#allocation2 + $0x88] sm:$0xff]  ;;  %v252_v1 = vld [vmem:[#allocation5 + $0x98] sm:$0xff]  ;;  %v6855_v7 = vcombine.high %v244_v46, %v248_v47 }
 0x114   :  { %2752 = vmatprep.mubr.bf16.mxu0 %v8917_v49  ;;  %3091 = vmatprep.mubr.bf16.mxu1 %v8917_v49  ;;  %v6853_v59 = vcombine.high %v243_v38, %v247_v40  ;;  %v8933_v8 = vpack.c.bf16 %v112_v51, %v106_v48  ;;  %v268_v48 = vld [vmem:[#allocation5 + $0x118] sm:$0xff] }
 0x116   :  { %2790 = vmatpush1.bf16.msra.mxu0 %v7200_v56  ;;  %3129 = vmatpush1.bf16.msra.mxu1 %v7202_v63  ;;  %v6844_v56 = vcombine.low %v235_v18, %v239_v20  ;;  %v251_v63 = vld [vmem:[#allocation5 + $0x90] sm:$0xff]  ;;  %v6854_v20 = vcombine.low %v244_v46, %v248_v47 }
 0x117   :  { %2791 = vmatprep.subr.bf16.mxu0 %v7209_v0  ;;  %3130 = vmatprep.subr.bf16.mxu1 %v7211_v9  ;;  %v255_v0 = vld [vmem:[#allocation5 + $0xb0] sm:$0xff]  ;;  %v105_v9 = vld [vmem:[#allocation2 + $0x80] sm:$0xff] }
 0x118   :  { %v263_v18 = vld [vmem:[#allocation5 + $0xf0] sm:$0xff]  ;;  %v6861_v21 = vcombine.high %v251_v63, %v255_v0 }
 0x119   :  { %2753 = vmatmul.mubr.bf16.gmra.mrb[28].mxu0 %v8923_v12  ;;  %3092 = vmatmul.mubr.bf16.gmra.mrb[28].mxu1 %v8923_v12  ;;  %v267_v46 = vld [vmem:[#allocation5 + $0x110] sm:$0xff] }
 0x11a   :  { %2792 = vmatpush1.bf16.msra.mxu0 %v7208_v14  ;;  %3131 = vmatpush1.bf16.msra.mxu1 %v7210_v16  ;;  %v256_v14 = vld [vmem:[#allocation5 + $0xb8] sm:$0xff]  ;;  %v6852_v16 = vcombine.low %v243_v38, %v247_v40  ;;  %v6860_v38 = vcombine.low %v251_v63, %v255_v0  ;;  %v271_v47 = vld [vmem:[#allocation5 + $0x130] sm:$0xff] }
 0x11b   :  { %2793 = vmatprep.subr.bf16.mxu0 %v7217_v17  ;;  %3132 = vmatprep.subr.bf16.mxu1 %v7219_v24  ;;  %v259_v17 = vld [vmem:[#allocation5 + $0xd0] sm:$0xff]  ;;  %v260_v24 = vld [vmem:[#allocation5 + $0xd8] sm:$0xff]  ;;  %v6863_v31 = vcombine.high %v252_v1, %v256_v14  ;;  %v6862_v40 = vcombine.low %v252_v1, %v256_v14 }
 0x11c   :  { %2795 = vmatprep.mubr.bf16.mxu0 %v8925_v27  ;;  %3134 = vmatprep.mubr.bf16.mxu1 %v8925_v27  ;;  %v6868_v63 = vcombine.low %v259_v17, %v263_v18  ;;  %v275_v0 = vld [vmem:[#allocation5 + $0x150] sm:$0xff]  ;;  %v6870_v1 = vcombine.low %v260_v24, %v264_v29  ;;  %v280_v14 = vld [vmem:[#allocation5 + $0x178] sm:$0xff] }
 0x11e   :  { %2794 = vmatpush1.bf16.msra.mxu0 %v7216_v32  ;;  %3133 = vmatpush1.bf16.msra.mxu1 %v7218_v42  ;;  %v124_v32 = vld [vmem:[#allocation2 + $0x118] sm:$0xff]  ;;  %v8939_v42 = vpack.c.bf16 %v111_v10, %v105_v9  ;;  %v6877_v9 = vcombine.high %v267_v46, %v271_v47 }
 0x11f   :  { %3215 = vmatprep.subr.bf16.mxu0 %v6845_v44  ;;  %3554 = vmatprep.subr.bf16.mxu1 %v6847_v50  ;;  %v6869_v44 = vcombine.high %v259_v17, %v263_v18  ;;  %v6871_v50 = vcombine.high %v260_v24, %v264_v29  ;;  %v8941_v51 = vpack.c.bf16 %v124_v32, %v118_v30  ;;  %v276_v10 = vld [vmem:[#allocation5 + $0x158] sm:$0xff]  ;;  %v283_v24 = vld [vmem:[#allocation5 + $0x190] sm:$0xff] }
 0x120   :  { %9899 = vst [vmem:[#allocation16_spill] sm:$0xff] %v8939_v42  ;;  %v6876_v17 = vcombine.low %v267_v46, %v271_v47  ;;  %v287_v29 = vld [vmem:[#allocation5 + $0x1b0] sm:$0xff]  ;;  %v284_v32 = vld [vmem:[#allocation5 + $0x198] sm:$0xff] }
 0x121   :  { %2796 = vmatmul.mubr.bf16.vlgmr.msra.gmra.mrb[0].mxu0 %v8931_v53  ;;  %3135 = vmatmul.mubr.bf16.vlgmr.msra.gmra.mrb[0].mxu1 %v8931_v53  ;;  %9900 = vst [vmem:[#allocation17_spill] sm:$0xff] %v8941_v51  ;;  %v291_v47 = vld [vmem:[#allocation5 + $0x1d0] sm:$0xff] }
 0x122   :  { %3216 = vmatpush1.bf16.msra.mxu0 %v6844_v56  ;;  %3555 = vmatpush1.bf16.msra.mxu1 %v6846_v57  ;;  %v117_v56 = vld [vmem:[#allocation2 + $0xe0] sm:$0xff]  ;;  %v123_v57 = vld [vmem:[#allocation2 + $0x110] sm:$0xff] }
 0x123   :  { %3217 = vmatprep.subr.bf16.mxu0 %v6853_v59  ;;  %3556 = vmatprep.subr.bf16.mxu1 %v6855_v7  ;;  %v272_v59 = vld [vmem:[#allocation5 + $0x138] sm:$0xff]  ;;  %v279_v7 = vld [vmem:[#allocation5 + $0x170] sm:$0xff]  ;;  %v8947_v30 = vpack.c.bf16 %v123_v57, %v117_v56  ;;  %v6893_v57 = vcombine.high %v283_v24, %v287_v29 }
 0x124   :  { %2805 = vmatprep.mubr.bf16.mxu0 %v8933_v8  ;;  %3144 = vmatprep.mubr.bf16.mxu1 %v8933_v8  ;;  %v6878_v18 = vcombine.low %v268_v48, %v272_v59  ;;  %v6884_v46 = vcombine.low %v275_v0, %v279_v7  ;;  %v295_v56 = vld [vmem:[#allocation5 + $0x1f0] sm:$0xff] }
 0x125   :  { %9901 = vst [vmem:[#allocation18_spill] sm:$0xff] %v8947_v30 }
 0x126   :  { %3218 = vmatpush1.bf16.msra.mxu0 %v6852_v16  ;;  %3557 = vmatpush1.bf16.msra.mxu1 %v6854_v20  ;;  %v130_v16 = vld [vmem:[#allocation2 + $0x148] sm:$0xff]  ;;  %v6879_v20 = vcombine.high %v268_v48, %v272_v59  ;;  %v6886_v48 = vcombine.low %v276_v10, %v280_v14  ;;  %v292_v59 = vld [vmem:[#allocation5 + $0x1d8] sm:$0xff] }
 0x127   :  { %3219 = vmatprep.subr.bf16.mxu0 %v6861_v21  ;;  %3558 = vmatprep.subr.bf16.mxu1 %v6863_v31  ;;  %v136_v21 = vld [vmem:[#allocation2 + $0x178] sm:$0xff]  ;;  %v6885_v31 = vcombine.high %v275_v0, %v279_v7  ;;  %v6892_v0 = vcombine.low %v283_v24, %v287_v29  ;;  %v6900_v24 = vcombine.low %v291_v47, %v295_v56  ;;  %v307_v29 = vld [vmem:[#allocation5 + $0x250] sm:$0xff] }
 0x129   :  { %2806 = vmatmul.mubr.bf16.gmra.mrb[4].mxu0 %v8939_v42  ;;  %3145 = vmatmul.mubr.bf16.gmra.mrb[4].mxu1 %v8939_v42  ;;  %v288_v42 = vld [vmem:[#allocation5 + $0x1b8] sm:$0xff] }
 0x12a   :  { %3220 = vmatpush1.bf16.msra.mxu0 %v6860_v38  ;;  %3559 = vmatpush1.bf16.msra.mxu1 %v6862_v40  ;;  %v6887_v38 = vcombine.high %v276_v10, %v280_v14  ;;  %v8949_v40 = vpack.c.bf16 %v136_v21, %v130_v16  ;;  %v148_v16 = vld [vmem:[#allocation2 + $0x1d8] sm:$0xff]  ;;  %v6894_v7 = vcombine.low %v284_v32, %v288_v42  ;;  %v299_v10 = vld [vmem:[#allocation5 + $0x210] sm:$0xff] }
 0x12b   :  { %3221 = vmatprep.subr.bf16.mxu0 %v6869_v44  ;;  %3560 = vmatprep.subr.bf16.mxu1 %v6871_v50  ;;  %v129_v44 = vld [vmem:[#allocation2 + $0x140] sm:$0xff]  ;;  %v135_v50 = vld [vmem:[#allocation2 + $0x170] sm:$0xff]  ;;  %v6901_v21 = vcombine.high %v291_v47, %v295_v56 }
 0x12c   :  { %2815 = vmatprep.mubr.bf16.mxu0 %v8941_v51  ;;  %3154 = vmatprep.mubr.bf16.mxu1 %v8941_v51  ;;  %9902 = vst [vmem:[#allocation19_spill] sm:$0xff] %v8949_v40  ;;  %v303_v14 = vld [vmem:[#allocation5 + $0x230] sm:$0xff]  ;;  %v304_v51 = vld [vmem:[#allocation5 + $0x238] sm:$0xff] }
 0x12d   :  { %v6908_v47 = vcombine.low %v299_v10, %v303_v14 }
 0x12e   :  { %3222 = vmatpush1.bf16.msra.mxu0 %v6868_v63  ;;  %3561 = vmatpush1.bf16.msra.mxu1 %v6870_v1  ;;  %v296_v63 = vld [vmem:[#allocation5 + $0x1f8] sm:$0xff]  ;;  %v142_v1 = vld [vmem:[#allocation2 + $0x1a8] sm:$0xff] }
 0x12f   :  { %3223 = vmatprep.subr.bf16.mxu0 %v6877_v9  ;;  %3562 = vmatprep.subr.bf16.mxu1 %v6879_v20  ;;  %v6895_v9 = vcombine.high %v284_v32, %v288_v42  ;;  %v8955_v20 = vpack.c.bf16 %v135_v50, %v129_v44  ;;  %v311_v44 = vld [vmem:[#allocation5 + $0x270] sm:$0xff]  ;;  %v6902_v42 = vcombine.low %v292_v59, %v296_v63  ;;  %v308_v50 = vld [vmem:[#allocation5 + $0x258] sm:$0xff] }
 0x130   :  { %v6909_v32 = vcombine.high %v299_v10, %v303_v14  ;;  %v323_v10 = vld [vmem:[#allocation5 + $0x2d0] sm:$0xff] }
 0x131   :  { %2816 = vmatmul.mubr.bf16.gmra.mrb[8].mxu0 %v8947_v30  ;;  %3155 = vmatmul.mubr.bf16.gmra.mrb[8].mxu1 %v8947_v30  ;;  %9903 = vst [vmem:[#allocation20_spill] sm:$0xff] %v8955_v20  ;;  %v147_v30 = vld [vmem:[#allocation2 + $0x1d0] sm:$0xff] }
 0x132   :  { %3224 = vmatpush1.bf16.msra.mxu0 %v6876_v17  ;;  %3563 = vmatpush1.bf16.msra.mxu1 %v6878_v18  ;;  %v300_v17 = vld [vmem:[#allocation5 + $0x218] sm:$0xff]  ;;  %v6903_v18 = vcombine.high %v292_v59, %v296_v63  ;;  %v315_v59 = vld [vmem:[#allocation5 + $0x290] sm:$0xff] }
 0x133   :  { %3225 = vmatprep.subr.bf16.mxu0 %v6885_v31  ;;  %3564 = vmatprep.subr.bf16.mxu1 %v6887_v38  ;;  %v8957_v31 = vpack.c.bf16 %v148_v16, %v142_v1  ;;  %v141_v38 = vld [vmem:[#allocation2 + $0x1a0] sm:$0xff]  ;;  %v160_v1 = vld [vmem:[#allocation2 + $0x238] sm:$0xff]  ;;  %v6910_v56 = vcombine.low %v300_v17, %v304_v51  ;;  %v6917_v16 = vcombine.high %v307_v29, %v311_v44  ;;  %v319_v63 = vld [vmem:[#allocation5 + $0x2b0] sm:$0xff] }
 0x134   :  { %2825 = vmatprep.mubr.bf16.mxu0 %v8949_v40  ;;  %3164 = vmatprep.mubr.bf16.mxu1 %v8949_v40  ;;  %v320_v40 = vld [vmem:[#allocation5 + $0x2b8] sm:$0xff]  ;;  %v327_v14 = vld [vmem:[#allocation5 + $0x2f0] sm:$0xff] }
 0x135   :  { %9904 = vst [vmem:[#allocation21_spill] sm:$0xff] %v8957_v31 }
 0x136   :  { %3226 = vmatpush1.bf16.msra.mxu0 %v6884_v46  ;;  %3565 = vmatpush1.bf16.msra.mxu1 %v6886_v48  ;;  %v312_v46 = vld [vmem:[#allocation5 + $0x278] sm:$0xff]  ;;  %v154_v48 = vld [vmem:[#allocation2 + $0x208] sm:$0xff] }
 0x137   :  { %3227 = vmatprep.subr.bf16.mxu0 %v6893_v57  ;;  %3566 = vmatprep.subr.bf16.mxu1 %v6895_v9  ;;  %v6911_v57 = vcombine.high %v300_v17, %v304_v51  ;;  %v8963_v9 = vpack.c.bf16 %v147_v30, %v141_v38  ;;  %v6916_v30 = vcombine.low %v307_v29, %v311_v44  ;;  %v324_v38 = vld [vmem:[#allocation5 + $0x2d8] sm:$0xff] }
 0x138   :  { %v6918_v51 = vcombine.low %v308_v50, %v312_v46  ;;  %v6925_v17 = vcombine.high %v315_v59, %v319_v63  ;;  %v6924_v29 = vcombine.low %v315_v59, %v319_v63  ;;  %v339_v59 = vld [vmem:[#allocation5 + $0x350] sm:$0xff] }
 0x139   :  { %2826 = vmatmul.mubr.bf16.gmra.mrb[12].mxu0 %v8955_v20  ;;  %3165 = vmatmul.mubr.bf16.gmra.mrb[12].mxu1 %v8955_v20  ;;  %9905 = vst [vmem:[#allocation22_spill] sm:$0xff] %v8963_v9  ;;  %v159_v20 = vld [vmem:[#allocation2 + $0x230] sm:$0xff] }
 0x13a   :  { %3228 = vmatpush1.bf16.msra.mxu0 %v6892_v0  ;;  %3567 = vmatpush1.bf16.msra.mxu1 %v6894_v7  ;;  %v316_v0 = vld [vmem:[#allocation5 + $0x298] sm:$0xff]  ;;  %v6919_v7 = vcombine.high %v308_v50, %v312_v46  ;;  %v331_v50 = vld [vmem:[#allocation5 + $0x310] sm:$0xff] }
 0x13b   :  { %3229 = vmatprep.subr.bf16.mxu0 %v6901_v21  ;;  %3568 = vmatprep.subr.bf16.mxu1 %v6903_v18  ;;  %v8965_v21 = vpack.c.bf16 %v160_v1, %v154_v48  ;;  %v153_v18 = vld [vmem:[#allocation2 + $0x200] sm:$0xff]  ;;  %v172_v48 = vld [vmem:[#allocation2 + $0x298] sm:$0xff]  ;;  %v6926_v44 = vcombine.low %v316_v0, %v320_v40  ;;  %v6933_v1 = vcombine.high %v323_v10, %v327_v14  ;;  %v335_v46 = vld [vmem:[#allocation5 + $0x330] sm:$0xff] }
 0x13c   :  { %2835 = vmatprep.mubr.bf16.mxu0 %v8957_v31  ;;  %3174 = vmatprep.mubr.bf16.mxu1 %v8957_v31  ;;  %v336_v31 = vld [vmem:[#allocation5 + $0x338] sm:$0xff]  ;;  %v343_v63 = vld [vmem:[#allocation5 + $0x370] sm:$0xff] }
 0x13d   :  { %9906 = vst [vmem:[#allocation23_spill] sm:$0xff] %v8965_v21 }
 0x13e   :  { %3230 = vmatpush1.bf16.msra.mxu0 %v6900_v24  ;;  %3569 = vmatpush1.bf16.msra.mxu1 %v6902_v42  ;;  %v328_v24 = vld [vmem:[#allocation5 + $0x2f8] sm:$0xff]  ;;  %v166_v42 = vld [vmem:[#allocation2 + $0x268] sm:$0xff] }
 0x13f   :  { %3231 = vmatprep.subr.bf16.mxu0 %v6909_v32  ;;  %3570 = vmatprep.subr.bf16.mxu1 %v6911_v57  ;;  %v6927_v32 = vcombine.high %v316_v0, %v320_v40  ;;  %v8971_v57 = vpack.c.bf16 %v159_v20, %v153_v18  ;;  %v6932_v20 = vcombine.low %v323_v10, %v327_v14  ;;  %v340_v18 = vld [vmem:[#allocation5 + $0x358] sm:$0xff] }
 0x140   :  { %v6934_v40 = vcombine.low %v324_v38, %v328_v24  ;;  %v6941_v0 = vcombine.high %v331_v50, %v335_v46  ;;  %v6940_v10 = vcombine.low %v331_v50, %v335_v46  ;;  %v355_v46 = vld [vmem:[#allocation5 + $0x3d0] sm:$0xff] }
 0x141   :  { %2836 = vmatmul.mubr.bf16.gmra.mrb[16].mxu0 %v8963_v9  ;;  %3175 = vmatmul.mubr.bf16.gmra.mrb[16].mxu1 %v8963_v9  ;;  %9907 = vst [vmem:[#allocation24_spill] sm:$0xff] %v8971_v57  ;;  %v171_v9 = vld [vmem:[#allocation2 + $0x290] sm:$0xff] }
 0x142   :  { %3232 = vmatpush1.bf16.msra.mxu0 %v6908_v47  ;;  %3571 = vmatpush1.bf16.msra.mxu1 %v6910_v56  ;;  %v332_v47 = vld [vmem:[#allocation5 + $0x318] sm:$0xff]  ;;  %v6935_v56 = vcombine.high %v324_v38, %v328_v24  ;;  %v347_v38 = vld [vmem:[#allocation5 + $0x390] sm:$0xff] }
 0x143   :  { %3233 = vmatprep.subr.bf16.mxu0 %v6917_v16  ;;  %3572 = vmatprep.subr.bf16.mxu1 %v6919_v7  ;;  %v8973_v16 = vpack.c.bf16 %v172_v48, %v166_v42  ;;  %v165_v7 = vld [vmem:[#allocation2 + $0x260] sm:$0xff]  ;;  %v184_v42 = vld [vmem:[#allocation2 + $0x2f8] sm:$0xff]  ;;  %v6942_v14 = vcombine.low %v332_v47, %v336_v31  ;;  %v6949_v48 = vcombine.high %v339_v59, %v343_v63  ;;  %v351_v24 = vld [vmem:[#allocation5 + $0x3b0] sm:$0xff] }
 0x144   :  { %2845 = vmatprep.mubr.bf16.mxu0 %v8965_v21  ;;  %3184 = vmatprep.mubr.bf16.mxu1 %v8965_v21  ;;  %v352_v21 = vld [vmem:[#allocation5 + $0x3b8] sm:$0xff]  ;;  %v6957_v50 = vcombine.high %v347_v38, %v351_v24 }
 0x146   :  { %3234 = vmatpush1.bf16.msra.mxu0 %v6916_v30  ;;  %3573 = vmatpush1.bf16.msra.mxu1 %v6918_v51  ;;  %v344_v30 = vld [vmem:[#allocation5 + $0x378] sm:$0xff]  ;;  %v178_v51 = vld [vmem:[#allocation2 + $0x2c8] sm:$0xff] }
 0x147   :  { %3235 = vmatprep.subr.bf16.mxu0 %v6925_v17  ;;  %3574 = vmatprep.subr.bf16.mxu1 %v6927_v32  ;;  %v6943_v17 = vcombine.high %v332_v47, %v336_v31  ;;  %v8979_v32 = vpack.c.bf16 %v171_v9, %v165_v7  ;;  %v6948_v9 = vcombine.low %v339_v59, %v343_v63  ;;  %v359_v47 = vld [vmem:[#allocation5 + $0x3f0] sm:$0xff]  ;;  %v356_v7 = vld [vmem:[#allocation5 + $0x3d8] sm:$0xff] }
 0x148   :  { %v6950_v31 = vcombine.low %v340_v18, %v344_v30  ;;  %v6965_v63 = vcombine.high %v355_v46, %v359_v47 }
 0x149   :  { %2846 = vmatmul.mubr.bf16.gmra.mrb[20].mxu0 %v8971_v57  ;;  %3185 = vmatmul.mubr.bf16.gmra.mrb[20].mxu1 %v8971_v57  ;;  %v183_v57 = vld [vmem:[#allocation2 + $0x2f0] sm:$0xff] }
 0x14a   :  { %3236 = vmatpush1.bf16.msra.mxu0 %v6924_v29  ;;  %3575 = vmatpush1.bf16.msra.mxu1 %v6926_v44  ;;  %v348_v29 = vld [vmem:[#allocation5 + $0x398] sm:$0xff]  ;;  %v6951_v44 = vcombine.high %v340_v18, %v344_v30  ;;  %v363_v18 = vld [vmem:[#allocation5 + $0x410] sm:$0xff] }
 0x14b   :  { %3237 = vmatprep.subr.bf16.mxu0 %v6933_v1  ;;  %3576 = vmatprep.subr.bf16.mxu1 %v6935_v56  ;;  %v8981_v1 = vpack.c.bf16 %v184_v42, %v178_v51  ;;  %v177_v56 = vld [vmem:[#allocation2 + $0x2c0] sm:$0xff]  ;;  %v6956_v51 = vcombine.low %v347_v38, %v351_v24  ;;  %v6958_v59 = vcombine.low %v348_v29, %v352_v21  ;;  %v367_v30 = vld [vmem:[#allocation5 + $0x430] sm:$0xff] }
 0x14c   :  { %2855 = vmatprep.mubr.bf16.mxu0 %v8973_v16  ;;  %3194 = vmatprep.mubr.bf16.mxu1 %v8973_v16  ;;  %v371_v38 = vld [vmem:[#allocation5 + $0x450] sm:$0xff] }
 0x14d   :  { %v375_v24 = vld [vmem:[#allocation5 + $0x470] sm:$0xff] }
 0x14e   :  { %3238 = vmatpush1.bf16.msra.mxu0 %v6932_v20  ;;  %3577 = vmatpush1.bf16.msra.mxu1 %v6934_v40  ;;  %v6959_v20 = vcombine.high %v348_v29, %v352_v21  ;;  %v360_v40 = vld [vmem:[#allocation5 + $0x3f8] sm:$0xff] }
 0x14f   :  { %3239 = vmatprep.subr.bf16.mxu0 %v6941_v0  ;;  %3578 = vmatprep.subr.bf16.mxu1 %v6943_v17  ;;  %v8987_v0 = vpack.c.bf16 %v183_v57, %v177_v56  ;;  %v364_v17 = vld [vmem:[#allocation5 + $0x418] sm:$0xff]  ;;  %v6967_v42 = vcombine.high %v356_v7, %v360_v40  ;;  %v6966_v57 = vcombine.low %v356_v7, %v360_v40 }
 0x150   :  { %v372_v21 = vld [vmem:[#allocation5 + $0x458] sm:$0xff]  ;;  %v6972_v56 = vcombine.low %v363_v18, %v367_v30  ;;  %v6980_v40 = vcombine.low %v371_v38, %v375_v24 }
 0x151   :  { %2856 = vmatmul.mubr.bf16.gmra.mrb[24].mxu0 %v8979_v32  ;;  %3195 = vmatmul.mubr.bf16.gmra.mrb[24].mxu1 %v8979_v32  ;;  %v380_v7 = vld [vmem:[#allocation5 + $0x498] sm:$0xff] }
 0x152   :  { %3240 = vmatpush1.bf16.msra.mxu0 %v6940_v10  ;;  %3579 = vmatpush1.bf16.msra.mxu1 %v6942_v14  ;;  %v368_v10 = vld [vmem:[#allocation5 + $0x438] sm:$0xff]  ;;  %v6964_v14 = vcombine.low %v355_v46, %v359_v47  ;;  %v379_v46 = vld [vmem:[#allocation5 + $0x490] sm:$0xff] }
 0x153   :  { %3241 = vmatprep.subr.bf16.mxu0 %v6949_v48  ;;  %3580 = vmatprep.subr.bf16.mxu1 %v6951_v44  ;;  %v6973_v48 = vcombine.high %v363_v18, %v367_v30  ;;  %v6975_v29 = vcombine.high %v364_v17, %v368_v10  ;;  %v376_v44 = vld [vmem:[#allocation5 + $0x478] sm:$0xff]  ;;  %v383_v47 = vld [vmem:[#allocation5 + $0x4b0] sm:$0xff] }
 0x154   :  { %2865 = vmatprep.mubr.bf16.mxu0 %v8981_v1  ;;  %3204 = vmatprep.mubr.bf16.mxu1 %v8981_v1  ;;  %v391_v18 = vld [vmem:[#allocation5 + $0x4f0] sm:$0xff]  ;;  %v388_v30 = vld [vmem:[#allocation5 + $0x4d8] sm:$0xff] }
 0x156   :  { %3242 = vmatpush1.bf16.msra.mxu0 %v6948_v9  ;;  %3581 = vmatpush1.bf16.msra.mxu1 %v6950_v31  ;;  %v6974_v9 = vcombine.low %v364_v17, %v368_v10  ;;  %v6981_v31 = vcombine.high %v371_v38, %v375_v24  ;;  %v392_v17 = vld [vmem:[#allocation5 + $0x4f8] sm:$0xff] }
 0x157   :  { %3243 = vmatprep.subr.bf16.mxu0 %v6957_v50  ;;  %3582 = vmatprep.subr.bf16.mxu1 %v6959_v20  ;;  %v6983_v50 = vcombine.high %v372_v21, %v376_v44  ;;  %v384_v20 = vld [vmem:[#allocation5 + $0x4b8] sm:$0xff] }
 0x158   :  { %v396_v38 = vld [vmem:[#allocation5 + $0x518] sm:$0xff] }
 0x159   :  { %2866 = vmatmul.mubr.bf16.gmra.mrb[28].mxu0 %v8987_v0  ;;  %3205 = vmatmul.mubr.bf16.gmra.mrb[28].mxu1 %v8987_v0  ;;  %v400_v24 = vld [vmem:[#allocation5 + $0x538] sm:$0xff] }
 0x15a   :  { %3244 = vmatpush1.bf16.msra.mxu0 %v6956_v51  ;;  %3583 = vmatpush1.bf16.msra.mxu1 %v6958_v59  ;;  %v6989_v51 = vcombine.high %v379_v46, %v383_v47  ;;  %v6991_v59 = vcombine.high %v380_v7, %v384_v20 }
 0x15b   :  { %3245 = vmatprep.subr.bf16.mxu0 %v6965_v63  ;;  %3584 = vmatprep.subr.bf16.mxu1 %v6967_v42  ;;  %v387_v63 = vld [vmem:[#allocation5 + $0x4d0] sm:$0xff]  ;;  %v6988_v42 = vcombine.low %v379_v46, %v383_v47 }
 0x15c   :  { %3247 = vmatprep.mubr.bf16.mxu0 %v8799_v58  ;;  %3586 = vmatprep.mubr.bf16.mxu1 %v8799_v58  ;;  %v6982_v58 = vcombine.low %v372_v21, %v376_v44  ;;  %v6997_v10 = vcombine.high %v387_v63, %v391_v18  ;;  %v6998_v21 = vcombine.low %v388_v30, %v392_v17 }
 0x15d   :  { %v7007_v44 = vcombine.high %v396_v38, %v400_v24 }
 0x15e   :  { %3246 = vmatpush1.bf16.msra.mxu0 %v6964_v14  ;;  %3585 = vmatpush1.bf16.msra.mxu1 %v6966_v57  ;;  %v6999_v14 = vcombine.high %v388_v30, %v392_v17  ;;  %v395_v57 = vld [vmem:[#allocation5 + $0x510] sm:$0xff] }
 0x15f   :  { %3328 = vmatprep.subr.bf16.mxu0 %v6973_v48  ;;  %3667 = vmatprep.subr.bf16.mxu1 %v6975_v29  ;;  %v399_v48 = vld [vmem:[#allocation5 + $0x530] sm:$0xff] }
 0x160   :  { %v7005_v29 = vcombine.high %v395_v57, %v399_v48  ;;  %v7004_v46 = vcombine.low %v395_v57, %v399_v48  ;;  %v419_v30 = vld [vmem:[#allocation5 + $0x5d0] sm:$0xff] }
 0x161   :  { %3248 = vmatmul.mubr.bf16.vlgmr.msra.gmra.mrb[32].mxu0 %v8803_v15  ;;  %3587 = vmatmul.mubr.bf16.vlgmr.msra.gmra.mrb[32].mxu1 %v8803_v15  ;;  %v6990_v15 = vcombine.low %v380_v7, %v384_v20  ;;  %v411_v20 = vld [vmem:[#allocation5 + $0x590] sm:$0xff] }
 0x162   :  { %3329 = vmatpush1.bf16.msra.mxu0 %v6972_v56  ;;  %3668 = vmatpush1.bf16.msra.mxu1 %v6974_v9  ;;  %v403_v56 = vld [vmem:[#allocation5 + $0x550] sm:$0xff] }
 0x163   :  { %3330 = vmatprep.subr.bf16.mxu0 %v6981_v31  ;;  %3669 = vmatprep.subr.bf16.mxu1 %v6983_v50  ;;  %v407_v9 = vld [vmem:[#allocation5 + $0x570] sm:$0xff]  ;;  %v404_v31 = vld [vmem:[#allocation5 + $0x558] sm:$0xff] }
 0x164   :  { %3257 = vmatprep.mubr.bf16.mxu0 %v8805_v23  ;;  %3596 = vmatprep.mubr.bf16.mxu1 %v8805_v23  ;;  %v6996_v23 = vcombine.low %v387_v63, %v391_v18  ;;  %v408_v50 = vld [vmem:[#allocation5 + $0x578] sm:$0xff]  ;;  %v7013_v47 = vcombine.high %v403_v56, %v407_v9  ;;  %v423_v17 = vld [vmem:[#allocation5 + $0x5f0] sm:$0xff] }
 0x165   :  { %v7015_v7 = vcombine.high %v404_v31, %v408_v50  ;;  %v427_v48 = vld [vmem:[#allocation5 + $0x610] sm:$0xff] }
 0x166   :  { %3331 = vmatpush1.bf16.msra.mxu0 %v6980_v40  ;;  %3670 = vmatpush1.bf16.msra.mxu1 %v6982_v58  ;;  %v415_v40 = vld [vmem:[#allocation5 + $0x5b0] sm:$0xff]  ;;  %v412_v58 = vld [vmem:[#allocation5 + $0x598] sm:$0xff] }
 0x167   :  { %3332 = vmatprep.subr.bf16.mxu0 %v6989_v51  ;;  %3671 = vmatprep.subr.bf16.mxu1 %v6991_v59  ;;  %v416_v51 = vld [vmem:[#allocation5 + $0x5b8] sm:$0xff]  ;;  %v7014_v59 = vcombine.low %v404_v31, %v408_v50  ;;  %v7021_v63 = vcombine.high %v411_v20, %v415_v40 }
 0x168   :  { %v7023_v18 = vcombine.high %v412_v58, %v416_v51  ;;  %v436_v31 = vld [vmem:[#allocation5 + $0x658] sm:$0xff] }
 0x169   :  { %3258 = vmatmul.mubr.bf16.gmra.mrb[36].mxu0 %v8811_v37  ;;  %3597 = vmatmul.mubr.bf16.gmra.mrb[36].mxu1 %v8811_v37  ;;  %v7006_v37 = vcombine.low %v396_v38, %v400_v24  ;;  %v431_v38 = vld [vmem:[#allocation5 + $0x630] sm:$0xff]  ;;  %v428_v24 = vld [vmem:[#allocation5 + $0x618] sm:$0xff] }
 0x16a   :  { %3333 = vmatpush1.bf16.msra.mxu0 %v6988_v42  ;;  %3672 = vmatpush1.bf16.msra.mxu1 %v6990_v15  ;;  %v420_v42 = vld [vmem:[#allocation5 + $0x5d8] sm:$0xff] }
 0x16b   :  { %3334 = vmatprep.subr.bf16.mxu0 %v6997_v10  ;;  %3673 = vmatprep.subr.bf16.mxu1 %v6999_v14  ;;  %v424_v15 = vld [vmem:[#allocation5 + $0x5f8] sm:$0xff]  ;;  %v7020_v10 = vcombine.low %v411_v20, %v415_v40  ;;  %v7029_v14 = vcombine.high %v419_v30, %v423_v17  ;;  %v447_v20 = vld [vmem:[#allocation5 + $0x6b0] sm:$0xff] }
 0x16c   :  { %3267 = vmatprep.mubr.bf16.mxu0 %v8813_v45  ;;  %3606 = vmatprep.mubr.bf16.mxu1 %v8813_v45  ;;  %v7012_v45 = vcombine.low %v403_v56, %v407_v9  ;;  %v7031_v57 = vcombine.high %v420_v42, %v424_v15  ;;  %v435_v56 = vld [vmem:[#allocation5 + $0x650] sm:$0xff]  ;;  %v440_v50 = vld [vmem:[#allocation5 + $0x678] sm:$0xff] }
 0x16d   :  { %v439_v9 = vld [vmem:[#allocation5 + $0x670] sm:$0xff]  ;;  %v444_v40 = vld [vmem:[#allocation5 + $0x698] sm:$0xff] }
 0x16e   :  { %3335 = vmatpush1.bf16.msra.mxu0 %v6996_v23  ;;  %3674 = vmatpush1.bf16.msra.mxu1 %v6998_v21  ;;  %v432_v23 = vld [vmem:[#allocation5 + $0x638] sm:$0xff]  ;;  %v7030_v21 = vcombine.low %v420_v42, %v424_v15 }
 0x16f   :  { %3336 = vmatprep.subr.bf16.mxu0 %v7005_v29  ;;  %3675 = vmatprep.subr.bf16.mxu1 %v7007_v44  ;;  %v7037_v29 = vcombine.high %v427_v48, %v431_v38  ;;  %v7039_v44 = vcombine.high %v428_v24, %v432_v23 }
 0x171   :  { %3268 = vmatmul.mubr.bf16.gmra.mrb[40].mxu0 %v8819_v60  ;;  %3607 = vmatmul.mubr.bf16.gmra.mrb[40].mxu1 %v8819_v60  ;;  %v7022_v60 = vcombine.low %v412_v58, %v416_v51  ;;  %v448_v58 = vld [vmem:[#allocation5 + $0x6b8] sm:$0xff]  ;;  %v7046_v51 = vcombine.low %v436_v31, %v440_v50 }
 0x172   :  { %3337 = vmatpush1.bf16.msra.mxu0 %v7004_v46  ;;  %3676 = vmatpush1.bf16.msra.mxu1 %v7006_v37  ;;  %v7036_v46 = vcombine.low %v427_v48, %v431_v38  ;;  %v7045_v37 = vcombine.high %v435_v56, %v439_v9  ;;  %v464_v48 = vld [vmem:[#allocation5 + $0x738] sm:$0xff] }
 0x173   :  { %3338 = vmatprep.subr.bf16.mxu0 %v7013_v47  ;;  %3677 = vmatprep.subr.bf16.mxu1 %v7015_v7  ;;  %v7047_v47 = vcombine.high %v436_v31, %v440_v50  ;;  %v443_v7 = vld [vmem:[#allocation5 + $0x690] sm:$0xff] }
 0x174   :  { %3277 = vmatprep.mubr.bf16.mxu0 %v8821_v4  ;;  %3616 = vmatprep.mubr.bf16.mxu1 %v8821_v4  ;;  %v7028_v4 = vcombine.low %v419_v30, %v423_v17  ;;  %v452_v30 = vld [vmem:[#allocation5 + $0x6d8] sm:$0xff]  ;;  %v7052_v42 = vcombine.low %v443_v7, %v447_v20  ;;  %v475_v50 = vld [vmem:[#allocation5 + $0x790] sm:$0xff] }
 0x175   :  { %v456_v17 = vld [vmem:[#allocation5 + $0x6f8] sm:$0xff] }
 0x176   :  { %3339 = vmatpush1.bf16.msra.mxu0 %v7012_v45  ;;  %3678 = vmatpush1.bf16.msra.mxu1 %v7014_v59  ;;  %v7053_v45 = vcombine.high %v443_v7, %v447_v20  ;;  %v7055_v59 = vcombine.high %v444_v40, %v448_v58  ;;  %v7062_v38 = vcombine.low %v452_v30, %v456_v17 }
 0x177   :  { %3340 = vmatprep.subr.bf16.mxu0 %v7021_v63  ;;  %3679 = vmatprep.subr.bf16.mxu1 %v7023_v18  ;;  %v451_v63 = vld [vmem:[#allocation5 + $0x6d0] sm:$0xff] }
 0x178   :  { %v455_v18 = vld [vmem:[#allocation5 + $0x6f0] sm:$0xff] }
 0x179   :  { %3278 = vmatmul.mubr.bf16.gmra.mrb[44].mxu0 %v8827_v19  ;;  %3617 = vmatmul.mubr.bf16.gmra.mrb[44].mxu1 %v8827_v19  ;;  %v7038_v19 = vcombine.low %v428_v24, %v432_v23  ;;  %v7061_v15 = vcombine.high %v451_v63, %v455_v18 }
 0x17a   :  { %3341 = vmatpush1.bf16.msra.mxu0 %v7020_v10  ;;  %3680 = vmatpush1.bf16.msra.mxu1 %v7022_v60  ;;  %v7063_v10 = vcombine.high %v452_v30, %v456_v17  ;;  %v459_v60 = vld [vmem:[#allocation5 + $0x710] sm:$0xff]  ;;  %v492_v17 = vld [vmem:[#allocation5 + $0x818] sm:$0xff] }
 0x17b   :  { %3342 = vmatprep.subr.bf16.mxu0 %v7029_v14  ;;  %3681 = vmatprep.subr.bf16.mxu1 %v7031_v57  ;;  %v463_v14 = vld [vmem:[#allocation5 + $0x730] sm:$0xff]  ;;  %v460_v57 = vld [vmem:[#allocation5 + $0x718] sm:$0xff] }
 0x17c   :  { %3287 = vmatprep.mubr.bf16.mxu0 %v8829_v28  ;;  %3626 = vmatprep.mubr.bf16.mxu1 %v8829_v28  ;;  %v7044_v28 = vcombine.low %v435_v56, %v439_v9  ;;  %v7069_v24 = vcombine.high %v459_v60, %v463_v14  ;;  %v7071_v23 = vcombine.high %v460_v57, %v464_v48  ;;  %v495_v30 = vld [vmem:[#allocation5 + $0x830] sm:$0xff] }
 0x17d   :  { %v7068_v56 = vcombine.low %v459_v60, %v463_v14  ;;  %v499_v60 = vld [vmem:[#allocation5 + $0x850] sm:$0xff] }
 0x17e   :  { %3343 = vmatpush1.bf16.msra.mxu0 %v7028_v4  ;;  %3682 = vmatpush1.bf16.msra.mxu1 %v7030_v21  ;;  %v467_v4 = vld [vmem:[#allocation5 + $0x750] sm:$0xff] }
 0x17f   :  { %3344 = vmatprep.subr.bf16.mxu0 %v7037_v29  ;;  %3683 = vmatprep.subr.bf16.mxu1 %v7039_v44  ;;  %v471_v21 = vld [vmem:[#allocation5 + $0x770] sm:$0xff]  ;;  %v468_v29 = vld [vmem:[#allocation5 + $0x758] sm:$0xff] }
 0x180   :  { %v472_v44 = vld [vmem:[#allocation5 + $0x778] sm:$0xff]  ;;  %v7077_v9 = vcombine.high %v467_v4, %v471_v21  ;;  %v503_v14 = vld [vmem:[#allocation5 + $0x870] sm:$0xff] }
 0x181   :  { %3288 = vmatmul.mubr.bf16.gmra.mrb[48].mxu0 %v8835_v43  ;;  %3627 = vmatmul.mubr.bf16.gmra.mrb[48].mxu1 %v8835_v43  ;;  %v7054_v43 = vcombine.low %v444_v40, %v448_v58  ;;  %v7079_v31 = vcombine.high %v468_v29, %v472_v44  ;;  %v483_v40 = vld [vmem:[#allocation5 + $0x7d0] sm:$0xff] }
 0x182   :  { %3345 = vmatpush1.bf16.msra.mxu0 %v7036_v46  ;;  %3684 = vmatpush1.bf16.msra.mxu1 %v7038_v19  ;;  %v479_v46 = vld [vmem:[#allocation5 + $0x7b0] sm:$0xff]  ;;  %v476_v19 = vld [vmem:[#allocation5 + $0x798] sm:$0xff] }
 0x183   :  { %3346 = vmatprep.subr.bf16.mxu0 %v7045_v37  ;;  %3685 = vmatprep.subr.bf16.mxu1 %v7047_v47  ;;  %v480_v37 = vld [vmem:[#allocation5 + $0x7b8] sm:$0xff]  ;;  %v7078_v47 = vcombine.low %v468_v29, %v472_v44  ;;  %v7085_v7 = vcombine.high %v475_v50, %v479_v46  ;;  %v487_v58 = vld [vmem:[#allocation5 + $0x7f0] sm:$0xff] }
 0x184   :  { %3297 = vmatprep.mubr.bf16.mxu0 %v8837_v52  ;;  %3636 = vmatprep.mubr.bf16.mxu1 %v8837_v52  ;;  %v7060_v52 = vcombine.low %v451_v63, %v455_v18  ;;  %v7087_v20 = vcombine.high %v476_v19, %v480_v37  ;;  %v491_v18 = vld [vmem:[#allocation5 + $0x810] sm:$0xff]  ;;  %v512_v29 = vld [vmem:[#allocation5 + $0x8b8] sm:$0xff] }
 0x186   :  { %3347 = vmatpush1.bf16.msra.mxu0 %v7044_v28  ;;  %3686 = vmatpush1.bf16.msra.mxu1 %v7046_v51  ;;  %v484_v28 = vld [vmem:[#allocation5 + $0x7d8] sm:$0xff] }
 0x187   :  { %3348 = vmatprep.subr.bf16.mxu0 %v7053_v45  ;;  %3687 = vmatprep.subr.bf16.mxu1 %v7055_v59  ;;  %v488_v51 = vld [vmem:[#allocation5 + $0x7f8] sm:$0xff]  ;;  %v7084_v45 = vcombine.low %v475_v50, %v479_v46  ;;  %v7093_v59 = vcombine.high %v483_v40, %v487_v58 }
 0x188   :  { %v7095_v63 = vcombine.high %v484_v28, %v488_v51  ;;  %v516_v50 = vld [vmem:[#allocation5 + $0x8d8] sm:$0xff] }
 0x189   :  { %3298 = vmatmul.mubr.bf16.gmra.mrb[52].mxu0 %v8843_v5  ;;  %3637 = vmatmul.mubr.bf16.gmra.mrb[52].mxu1 %v8843_v5  ;;  %v7070_v5 = vcombine.low %v460_v57, %v464_v48  ;;  %v500_v57 = vld [vmem:[#allocation5 + $0x858] sm:$0xff] }
 0x18a   :  { %3349 = vmatpush1.bf16.msra.mxu0 %v7052_v42  ;;  %3688 = vmatpush1.bf16.msra.mxu1 %v7054_v43  ;;  %v496_v42 = vld [vmem:[#allocation5 + $0x838] sm:$0xff]  ;;  %v7094_v43 = vcombine.low %v484_v28, %v488_v51 }
 0x18b   :  { %3350 = vmatprep.subr.bf16.mxu0 %v7061_v15  ;;  %3689 = vmatprep.subr.bf16.mxu1 %v7063_v10  ;;  %v7101_v15 = vcombine.high %v491_v18, %v495_v30  ;;  %v7103_v10 = vcombine.high %v492_v17, %v496_v42  ;;  %v504_v48 = vld [vmem:[#allocation5 + $0x878] sm:$0xff] }
 0x18c   :  { %3307 = vmatprep.mubr.bf16.mxu0 %v8845_v13  ;;  %3646 = vmatprep.mubr.bf16.mxu1 %v8845_v13  ;;  %v7076_v13 = vcombine.low %v467_v4, %v471_v21  ;;  %v511_v4 = vld [vmem:[#allocation5 + $0x8b0] sm:$0xff]  ;;  %v508_v21 = vld [vmem:[#allocation5 + $0x898] sm:$0xff]  ;;  %v7110_v44 = vcombine.low %v500_v57, %v504_v48 }
 0x18d   :  { %v520_v46 = vld [vmem:[#allocation5 + $0x8f8] sm:$0xff] }
 0x18e   :  { %3351 = vmatpush1.bf16.msra.mxu0 %v7060_v52  ;;  %3690 = vmatpush1.bf16.msra.mxu1 %v7062_v38  ;;  %v7100_v52 = vcombine.low %v491_v18, %v495_v30  ;;  %v7109_v38 = vcombine.high %v499_v60, %v503_v14 }
 0x18f   :  { %3352 = vmatprep.subr.bf16.mxu0 %v7069_v24  ;;  %3691 = vmatprep.subr.bf16.mxu1 %v7071_v23  ;;  %v7111_v24 = vcombine.high %v500_v57, %v504_v48  ;;  %v507_v23 = vld [vmem:[#allocation5 + $0x890] sm:$0xff] }
 0x190   :  { %v547_v57 = vld [vmem:[#allocation5 + $0x9d0] sm:$0xff] }
 0x191   :  { %3308 = vmatmul.mubr.bf16.gmra.mrb[56].mxu0 %v8851_v34  ;;  %3647 = vmatmul.mubr.bf16.gmra.mrb[56].mxu1 %v8851_v34  ;;  %v7086_v34 = vcombine.low %v476_v19, %v480_v37  ;;  %v7116_v19 = vcombine.low %v507_v23, %v511_v4  ;;  %v551_v48 = vld [vmem:[#allocation5 + $0x9f0] sm:$0xff] }
 0x192   :  { %3353 = vmatpush1.bf16.msra.mxu0 %v7068_v56  ;;  %3692 = vmatpush1.bf16.msra.mxu1 %v7070_v5  ;;  %v7117_v56 = vcombine.high %v507_v23, %v511_v4  ;;  %v7119_v5 = vcombine.high %v508_v21, %v512_v29  ;;  %v555_v4 = vld [vmem:[#allocation5 + $0xa10] sm:$0xff] }
 0x193   :  { %3354 = vmatprep.subr.bf16.mxu0 %v7077_v9  ;;  %3693 = vmatprep.subr.bf16.mxu1 %v7079_v31  ;;  %v515_v9 = vld [vmem:[#allocation5 + $0x8d0] sm:$0xff] }
 0x194   :  { %3317 = vmatprep.mubr.bf16.mxu0 %v8853_v41  ;;  %3656 = vmatprep.mubr.bf16.mxu1 %v8853_v41  ;;  %v7092_v41 = vcombine.low %v483_v40, %v487_v58  ;;  %v519_v31 = vld [vmem:[#allocation5 + $0x8f0] sm:$0xff]  ;;  %v528_v40 = vld [vmem:[#allocation5 + $0x938] sm:$0xff]  ;;  %v7126_v58 = vcombine.low %v516_v50, %v520_v46 }
 0x195   :  { %v7125_v37 = vcombine.high %v515_v9, %v519_v31 }
 0x196   :  { %3355 = vmatpush1.bf16.msra.mxu0 %v7076_v13  ;;  %3694 = vmatpush1.bf16.msra.mxu1 %v7078_v47  ;;  %v7127_v13 = vcombine.high %v516_v50, %v520_v46  ;;  %v523_v47 = vld [vmem:[#allocation5 + $0x910] sm:$0xff]  ;;  %v564_v50 = vld [vmem:[#allocation5 + $0xa58] sm:$0xff] }
 0x197   :  { %3356 = vmatprep.subr.bf16.mxu0 %v7085_v7  ;;  %3695 = vmatprep.subr.bf16.mxu1 %v7087_v20  ;;  %v527_v7 = vld [vmem:[#allocation5 + $0x930] sm:$0xff]  ;;  %v524_v20 = vld [vmem:[#allocation5 + $0x918] sm:$0xff] }
 0x198   :  { %v7133_v28 = vcombine.high %v523_v47, %v527_v7  ;;  %v7135_v51 = vcombine.high %v524_v20, %v528_v40  ;;  %v7132_v18 = vcombine.low %v523_v47, %v527_v7  ;;  %v568_v46 = vld [vmem:[#allocation5 + $0xa78] sm:$0xff]  ;;  %v575_v47 = vld [vmem:[#allocation5 + $0xab0] sm:$0xff] }
 0x199   :  { %3318 = vmatmul.mubr.bf16.gmra.mrb[60].mxu0 %v8859_v62  ;;  %3657 = vmatmul.mubr.bf16.gmra.mrb[60].mxu1 %v8859_v62  ;;  %v7102_v62 = vcombine.low %v492_v17, %v496_v42  ;;  %v539_v42 = vld [vmem:[#allocation5 + $0x990] sm:$0xff]  ;;  %v572_v7 = vld [vmem:[#allocation5 + $0xa98] sm:$0xff] }
 0x19a   :  { %3357 = vmatpush1.bf16.msra.mxu0 %v7084_v45  ;;  %3696 = vmatpush1.bf16.msra.mxu1 %v7086_v34  ;;  %v531_v45 = vld [vmem:[#allocation5 + $0x950] sm:$0xff] }
 0x19b   :  { %3358 = vmatprep.subr.bf16.mxu0 %v7093_v59  ;;  %3697 = vmatprep.subr.bf16.mxu1 %v7095_v63  ;;  %v535_v34 = vld [vmem:[#allocation5 + $0x970] sm:$0xff]  ;;  %v532_v59 = vld [vmem:[#allocation5 + $0x958] sm:$0xff] }
 0x19c   :  { %3360 = vmatprep.mubr.bf16.mxu0 %v8861_v6  ;;  %3699 = vmatprep.mubr.bf16.mxu1 %v8861_v6  ;;  %v7108_v6 = vcombine.low %v499_v60, %v503_v14  ;;  %v536_v63 = vld [vmem:[#allocation5 + $0x978] sm:$0xff]  ;;  %v7141_v30 = vcombine.high %v531_v45, %v535_v34 }
 0x19d   :  { %v7143_v17 = vcombine.high %v532_v59, %v536_v63 }
 0x19e   :  { %3359 = vmatpush1.bf16.msra.mxu0 %v7092_v41  ;;  %3698 = vmatpush1.bf16.msra.mxu1 %v7094_v43  ;;  %v543_v41 = vld [vmem:[#allocation5 + $0x9b0] sm:$0xff]  ;;  %v540_v43 = vld [vmem:[#allocation5 + $0x998] sm:$0xff] }
 0x19f   :  { %3441 = vmatprep.subr.bf16.mxu0 %v7101_v15  ;;  %3780 = vmatprep.subr.bf16.mxu1 %v7103_v10  ;;  %v544_v15 = vld [vmem:[#allocation5 + $0x9b8] sm:$0xff]  ;;  %v7142_v10 = vcombine.low %v532_v59, %v536_v63  ;;  %v7149_v60 = vcombine.high %v539_v42, %v543_v41 }
 0x1a0   :  { %v7151_v14 = vcombine.high %v540_v43, %v544_v15 }
 0x1a1   :  { %3361 = vmatmul.mubr.bf16.vlgmr.msra.gmra.mrb[32].mxu0 %v8867_v26  ;;  %3700 = vmatmul.mubr.bf16.vlgmr.msra.gmra.mrb[32].mxu1 %v8867_v26  ;;  %v7118_v26 = vcombine.low %v508_v21, %v512_v29  ;;  %v559_v21 = vld [vmem:[#allocation5 + $0xa30] sm:$0xff]  ;;  %v556_v29 = vld [vmem:[#allocation5 + $0xa18] sm:$0xff] }
 0x1a2   :  { %3442 = vmatpush1.bf16.msra.mxu0 %v7100_v52  ;;  %3781 = vmatpush1.bf16.msra.mxu1 %v7102_v62  ;;  %v548_v52 = vld [vmem:[#allocation5 + $0x9d8] sm:$0xff] }
 0x1a3   :  { %3443 = vmatprep.subr.bf16.mxu0 %v7109_v38  ;;  %3782 = vmatprep.subr.bf16.mxu1 %v7111_v24  ;;  %v552_v62 = vld [vmem:[#allocation5 + $0x9f8] sm:$0xff]  ;;  %v7148_v38 = vcombine.low %v539_v42, %v543_v41  ;;  %v7157_v24 = vcombine.high %v547_v57, %v551_v48 }
 0x1a4   :  { %3370 = vmatprep.mubr.bf16.mxu0 %v8869_v36  ;;  %3709 = vmatprep.mubr.bf16.mxu1 %v8869_v36  ;;  %v7124_v36 = vcombine.low %v515_v9, %v519_v31  ;;  %v7159_v23 = vcombine.high %v548_v52, %v552_v62  ;;  %v563_v9 = vld [vmem:[#allocation5 + $0xa50] sm:$0xff]  ;;  %v592_v42 = vld [vmem:[#allocation5 + $0xb38] sm:$0xff] }
 0x1a5   :  { %v567_v31 = vld [vmem:[#allocation5 + $0xa70] sm:$0xff] }
 0x1a6   :  { %3444 = vmatpush1.bf16.msra.mxu0 %v7108_v6  ;;  %3783 = vmatpush1.bf16.msra.mxu1 %v7110_v44  ;;  %v560_v6 = vld [vmem:[#allocation5 + $0xa38] sm:$0xff]  ;;  %v7158_v44 = vcombine.low %v548_v52, %v552_v62  ;;  %v603_v62 = vld [vmem:[#allocation5 + $0xb90] sm:$0xff] }
 0x1a7   :  { %3445 = vmatprep.subr.bf16.mxu0 %v7117_v56  ;;  %3784 = vmatprep.subr.bf16.mxu1 %v7119_v5  ;;  %v7165_v56 = vcombine.high %v555_v4, %v559_v21  ;;  %v7167_v5 = vcombine.high %v556_v29, %v560_v6 }
 0x1a9   :  { %3371 = vmatmul.mubr.bf16.gmra.mrb[36].mxu0 %v8875_v55  ;;  %3710 = vmatmul.mubr.bf16.gmra.mrb[36].mxu1 %v8875_v55  ;;  %v7134_v55 = vcombine.low %v524_v20, %v528_v40  ;;  %v576_v20 = vld [vmem:[#allocation5 + $0xab8] sm:$0xff]  ;;  %v7174_v40 = vcombine.low %v564_v50, %v568_v46 }
 0x1aa   :  { %3446 = vmatpush1.bf16.msra.mxu0 %v7116_v19  ;;  %3785 = vmatpush1.bf16.msra.mxu1 %v7118_v26  ;;  %v7164_v19 = vcombine.low %v555_v4, %v559_v21  ;;  %v7173_v26 = vcombine.high %v563_v9, %v567_v31 }
 0x1ab   :  { %3447 = vmatprep.subr.bf16.mxu0 %v7125_v37  ;;  %3786 = vmatprep.subr.bf16.mxu1 %v7127_v13  ;;  %v7175_v37 = vcombine.high %v564_v50, %v568_v46  ;;  %v571_v13 = vld [vmem:[#allocation5 + $0xa90] sm:$0xff]  ;;  %v8094_v46 = vld [vmem:[#allocation7 + $0xc] ss:$24 sps:$4 sm:$0xff]  }
 0x1ac   :  { %3380 = vmatprep.mubr.bf16.mxu0 %v8877_v2  ;;  %3719 = vmatprep.mubr.bf16.mxu1 %v8877_v2  ;;  %v7140_v2 = vcombine.low %v531_v45, %v535_v34  ;;  %v580_v45 = vld [vmem:[#allocation5 + $0xad8] sm:$0xff]  ;;  %v7180_v59 = vcombine.low %v571_v13, %v575_v47 }
 0x1ad   :  { %v584_v34 = vld [vmem:[#allocation5 + $0xaf8] sm:$0xff] }
 0x1ae   :  { %3448 = vmatpush1.bf16.msra.mxu0 %v7124_v36  ;;  %3787 = vmatpush1.bf16.msra.mxu1 %v7126_v58  ;;  %v7181_v36 = vcombine.high %v571_v13, %v575_v47  ;;  %v7183_v58 = vcombine.high %v572_v7, %v576_v20  ;;  %v7190_v41 = vcombine.low %v580_v45, %v584_v34  ;;  %v8103_v13 = vld [vmem:[#allocation7 + $0x64] ss:$24 sps:$4 sm:$0xff]  }
 0x1af   :  { %3449 = vmatprep.subr.bf16.mxu0 %v7133_v28  ;;  %3788 = vmatprep.subr.bf16.mxu1 %v7135_v51  ;;  %v579_v28 = vld [vmem:[#allocation5 + $0xad0] sm:$0xff]  ;;  %v8106_v47 = vld [vmem:[#allocation7 + $0x6c] ss:$24 sps:$4 sm:$0xff]  }
 0x1b0   :  { %v583_v51 = vld [vmem:[#allocation5 + $0xaf0] sm:$0xff] }
 0x1b1   :  { %3381 = vmatmul.mubr.bf16.gmra.mrb[40].mxu0 %v8883_v22  ;;  %3720 = vmatmul.mubr.bf16.gmra.mrb[40].mxu1 %v8883_v22  ;;  %v7150_v22 = vcombine.low %v540_v43, %v544_v15  ;;  %v7189_v63 = vcombine.high %v579_v28, %v583_v51 }
 0x1b2   :  { %3450 = vmatpush1.bf16.msra.mxu0 %v7132_v18  ;;  %3789 = vmatpush1.bf16.msra.mxu1 %v7134_v55  ;;  %v7191_v18 = vcombine.high %v580_v45, %v584_v34  ;;  %v587_v55 = vld [vmem:[#allocation5 + $0xb10] sm:$0xff]  ;;  %v8113_v45 = vld [vmem:[#allocation7 + $0xc0] ss:$24 sps:$4 sm:$0xff]  }
 0x1b3   :  { %3451 = vmatprep.subr.bf16.mxu0 %v7141_v30  ;;  %3790 = vmatprep.subr.bf16.mxu1 %v7143_v17  ;;  %v591_v30 = vld [vmem:[#allocation5 + $0xb30] sm:$0xff]  ;;  %v588_v17 = vld [vmem:[#allocation5 + $0xb18] sm:$0xff]  ;;  %v8116_v34 = vld [vmem:[#allocation7 + $0xc8] ss:$24 sps:$4 sm:$0xff]  }
 0x1b4   :  { %3390 = vmatprep.mubr.bf16.mxu0 %v8885_v33  ;;  %3729 = vmatprep.mubr.bf16.mxu1 %v8885_v33  ;;  %v7156_v33 = vcombine.low %v547_v57, %v551_v48  ;;  %v7197_v43 = vcombine.high %v587_v55, %v591_v30  ;;  %v7199_v15 = vcombine.high %v588_v17, %v592_v42 }
 0x1b5   :  { %v7196_v57 = vcombine.low %v587_v55, %v591_v30  ;;  %v8119_v55 = vld [vmem:[#allocation7 + $0xf0] ss:$24 sps:$4 sm:$0xff]  }
 0x1b6   :  { %3452 = vmatpush1.bf16.msra.mxu0 %v7140_v2  ;;  %3791 = vmatpush1.bf16.msra.mxu1 %v7142_v10  ;;  %v595_v2 = vld [vmem:[#allocation5 + $0xb50] sm:$0xff] }
 0x1b7   :  { %3453 = vmatprep.subr.bf16.mxu0 %v7149_v60  ;;  %3792 = vmatprep.subr.bf16.mxu1 %v7151_v14  ;;  %v599_v10 = vld [vmem:[#allocation5 + $0xb70] sm:$0xff]  ;;  %v596_v60 = vld [vmem:[#allocation5 + $0xb58] sm:$0xff] }
 0x1b8   :  { %v600_v14 = vld [vmem:[#allocation5 + $0xb78] sm:$0xff]  ;;  %v7205_v48 = vcombine.high %v595_v2, %v599_v10 }
 0x1b9   :  { %3391 = vmatmul.mubr.bf16.gmra.mrb[44].mxu0 %v8891_v54  ;;  %3730 = vmatmul.mubr.bf16.gmra.mrb[44].mxu1 %v8891_v54  ;;  %v7166_v54 = vcombine.low %v556_v29, %v560_v6  ;;  %v7207_v52 = vcombine.high %v596_v60, %v600_v14  ;;  %v611_v29 = vld [vmem:[#allocation5 + $0xbd0] sm:$0xff] }
 0x1ba   :  { %3454 = vmatpush1.bf16.msra.mxu0 %v7148_v38  ;;  %3793 = vmatpush1.bf16.msra.mxu1 %v7150_v22  ;;  %v607_v38 = vld [vmem:[#allocation5 + $0xbb0] sm:$0xff]  ;;  %v604_v22 = vld [vmem:[#allocation5 + $0xb98] sm:$0xff] }
 0x1bb   :  { %3455 = vmatprep.subr.bf16.mxu0 %v7157_v24  ;;  %3794 = vmatprep.subr.bf16.mxu1 %v7159_v23  ;;  %v608_v24 = vld [vmem:[#allocation5 + $0xbb8] sm:$0xff]  ;;  %v7206_v23 = vcombine.low %v596_v60, %v600_v14  ;;  %v7213_v4 = vcombine.high %v603_v62, %v607_v38  ;;  %v615_v6 = vld [vmem:[#allocation5 + $0xbf0] sm:$0xff] }
 0x1bc   :  { %3400 = vmatprep.mubr.bf16.mxu0 %v8893_v3  ;;  %3739 = vmatprep.mubr.bf16.mxu1 %v8893_v3  ;;  %v7172_v3 = vcombine.low %v563_v9, %v567_v31  ;;  %v7215_v21 = vcombine.high %v604_v22, %v608_v24  ;;  %v7220_v31 = vcombine.low %v611_v29, %v615_v6 }
 0x1be   :  { %3456 = vmatpush1.bf16.msra.mxu0 %v7156_v33  ;;  %3795 = vmatpush1.bf16.msra.mxu1 %v7158_v44  ;;  %v612_v33 = vld [vmem:[#allocation5 + $0xbd8] sm:$0xff] }
 0x1bf   :  { %3457 = vmatprep.subr.bf16.mxu0 %v7165_v56  ;;  %3796 = vmatprep.subr.bf16.mxu1 %v7167_v5  ;;  %v616_v44 = vld [vmem:[#allocation5 + $0xbf8] sm:$0xff]  ;;  %v7212_v56 = vcombine.low %v603_v62, %v607_v38  ;;  %v7221_v5 = vcombine.high %v611_v29, %v615_v6  ;;  %v8128_v62 = vld [vmem:[#allocation7 + $0x128] ss:$24 sps:$4 sm:$0xff]   ;;  %v8133_v38 = vld [vmem:[#allocation7 + $0x154] ss:$24 sps:$4 sm:$0xff]  }
 0x1c0   :  { %v7223_v9 = vcombine.high %v612_v33, %v616_v44  ;;  %v7222_v50 = vcombine.low %v612_v33, %v616_v44  ;;  %v8134_v29 = vld [vmem:[#allocation7 + $0x158] ss:$24 sps:$4 sm:$0xff]   ;;  %v8139_v6 = vld [vmem:[#allocation7 + $0x184] ss:$24 sps:$4 sm:$0xff]  }
 0x1c1   :  { %3401 = vmatmul.mubr.bf16.gmra.mrb[48].mxu0 %v8899_v25  ;;  %3740 = vmatmul.mubr.bf16.gmra.mrb[48].mxu1 %v8899_v25  ;;  %v7182_v25 = vcombine.low %v572_v7, %v576_v20  ;;  %v8101_v7 = vld [vmem:[#allocation7 + $0x60] ss:$24 sps:$4 sm:$0xff]  }
 0x1c2   :  { %3458 = vmatpush1.bf16.msra.mxu0 %v7164_v19  ;;  %3797 = vmatpush1.bf16.msra.mxu1 %v7166_v54  ;;  %v8089_v19 = vld [vmem:[#allocation7] ss:$24 sps:$4 sm:$0xff]  }
 0x1c3   :  { %3459 = vmatprep.subr.bf16.mxu0 %v7173_v26  ;;  %3798 = vmatprep.subr.bf16.mxu1 %v7175_v37  ;;  %v8092_v54 = vld [vmem:[#allocation7 + $0x8] ss:$24 sps:$4 sm:$0xff]   ;;  %v8097_v26 = vld [vmem:[#allocation7 + $0x34] ss:$24 sps:$4 sm:$0xff]  }
 0x1c4   :  { %3410 = vmatprep.mubr.bf16.mxu0 %v8901_v39  ;;  %3749 = vmatprep.mubr.bf16.mxu1 %v8901_v39  ;;  %v7188_v39 = vcombine.low %v579_v28, %v583_v51  ;;  %v8095_v37 = vld [vmem:[#allocation7 + $0x30] ss:$24 sps:$4 sm:$0xff]   ;;  %v8115_v28 = vld [vmem:[#allocation7 + $0xc4] ss:$24 sps:$4 sm:$0xff]  }
 0x1c5   :  { %v8104_v20 = vld [vmem:[#allocation7 + $0x68] ss:$24 sps:$4 sm:$0xff]   ;;  %v8118_v51 = vld [vmem:[#allocation7 + $0xcc] ss:$24 sps:$4 sm:$0xff]  }
 0x1c6   :  { %3460 = vmatpush1.bf16.msra.mxu0 %v7172_v3  ;;  %3799 = vmatpush1.bf16.msra.mxu1 %v7174_v40  ;;  %v8109_v3 = vld [vmem:[#allocation7 + $0x94] ss:$24 sps:$4 sm:$0xff]   ;;  %v9908_v40 = vld [vmem:[#allocation16_spill] sm:$0xff] }
 0x1c7   :  { %3461 = vmatprep.subr.bf16.mxu0 %v7181_v36  ;;  %3800 = vmatprep.subr.bf16.mxu1 %v7183_v58  ;;  %v8107_v36 = vld [vmem:[#allocation7 + $0x90] ss:$24 sps:$4 sm:$0xff]  }
 0x1c8   :  { %v8110_v58 = vld [vmem:[#allocation7 + $0x98] ss:$24 sps:$4 sm:$0xff]  }
 0x1c9   :  { %3411 = vmatmul.mubr.bf16.gmra.mrb[52].mxu0 %v8907_v61  ;;  %3750 = vmatmul.mubr.bf16.gmra.mrb[52].mxu1 %v8907_v61  ;;  %v7198_v61 = vcombine.low %v588_v17, %v592_v42  ;;  %v8122_v17 = vld [vmem:[#allocation7 + $0xf8] ss:$24 sps:$4 sm:$0xff]   ;;  %v8127_v42 = vld [vmem:[#allocation7 + $0x124] ss:$24 sps:$4 sm:$0xff]  }
 0x1ca   :  { %3462 = vmatpush1.bf16.msra.mxu0 %v7180_v59  ;;  %3801 = vmatpush1.bf16.msra.mxu1 %v7182_v25  ;;  %v8121_v59 = vld [vmem:[#allocation7 + $0xf4] ss:$24 sps:$4 sm:$0xff]  }
 0x1cb   :  { %3463 = vmatprep.subr.bf16.mxu0 %v7189_v63  ;;  %3802 = vmatprep.subr.bf16.mxu1 %v7191_v18  ;;  %v9910_v25 = vld [vmem:[#allocation18_spill] sm:$0xff]  ;;  %v9911_v18 = vld [vmem:[#allocation19_spill] sm:$0xff] }
 0x1cc   :  { %3420 = vmatprep.mubr.bf16.mxu0 %v8909_v11  ;;  %3759 = vmatprep.mubr.bf16.mxu1 %v8909_v11  ;;  %v7204_v11 = vcombine.low %v595_v2, %v599_v10  ;;  %v8124_v63 = vld [vmem:[#allocation7 + $0xfc] ss:$24 sps:$4 sm:$0xff]  }
 0x1ce   :  { %3464 = vmatpush1.bf16.msra.mxu0 %v7188_v39  ;;  %3803 = vmatpush1.bf16.msra.mxu1 %v7190_v41 }
 0x1cf   :  { %3465 = vmatprep.subr.bf16.mxu0 %v7197_v43  ;;  %3804 = vmatprep.subr.bf16.mxu1 %v7199_v15  ;;  %v8130_v43 = vld [vmem:[#allocation7 + $0x12c] ss:$24 sps:$4 sm:$0xff]  }
 0x1d1   :  { %3421 = vmatmul.mubr.bf16.gmra.mrb[56].mxu0 %v8915_v35  ;;  %3760 = vmatmul.mubr.bf16.gmra.mrb[56].mxu1 %v8915_v35  ;;  %v7214_v35 = vcombine.low %v604_v22, %v608_v24  ;;  %v9912_v24 = vld [vmem:[#allocation20_spill] sm:$0xff] }
 0x1d2   :  { %3466 = vmatpush1.bf16.msra.mxu0 %v7196_v57  ;;  %3805 = vmatpush1.bf16.msra.mxu1 %v7198_v61  ;;  %v8125_v57 = vld [vmem:[#allocation7 + $0x120] ss:$24 sps:$4 sm:$0xff]  }
 0x1d3   :  { %3467 = vmatprep.subr.bf16.mxu0 %v7205_v48  ;;  %3806 = vmatprep.subr.bf16.mxu1 %v7207_v52 }
 0x1d4   :  { %3430 = vmatprep.mubr.bf16.mxu0 %v8917_v49  ;;  %3769 = vmatprep.mubr.bf16.mxu1 %v8917_v49  ;;  %v8091_v49 = vld [vmem:[#allocation7 + $0x4] ss:$24 sps:$4 sm:$0xff]  }
 0x1d6   :  { %3468 = vmatpush1.bf16.msra.mxu0 %v7204_v11  ;;  %3807 = vmatpush1.bf16.msra.mxu1 %v7206_v23  ;;  %v8136_v11 = vld [vmem:[#allocation7 + $0x15c] ss:$24 sps:$4 sm:$0xff]   ;;  %v9913_v23 = vld [vmem:[#allocation21_spill] sm:$0xff] }
 0x1d7   :  { %3469 = vmatprep.subr.bf16.mxu0 %v7213_v4  ;;  %3808 = vmatprep.subr.bf16.mxu1 %v7215_v21  ;;  %v8131_v4 = vld [vmem:[#allocation7 + $0x150] ss:$24 sps:$4 sm:$0xff]  }
 0x1d9   :  { %3431 = vmatmul.mubr.bf16.gmra.mrb[60].mxu0 %v8923_v12  ;;  %3770 = vmatmul.mubr.bf16.gmra.mrb[60].mxu1 %v8923_v12  ;;  %v8100_v12 = vld [vmem:[#allocation7 + $0x3c] ss:$24 sps:$4 sm:$0xff]  }
 0x1da   :  { %3470 = vmatpush1.bf16.msra.mxu0 %v7212_v56  ;;  %3809 = vmatpush1.bf16.msra.mxu1 %v7214_v35  ;;  %v8142_v56 = vld [vmem:[#allocation7 + $0x18c] ss:$24 sps:$4 sm:$0xff]  }
 0x1db   :  { %3471 = vmatprep.subr.bf16.mxu0 %v7221_v5  ;;  %3810 = vmatprep.subr.bf16.mxu1 %v7223_v9 }
 0x1dc   :  { %3473 = vmatprep.mubr.bf16.mxu0 %v8925_v27  ;;  %3812 = vmatprep.mubr.bf16.mxu1 %v8925_v27  ;;  %v8098_v27 = vld [vmem:[#allocation7 + $0x38] ss:$24 sps:$4 sm:$0xff]  }
 0x1de   :  { %3472 = vmatpush1.bf16.msra.mxu0 %v7220_v31  ;;  %3811 = vmatpush1.bf16.msra.mxu1 %v7222_v50 }
 0x1df   :  { %5397 = vmatprep.subr.bf16.mxu0 %v8091_v49  ;;  %5623 = vmatprep.subr.bf16.mxu1 %v8094_v46  ;;  %v8137_v49 = vld [vmem:[#allocation7 + $0x180] ss:$24 sps:$4 sm:$0xff]  }
 0x1e1   :  { %3474 = vmatmul.mubr.bf16.vlgmr.msra.gmra.mrb[32].mxu0 %v8931_v53  ;;  %3813 = vmatmul.mubr.bf16.vlgmr.msra.gmra.mrb[32].mxu1 %v8931_v53  ;;  %v8112_v53 = vld [vmem:[#allocation7 + $0x9c] ss:$24 sps:$4 sm:$0xff]  }
 0x1e2   :  { %3483 = vmatprep.mubr.bf16.mxu0 %v8933_v8  ;;  %3822 = vmatprep.mubr.bf16.mxu1 %v8933_v8  ;;  %v9909_v8 = vld [vmem:[#allocation17_spill] sm:$0xff] }
 0x1e3   :  { %5398 = vmatpush1.bf16.msra.mxu0 %v8089_v19  ;;  %5624 = vmatpush1.bf16.msra.mxu1 %v8092_v54 }
 0x1e4   :  { %5399 = vmatprep.subr.bf16.mxu0 %v8097_v26  ;;  %5625 = vmatprep.subr.bf16.mxu1 %v8100_v12  ;;  %v8140_v26 = vld [vmem:[#allocation7 + $0x188] ss:$24 sps:$4 sm:$0xff]   ;;  %v8145_v12 = vld [vmem:[#allocation7 + $0x1b4] ss:$24 sps:$4 sm:$0xff]  }
 0x1e7   :  { %5400 = vmatpush1.bf16.msra.mxu0 %v8095_v37  ;;  %5626 = vmatpush1.bf16.msra.mxu1 %v8098_v27  ;;  %v9914_v27 = vld [vmem:[#allocation22_spill] sm:$0xff] }
 0x1e8   :  { %5401 = vmatprep.subr.bf16.mxu0 %v8103_v13  ;;  %5627 = vmatprep.subr.bf16.mxu1 %v8106_v47  ;;  %v8148_v13 = vld [vmem:[#allocation7 + $0x1bc] ss:$24 sps:$4 sm:$0xff]  }
 0x1e9   :  { %3484 = vmatmul.mubr.bf16.gmra.mrb[36].mxu0 %v9908_v40  ;;  %3823 = vmatmul.mubr.bf16.gmra.mrb[36].mxu1 %v9908_v40  ;;  %v9915_v47 = vld [vmem:[#allocation23_spill] sm:$0xff] }
 0x1ea   :  { %3493 = vmatprep.mubr.bf16.mxu0 %v9909_v8  ;;  %3832 = vmatprep.mubr.bf16.mxu1 %v9909_v8  ;;  %v8151_v40 = vld [vmem:[#allocation7 + $0x1e4] ss:$24 sps:$4 sm:$0xff]  }
 0x1eb   :  { %5402 = vmatpush1.bf16.msra.mxu0 %v8101_v7  ;;  %5628 = vmatpush1.bf16.msra.mxu1 %v8104_v20  ;;  %v8143_v7 = vld [vmem:[#allocation7 + $0x1b0] ss:$24 sps:$4 sm:$0xff]  }
 0x1ec   :  { %5403 = vmatprep.subr.bf16.mxu0 %v8109_v3  ;;  %5629 = vmatprep.subr.bf16.mxu1 %v8112_v53  ;;  %v8146_v3 = vld [vmem:[#allocation7 + $0x1b8] ss:$24 sps:$4 sm:$0xff]  }
 0x1ef   :  { %5404 = vmatpush1.bf16.msra.mxu0 %v8107_v36  ;;  %5630 = vmatpush1.bf16.msra.mxu1 %v8110_v58  ;;  %v8154_v36 = vld [vmem:[#allocation7 + $0x1ec] ss:$24 sps:$4 sm:$0xff]  }
 0x1f0   :  { %5405 = vmatprep.subr.bf16.mxu0 %v8115_v28  ;;  %5631 = vmatprep.subr.bf16.mxu1 %v8118_v51 }
 0x1f1   :  { %3494 = vmatmul.mubr.bf16.gmra.mrb[40].mxu0 %v9910_v25  ;;  %3833 = vmatmul.mubr.bf16.gmra.mrb[40].mxu1 %v9910_v25 }
 0x1f2   :  { %3503 = vmatprep.mubr.bf16.mxu0 %v9911_v18  ;;  %3842 = vmatprep.mubr.bf16.mxu1 %v9911_v18 }
 0x1f3   :  { %5406 = vmatpush1.bf16.msra.mxu0 %v8113_v45  ;;  %5632 = vmatpush1.bf16.msra.mxu1 %v8116_v34 }
 0x1f4   :  { %v2797_v30 = vpop.f32.mrb[0].mxu0  ;;  %5407 = vmatprep.subr.bf16.mxu0 %v8121_v59  ;;  %v3136_v39 = vpop.f32.mrb[0].mxu1  ;;  %5633 = vmatprep.subr.bf16.mxu1 %v8124_v63  ;;  %v8149_v59 = vld [vmem:[#allocation7 + $0x1e0] ss:$24 sps:$4 sm:$0xff]  }
 0x1f5   :  { %v2799_v41 = vpop.f32.mrb[1].mxu0  ;;  %v3138_v15 = vpop.f32.mrb[1].mxu1 }
 0x1f6   :  { %v2801_v2 = vpop.f32.mrb[2].mxu0  ;;  %v3140_v60 = vpop.f32.mrb[2].mxu1 }
 0x1f7   :  { %v9069_v10 = vpack.c.bf16 %v2801_v2, %v2797_v30  ;;  %v2803_v14 = vpop.f32.mrb[3].mxu0  ;;  %5408 = vmatpush1.bf16.msra.mxu0 %v8119_v55  ;;  %v9071_v61 = vpack.c.bf16 %v3140_v60, %v3136_v39  ;;  %v3142_v52 = vpop.f32.mrb[3].mxu1  ;;  %5634 = vmatpush1.bf16.msra.mxu1 %v8122_v17  ;;  %v8152_v55 = vld [vmem:[#allocation7 + $0x1e8] ss:$24 sps:$4 sm:$0xff]   ;;  %v8157_v30 = vld [vmem:[#allocation7 + $0x214] ss:$24 sps:$4 sm:$0xff]  }
 0x1f8   :  { %v9073_v48 = vpack.c.bf16 %v2803_v14, %v2799_v41  ;;  %5409 = vmatprep.subr.bf16.mxu0 %v8127_v42  ;;  %v9075_v22 = vpack.c.bf16 %v3142_v52, %v3138_v15  ;;  %5635 = vmatprep.subr.bf16.mxu1 %v8130_v43  ;;  %v9916_v42 = vld [vmem:[#allocation24_spill] sm:$0xff]  ;;  %v8160_v39 = vld [vmem:[#allocation7 + $0x21c] ss:$24 sps:$4 sm:$0xff]   ;;  %v8158_v15 = vld [vmem:[#allocation7 + $0x218] ss:$24 sps:$4 sm:$0xff]  }
 0x1f9   :  { %3504 = vmatmul.mubr.bf16.gmra.mrb[44].mxu0 %v9912_v24  ;;  %3843 = vmatmul.mubr.bf16.gmra.mrb[44].mxu1 %v9912_v24  ;;  %v8155_v41 = vld [vmem:[#allocation7 + $0x210] ss:$24 sps:$4 sm:$0xff]   ;;  %v8163_v2 = vld [vmem:[#allocation7 + $0x244] ss:$24 sps:$4 sm:$0xff]  }
 0x1fa   :  { %3513 = vmatprep.mubr.bf16.mxu0 %v9913_v23  ;;  %3852 = vmatprep.mubr.bf16.mxu1 %v9913_v23  ;;  %v8161_v23 = vld [vmem:[#allocation7 + $0x240] ss:$24 sps:$4 sm:$0xff]  }
 0x1fb   :  { %5410 = vmatpush1.bf16.msra.mxu0 %v8125_v57  ;;  %5636 = vmatpush1.bf16.msra.mxu1 %v8128_v62  ;;  %v8166_v57 = vld [vmem:[#allocation7 + $0x24c] ss:$24 sps:$4 sm:$0xff]  }
 0x1fc   :  { %v2807_v21 = vpop.f32.mrb[4].mxu0  ;;  %5411 = vmatprep.subr.bf16.mxu0 %v8133_v38  ;;  %v3146_v33 = vpop.f32.mrb[4].mxu1  ;;  %5637 = vmatprep.subr.bf16.mxu1 %v8136_v11 }
 0x1fd   :  { %v2809_v44 = vpop.f32.mrb[5].mxu0  ;;  %v3148_v35 = vpop.f32.mrb[5].mxu1 }
 0x1fe   :  { %v2811_v5 = vpop.f32.mrb[6].mxu0  ;;  %v3150_v31 = vpop.f32.mrb[6].mxu1 }
 0x1ff   :  { %v9081_v9 = vpack.c.bf16 %v2811_v5, %v2807_v21  ;;  %v2813_v50 = vpop.f32.mrb[7].mxu0  ;;  %5412 = vmatpush1.bf16.msra.mxu0 %v8131_v4  ;;  %v9083_v46 = vpack.c.bf16 %v3150_v31, %v3146_v33  ;;  %v3152_v54 = vpop.f32.mrb[7].mxu1  ;;  %5638 = vmatpush1.bf16.msra.mxu1 %v8134_v29  ;;  %v8164_v29 = vld [vmem:[#allocation7 + $0x248] ss:$24 sps:$4 sm:$0xff]   ;;  %v8170_v5 = vld [vmem:[#allocation7 + $0x278] ss:$24 sps:$4 sm:$0xff]  }
 0x200   :  { %v9085_v19 = vpack.c.bf16 %v2813_v50, %v2809_v44  ;;  %5413 = vmatprep.subr.bf16.mxu0 %v8139_v6  ;;  %v9087_v37 = vpack.c.bf16 %v3152_v54, %v3148_v35  ;;  %5639 = vmatprep.subr.bf16.mxu1 %v8142_v56  ;;  %v8169_v6 = vld [vmem:[#allocation7 + $0x274] ss:$24 sps:$4 sm:$0xff]   ;;  %v8167_v56 = vld [vmem:[#allocation7 + $0x270] ss:$24 sps:$4 sm:$0xff]  }
 0x201   :  { %3514 = vmatmul.mubr.bf16.gmra.mrb[48].mxu0 %v9914_v27  ;;  %3853 = vmatmul.mubr.bf16.gmra.mrb[48].mxu1 %v9914_v27  ;;  %v8172_v44 = vld [vmem:[#allocation7 + $0x27c] ss:$24 sps:$4 sm:$0xff]  }
 0x202   :  { %3523 = vmatprep.mubr.bf16.mxu0 %v9915_v47  ;;  %3862 = vmatprep.mubr.bf16.mxu1 %v9915_v47 }
 0x203   :  { %5414 = vmatpush1.bf16.msra.mxu0 %v8137_v49  ;;  %5640 = vmatpush1.bf16.msra.mxu1 %v8140_v26 }
 0x204   :  { %v2817_v20 = vpop.f32.mrb[8].mxu0  ;;  %5415 = vmatprep.subr.bf16.mxu0 %v8145_v12  ;;  %v3156_v53 = vpop.f32.mrb[8].mxu1  ;;  %5641 = vmatprep.subr.bf16.mxu1 %v8148_v13 }
 0x205   :  { %v2819_v8 = vpop.f32.mrb[9].mxu0  ;;  %v3158_v58 = vpop.f32.mrb[9].mxu1 }
 0x206   :  { %v2821_v28 = vpop.f32.mrb[10].mxu0  ;;  %v3160_v45 = vpop.f32.mrb[10].mxu1 }
 0x207   :  { %v9093_v51 = vpack.c.bf16 %v2821_v28, %v2817_v20  ;;  %v2823_v34 = vpop.f32.mrb[11].mxu0  ;;  %5416 = vmatpush1.bf16.msra.mxu0 %v8143_v7  ;;  %v9095_v25 = vpack.c.bf16 %v3160_v45, %v3156_v53  ;;  %v3162_v18 = vpop.f32.mrb[11].mxu1  ;;  %5642 = vmatpush1.bf16.msra.mxu1 %v8146_v3 }
 0x208   :  { %v9097_v63 = vpack.c.bf16 %v2823_v34, %v2819_v8  ;;  %5417 = vmatprep.subr.bf16.mxu0 %v8151_v40  ;;  %v9099_v17 = vpack.c.bf16 %v3162_v18, %v3158_v58  ;;  %5643 = vmatprep.subr.bf16.mxu1 %v8154_v36 }
 0x209   :  { %3524 = vmatmul.mubr.bf16.gmra.mrb[52].mxu0 %v9916_v42  ;;  %3863 = vmatmul.mubr.bf16.gmra.mrb[52].mxu1 %v9916_v42 }
 0x20a   :  { %3533 = vmatprep.mubr.bf16.mxu0 %v8973_v16  ;;  %3872 = vmatprep.mubr.bf16.mxu1 %v8973_v16 }
 0x20b   :  { %5418 = vmatpush1.bf16.msra.mxu0 %v8149_v59  ;;  %5644 = vmatpush1.bf16.msra.mxu1 %v8152_v55 }
 0x20c   :  { %v2827_v43 = vpop.f32.mrb[12].mxu0  ;;  %5419 = vmatprep.subr.bf16.mxu0 %v8157_v30  ;;  %v3166_v60 = vpop.f32.mrb[12].mxu1  ;;  %5645 = vmatprep.subr.bf16.mxu1 %v8160_v39 }
 0x20d   :  { %v2829_v14 = vpop.f32.mrb[13].mxu0  ;;  %v3168_v52 = vpop.f32.mrb[13].mxu1 }
 0x20e   :  { %v2831_v62 = vpop.f32.mrb[14].mxu0  ;;  %v3170_v24 = vpop.f32.mrb[14].mxu1 }
 0x20f   :  { %v9105_v38 = vpack.c.bf16 %v2831_v62, %v2827_v43  ;;  %v2833_v11 = vpop.f32.mrb[15].mxu0  ;;  %5420 = vmatpush1.bf16.msra.mxu0 %v8155_v41  ;;  %v9107_v16 = vpack.c.bf16 %v3170_v24, %v3166_v60  ;;  %v3172_v21 = vpop.f32.mrb[15].mxu1  ;;  %5646 = vmatpush1.bf16.msra.mxu1 %v8158_v15 }
 0x210   :  { %v9109_v4 = vpack.c.bf16 %v2833_v11, %v2829_v14  ;;  %5421 = vmatprep.subr.bf16.mxu0 %v8163_v2  ;;  %v9111_v33 = vpack.c.bf16 %v3172_v21, %v3168_v52  ;;  %5647 = vmatprep.subr.bf16.mxu1 %v8166_v57 }
 0x211   :  { %3534 = vmatmul.mubr.bf16.gmra.mrb[56].mxu0 %v8979_v32  ;;  %3873 = vmatmul.mubr.bf16.gmra.mrb[56].mxu1 %v8979_v32 }
 0x212   :  { %3543 = vmatprep.mubr.bf16.mxu0 %v8981_v1  ;;  %3882 = vmatprep.mubr.bf16.mxu1 %v8981_v1 }
 0x213   :  { %5422 = vmatpush1.bf16.msra.mxu0 %v8161_v23  ;;  %5648 = vmatpush1.bf16.msra.mxu1 %v8164_v29 }
 0x214   :  { %v2837_v35 = vpop.f32.mrb[16].mxu0  ;;  %5423 = vmatprep.subr.bf16.mxu0 %v8169_v6  ;;  %v3176_v31 = vpop.f32.mrb[16].mxu1  ;;  %5649 = vmatprep.subr.bf16.mxu1 %v8172_v44 }
 0x215   :  { %v2839_v50 = vpop.f32.mrb[17].mxu0  ;;  %v3178_v49 = vpop.f32.mrb[17].mxu1 }
 0x216   :  { %v2841_v54 = vpop.f32.mrb[18].mxu0  ;;  %v3180_v12 = vpop.f32.mrb[18].mxu1 }
 0x217   :  { %v9117_v26 = vpack.c.bf16 %v2841_v54, %v2837_v35  ;;  %v2843_v27 = vpop.f32.mrb[19].mxu0  ;;  %5424 = vmatpush1.bf16.msra.mxu0 %v8167_v56  ;;  %v9119_v32 = vpack.c.bf16 %v3180_v12, %v3176_v31  ;;  %v3182_v13 = vpop.f32.mrb[19].mxu1  ;;  %5650 = vmatpush1.bf16.msra.mxu1 %v8170_v5  ;;  %v8173_v5 = vld [vmem:[#allocation7 + $0x2a0] ss:$24 sps:$4 sm:$0xff]   ;;  %v8175_v31 = vld [vmem:[#allocation7 + $0x2a4] ss:$24 sps:$4 sm:$0xff]  }
 0x218   :  { %v9121_v1 = vpack.c.bf16 %v2843_v27, %v2839_v50  ;;  %v9124_v47 = vpack.c.bf16 %v3182_v13, %v3178_v49  ;;  %v8176_v50 = vld [vmem:[#allocation7 + $0x2a8] ss:$24 sps:$4 sm:$0xff]   ;;  %v8178_v49 = vld [vmem:[#allocation7 + $0x2ac] ss:$24 sps:$4 sm:$0xff]   ;;  %5425 = vmatprep.subr.bf16.mxu0 %v8175_v31  ;;  %v8182_v27 = vld [vmem:[#allocation7 + $0x2d8] ss:$24 sps:$4 sm:$0xff]  }
 0x219   :  { %3544 = vmatmul.mubr.bf16.gmra.mrb[60].mxu0 %v8987_v0  ;;  %3883 = vmatmul.mubr.bf16.gmra.mrb[60].mxu1 %v8987_v0  ;;  %v8179_v54 = vld [vmem:[#allocation7 + $0x2d0] ss:$24 sps:$4 sm:$0xff]   ;;  %v8181_v12 = vld [vmem:[#allocation7 + $0x2d4] ss:$24 sps:$4 sm:$0xff]  }
 0x21a   :  { %5651 = vmatprep.subr.bf16.mxu1 %v8178_v49  ;;  %v8184_v13 = vld [vmem:[#allocation7 + $0x2dc] ss:$24 sps:$4 sm:$0xff]  }
 0x21b   :  { %5426 = vmatpush1.bf16.msra.mxu0 %v8173_v5  ;;  %5652 = vmatpush1.bf16.msra.mxu1 %v8176_v50  ;;  %v7237_v5 = vmul.bf16 3216621497, %v9109_v4  ;;  %v7239_v50 = vmul.bf16 3216621497, %v9111_v33 }
 0x21c   :  { %v2847_v7 = vpop.f32.mrb[20].mxu0  ;;  %v3186_v20 = vpop.f32.mrb[20].mxu1  ;;  %5427 = vmatprep.subr.bf16.mxu0 %v8181_v12  ;;  %5653 = vmatprep.subr.bf16.mxu1 %v8184_v13 }
 0x21d   :  { %v2849_v3 = vpop.f32.mrb[21].mxu0  ;;  %v3188_v40 = vpop.f32.mrb[21].mxu1 }
 0x21e   :  { %v2851_v53 = vpop.f32.mrb[22].mxu0  ;;  %v3190_v36 = vpop.f32.mrb[22].mxu1 }
 0x21f   :  { %v9127_v8 = vpack.c.bf16 %v2851_v53, %v2847_v7  ;;  %v2853_v58 = vpop.f32.mrb[23].mxu0  ;;  %v9129_v28 = vpack.c.bf16 %v3190_v36, %v3186_v20  ;;  %v3192_v45 = vpop.f32.mrb[23].mxu1  ;;  %5428 = vmatpush1.bf16.msra.mxu0 %v8179_v54  ;;  %v8187_v7 = vld [vmem:[#allocation7 + $0x304] ss:$24 sps:$4 sm:$0xff]   ;;  %5654 = vmatpush1.bf16.msra.mxu1 %v8182_v27  ;;  %v7225_v53 = vmul.bf16 3216621497, %v9073_v48 }
 0x220   :  { %v9131_v34 = vpack.c.bf16 %v2853_v58, %v2849_v3  ;;  %v9133_v59 = vpack.c.bf16 %v3192_v45, %v3188_v40  ;;  %v8190_v20 = vld [vmem:[#allocation7 + $0x30c] ss:$24 sps:$4 sm:$0xff]   ;;  %5510 = vmatprep.subr.bf16.mxu0 %v8187_v7  ;;  %v7224_v3 = vmul.bf16 3216621497, %v9069_v10  ;;  %v7226_v40 = vmul.bf16 3216621497, %v9071_v61 }
 0x221   :  { %5736 = vmatprep.subr.bf16.mxu1 %v8190_v20  ;;  %v7227_v36 = vmul.bf16 3216621497, %v9075_v22  ;;  %v7228_v58 = vmul.bf16 3216621497, %v9081_v9  ;;  %v7230_v45 = vmul.bf16 3216621497, %v9083_v46 }
 0x222   :  { %8425 = vpow.bf16 %v7224_v3 }
 0x223   :  { %8427 = vpow.bf16 %v7226_v40 }
 0x224   :  { %v2857_v18 = vpop.f32.mrb[24].mxu0  ;;  %v3196_v55 = vpop.f32.mrb[24].mxu1  ;;  %8429 = vpow.bf16 %v7225_v53 }
 0x225   :  { %v2859_v30 = vpop.f32.mrb[25].mxu0  ;;  %v3198_v0 = vpop.f32.mrb[25].mxu1  ;;  %8431 = vpow.bf16 %v7227_v36 }
 0x226   :  { %v2861_v42 = vpop.f32.mrb[26].mxu0  ;;  %v3200_v41 = vpop.f32.mrb[26].mxu1  ;;  %8433 = vpow.bf16 %v7228_v58 }
 0x227   :  { %v9135_v39 = vpack.c.bf16 %v2861_v42, %v2857_v18  ;;  %v2863_v43 = vpop.f32.mrb[27].mxu0  ;;  %v9137_v15 = vpack.c.bf16 %v3200_v41, %v3196_v55  ;;  %v3202_v60 = vpop.f32.mrb[27].mxu1  ;;  %v7229_v18 = vmul.bf16 3216621497, %v9085_v19  ;;  %v7231_v55 = vmul.bf16 3216621497, %v9087_v37 }
 0x228   :  { %v9139_v2 = vpack.c.bf16 %v2863_v43, %v2859_v30  ;;  %v9141_v14 = vpack.c.bf16 %v3202_v60, %v3198_v0  ;;  %v7232_v30 = vmul.bf16 3216621497, %v9093_v51  ;;  %8435 = vpow.bf16 %v7230_v45 }
 0x229   :  { %v7234_v0 = vmul.bf16 3216621497, %v9095_v25  ;;  %8437 = vpow.bf16 %v7229_v18  ;;  %v7233_v42 = vmul.bf16 3216621497, %v9097_v63  ;;  %v7235_v43 = vmul.bf16 3216621497, %v9099_v17 }
 0x22a   :  { %8439 = vpow.bf16 %v7231_v55 }
 0x22b   :  { %8441 = vpow.bf16 %v7232_v30 }
 0x22c   :  { %v2867_v57 = vpop.f32.mrb[28].mxu0  ;;  %v3206_v52 = vpop.f32.mrb[28].mxu1  ;;  %8443 = vpow.bf16 %v7234_v0 }
 0x22d   :  { %v2869_v62 = vpop.f32.mrb[29].mxu0  ;;  %v3208_v24 = vpop.f32.mrb[29].mxu1  ;;  %8445 = vpow.bf16 %v7233_v42  ;;  %v7240_v42 = vmul.bf16 3216621497, %v9117_v26 }
 0x22e   :  { %v2871_v11 = vpop.f32.mrb[30].mxu0  ;;  %v3210_v21 = vpop.f32.mrb[30].mxu1  ;;  %8447 = vpow.bf16 %v7235_v43  ;;  %v7242_v43 = vmul.bf16 3216621497, %v9119_v32 }
 0x22f   :  { %v9143_v23 = vpack.c.bf16 %v2871_v11, %v2867_v57  ;;  %v2873_v29 = vpop.f32.mrb[31].mxu0  ;;  %v9145_v6 = vpack.c.bf16 %v3210_v21, %v3206_v52  ;;  %v3212_v56 = vpop.f32.mrb[31].mxu1  ;;  %v7236_v11 = vmul.bf16 3216621497, %v9105_v38 }
 0x230   :  { %v9147_v44 = vpack.c.bf16 %v2873_v29, %v2869_v62  ;;  %v9149_v35 = vpack.c.bf16 %v3212_v56, %v3208_v24  ;;  %v8426_v41 = vpop.eup %8425  ;;  %v7238_v29 = vmul.bf16 3216621497, %v9107_v16 }
 0x231   :  { %v8428_v60 = vpop.eup %8427  ;;  %v4085_v52 = vadd.bf16 1065369472, %v8426_v41 }
 0x232   :  { %v8430_v57 = vpop.eup %8429  ;;  %v4087_v62 = vadd.bf16 1065369472, %v8428_v60 }
 0x233   :  { %v4086_v24 = vadd.bf16 1065369472, %v8430_v57  ;;  %v8432_v21 = vpop.eup %8431  ;;  %8449 = vrcp.bf16 %v4085_v52  ;;  %v7241_v57 = vmul.bf16 3216621497, %v9121_v1 }
 0x234   :  { %v8434_v56 = vpop.eup %8433  ;;  %8451 = vrcp.bf16 %v4087_v62  ;;  %v4088_v54 = vadd.bf16 1065369472, %v8432_v21 }
 0x235   :  { %v8436_v31 = vpop.eup %8435  ;;  %8453 = vrcp.bf16 %v4086_v24  ;;  %v4089_v27 = vadd.bf16 1065369472, %v8434_v56  ;;  %v7243_v24 = vmul.bf16 3216621497, %v9124_v47 }
 0x236   :  { %v8438_v49 = vpop.eup %8437  ;;  %8455 = vpow.bf16 %v7236_v11  ;;  %v4091_v7 = vadd.bf16 1065369472, %v8436_v31 }
 0x237   :  { %v8440_v12 = vpop.eup %8439  ;;  %8457 = vpow.bf16 %v7238_v29  ;;  %v4090_v3 = vadd.bf16 1065369472, %v8438_v49 }
 0x238   :  { %v8442_v13 = vpop.eup %8441  ;;  %8459 = vpow.bf16 %v7237_v5  ;;  %v4092_v53 = vadd.bf16 1065369472, %v8440_v12 }
 0x239   :  { %v8444_v20 = vpop.eup %8443  ;;  %8461 = vpow.bf16 %v7239_v50  ;;  %v4093_v58 = vadd.bf16 1065369472, %v8442_v13 }
 0x23a   :  { %v8446_v40 = vpop.eup %8445  ;;  %8463 = vrcp.bf16 %v4088_v54  ;;  %v4095_v45 = vadd.bf16 1065369472, %v8444_v20  ;;  %v7244_v20 = vmul.bf16 3216621497, %v9127_v8 }
 0x23b   :  { %v8448_v36 = vpop.eup %8447  ;;  %8465 = vrcp.bf16 %v4089_v27  ;;  %v4094_v18 = vadd.bf16 1065369472, %v8446_v40  ;;  %v7246_v40 = vmul.bf16 3216621497, %v9129_v28 }
 0x23c   :  { %8467 = vrcp.bf16 %v4091_v7  ;;  %v4096_v30 = vadd.bf16 1065369472, %v8448_v36 }
 0x23d   :  { %8469 = vrcp.bf16 %v4090_v3 }
 0x23e   :  { %v8450_v55 = vpop.eup %8449  ;;  %8471 = vrcp.bf16 %v4092_v53 }
 0x23f   :  { %v8452_v0 = vpop.eup %8451  ;;  %8473 = vrcp.bf16 %v4093_v58  ;;  %v4118_v31 = vmul.bf16 1065369472, %v8450_v55 }
 0x240   :  { %v8454_v41 = vpop.eup %8453  ;;  %8475 = vrcp.bf16 %v4095_v45  ;;  %v4122_v50 = vmul.bf16 1065369472, %v8452_v0 }
 0x241   :  { %v8456_v60 = vpop.eup %8455  ;;  %8477 = vrcp.bf16 %v4094_v18  ;;  %v4120_v12 = vmul.bf16 1065369472, %v8454_v41  ;;  %v4181_v36 = vmul.bf16 %v4118_v31, %v9069_v10 }
 0x242   :  { %v8458_v52 = vpop.eup %8457  ;;  %8479 = vrcp.bf16 %v4096_v30  ;;  %v4097_v21 = vadd.bf16 1065369472, %v8456_v60  ;;  %v4183_v58 = vmul.bf16 %v4122_v50, %v9071_v61 }
 0x243   :  { %v8460_v62 = vpop.eup %8459  ;;  %8481 = vpow.bf16 %v7240_v42  ;;  %v4099_v56 = vadd.bf16 1065369472, %v8458_v52  ;;  %v4182_v55 = vmul.bf16 %v4120_v12, %v9073_v48  ;;  %v7245_v48 = vmul.bf16 3216621497, %v9131_v34  ;;  %v8196_v12 = vld [vmem:[#allocation7 + $0x33c] ss:$24 sps:$4 sm:$0xff]  }
 0x244   :  { %v8462_v11 = vpop.eup %8461  ;;  %8483 = vpow.bf16 %v7242_v43  ;;  %v4098_v49 = vadd.bf16 1065369472, %v8460_v62 }
 0x245   :  { %v8464_v29 = vpop.eup %8463  ;;  %8485 = vpow.bf16 %v7241_v57  ;;  %v4100_v27 = vadd.bf16 1065369472, %v8462_v11 }
 0x246   :  { %v9171_v5 = vpop.eup %8465  ;;  %8487 = vpow.bf16 %v7243_v24  ;;  %v4124_v7 = vmul.bf16 1065369472, %v8464_v29  ;;  %v7247_v24 = vmul.bf16 3216621497, %v9133_v59 }
 0x247   :  { %v9173_v54 = vpop.eup %8467  ;;  %8489 = vrcp.bf16 %v4097_v21  ;;  %v4126_v30 = vmul.bf16 1065369472, %v9171_v5 }
 0x248   :  { %v9175_v13 = vpop.eup %8469  ;;  %8491 = vrcp.bf16 %v4099_v56  ;;  %v4130_v0 = vmul.bf16 1065369472, %v9173_v54  ;;  %v4184_v60 = vmul.bf16 %v4124_v7, %v9075_v22 }
 0x249   :  { %v9178_v3 = vpop.eup %8471  ;;  %8493 = vrcp.bf16 %v4098_v49  ;;  %v4128_v10 = vmul.bf16 1065369472, %v9175_v13 }
 0x24a   :  { %v9181_v53 = vpop.eup %8473  ;;  %8495 = vrcp.bf16 %v4100_v27  ;;  %v4132_v61 = vmul.bf16 1065369472, %v9178_v3  ;;  %v7248_v27 = vmul.bf16 3216621497, %v9135_v39  ;;  %v7250_v3 = vmul.bf16 3216621497, %v9137_v15 }
 0x24b   :  { %v9185_v18 = vpop.eup %8475  ;;  %8497 = vpow.bf16 %v7244_v20 }
 0x24c   :  { %v9190_v43 = vpop.eup %8477  ;;  %8499 = vpow.bf16 %v7246_v40  ;;  %v4188_v22 = vmul.bf16 %v4132_v61, %v9087_v37 }
 0x24d   :  { %v9195_v62 = vpop.eup %8479  ;;  %8501 = vpow.bf16 %v7245_v48 }
 0x24e   :  { %v8482_v56 = vpop.eup %8481  ;;  %8503 = vpow.bf16 %v7247_v24 }
 0x24f   :  { %v9201_v54 = vpop.eup %8483  ;;  %8505 = vpow.bf16 %v7248_v27 }
 0x250   :  { %v9207_v20 = vpop.eup %8485  ;;  %8507 = vpow.bf16 %v7250_v3  ;;  %v7251_v3 = vmul.bf16 3216621497, %v9141_v14 }
 0x251   :  { %v9216_v5 = vpop.eup %8487 }
 0x2b4   :  { %v3475_v45 = vpop.f32.mrb[32].mxu0  ;;  %v3814_v42 = vpop.f32.mrb[32].mxu1 }
 0x2b5   :  { %v3477_v41 = vpop.f32.mrb[33].mxu0  ;;  %v3816_v57 = vpop.f32.mrb[33].mxu1 }
 0x2b6   :  { %v3479_v52 = vpop.f32.mrb[34].mxu0  ;;  %v3818_v21 = vpop.f32.mrb[34].mxu1 }
 0x2b7   :  { %v3925_v11 = vpack.c.bf16 %v3479_v52, %v3475_v45  ;;  %v3481_v29 = vpop.f32.mrb[35].mxu0  ;;  %v3927_v31 = vpack.c.bf16 %v3818_v21, %v3814_v42  ;;  %v3820_v49 = vpop.f32.mrb[35].mxu1  ;;  %v8185_v42 = vld [vmem:[#allocation7 + $0x300] ss:$24 sps:$4 sm:$0xff]   ;;  %v4101_v52 = vadd.bf16 1065369472, %v8482_v56 }
 0x2b8   :  { %v3926_v50 = vpack.c.bf16 %v3481_v29, %v3477_v41  ;;  %v3928_v7 = vpack.c.bf16 %v3820_v49, %v3816_v57  ;;  %v8188_v41 = vld [vmem:[#allocation7 + $0x308] ss:$24 sps:$4 sm:$0xff]   ;;  %v8193_v29 = vld [vmem:[#allocation7 + $0x334] ss:$24 sps:$4 sm:$0xff]   ;;  %v7249_v57 = vmul.bf16 3216621497, %v9139_v2 }
 0x2b9   :  { %v9205_v13 = vmul.bf16 %v4181_v36, %v3925_v11  ;;  %v9210_v40 = vmul.bf16 %v4183_v58, %v3927_v31  ;;  %v9222_v58 = vpop.eup %8489  ;;  %v4185_v31 = vmul.bf16 %v4126_v30, %v9081_v9  ;;  %v4186_v36 = vmul.bf16 %v4128_v10, %v9085_v19  ;;  %v8199_v9 = vld [vmem:[#allocation7 + $0x364] ss:$24 sps:$4 sm:$0xff]  }
 0x2ba   :  { %v9212_v45 = vmul.bf16 %v4182_v55, %v3926_v50  ;;  %v9214_v21 = vmul.bf16 %v4184_v60, %v3928_v7  ;;  %v4103_v55 = vadd.bf16 1065369472, %v9201_v54  ;;  %v4102_v60 = vadd.bf16 1065369472, %v9207_v20  ;;  %v9228_v24 = vpop.eup %8491  ;;  %v8191_v54 = vld [vmem:[#allocation7 + $0x330] ss:$24 sps:$4 sm:$0xff]  }
 0x2bb   :  { %9917 = vst [vmem:[#allocation16_spill] sm:$0xff] %v9205_v13  ;;  %9918 = vst [vmem:[#allocation17_spill] sm:$0xff] %v9210_v40  ;;  %v4187_v50 = vmul.bf16 %v4130_v0, %v9083_v46  ;;  %v8194_v20 = vld [vmem:[#allocation7 + $0x338] ss:$24 sps:$4 sm:$0xff]   ;;  %v9232_v27 = vpop.eup %8493  ;;  %8509 = vrcp.bf16 %v4101_v52  ;;  %v8202_v46 = vld [vmem:[#allocation7 + $0x36c] ss:$24 sps:$4 sm:$0xff]  }
 0x2bc   :  { %9919 = vst [vmem:[#allocation18_spill] sm:$0xff] %v9212_v45  ;;  %9920 = vst [vmem:[#allocation19_spill] sm:$0xff] %v9214_v21  ;;  %v3485_v11 = vpop.f32.mrb[36].mxu0  ;;  %5429 = vmatprep.mubr.bf16.mxu0 %v9212_v45  ;;  %5655 = vmatprep.mubr.bf16.mxu1 %v9212_v45  ;;  %v3824_v48 = vpop.f32.mrb[36].mxu1  ;;  %v4104_v0 = vadd.bf16 1065369472, %v9216_v5  ;;  %8511 = vrcp.bf16 %v4103_v55 }
 0x2bd   :  { %v3487_v56 = vpop.f32.mrb[37].mxu0  ;;  %5430 = vmatmul.mubr.bf16.vlgmr.msra.gmra.mrb[64].mxu0 %v9205_v13  ;;  %5656 = vmatmul.mubr.bf16.vlgmr.msra.gmra.mrb[64].mxu1 %v9205_v13  ;;  %v3826_v49 = vpop.f32.mrb[37].mxu1  ;;  %v4142_v37 = vmul.bf16 1065369472, %v9222_v58  ;;  %v4146_v10 = vmul.bf16 1065369472, %v9228_v24  ;;  %8513 = vrcp.bf16 %v4102_v60 }
 0x2be   :  { %v3489_v7 = vpop.f32.mrb[38].mxu0  ;;  %5511 = vmatpush1.bf16.msra.mxu0 %v8185_v42  ;;  %5737 = vmatpush1.bf16.msra.mxu1 %v8188_v41  ;;  %v3828_v45 = vpop.f32.mrb[38].mxu1  ;;  %8515 = vpow.bf16 %v7249_v57  ;;  %v7254_v55 = vmul.bf16 3216621497, %v9145_v6  ;;  %v9921_v57 = vmul.bf16 1065369472, %v9181_v53 }
 0x2bf   :  { %v3929_v13 = vpack.c.bf16 %v3489_v7, %v3485_v11  ;;  %v3491_v40 = vpop.f32.mrb[39].mxu0  ;;  %5512 = vmatprep.subr.bf16.mxu0 %v8193_v29  ;;  %5738 = vmatprep.subr.bf16.mxu1 %v8196_v12  ;;  %v9236_v30 = vpop.eup %8495  ;;  %v3931_v42 = vpack.c.bf16 %v3828_v45, %v3824_v48  ;;  %v8200_v45 = vld [vmem:[#allocation7 + $0x368] ss:$24 sps:$4 sm:$0xff]   ;;  %v7252_v48 = vmul.bf16 3216621497, %v9143_v23  ;;  %8517 = vpow.bf16 %v7251_v3 }
 0x2c0   :  { %v3930_v41 = vpack.c.bf16 %v3491_v40, %v3487_v56  ;;  %v3830_v21 = vpop.f32.mrb[39].mxu1  ;;  %v9240_v19 = vpop.eup %8497  ;;  %v8197_v40 = vld [vmem:[#allocation7 + $0x360] ss:$24 sps:$4 sm:$0xff]   ;;  %8519 = vrcp.bf16 %v4104_v0  ;;  %v8203_v3 = vld [vmem:[#allocation7 + $0x390] ss:$24 sps:$4 sm:$0xff]  }
 0x2c1   :  { %v9244_v61 = vmul.bf16 %v4185_v31, %v3929_v13  ;;  %v3932_v12 = vpack.c.bf16 %v3830_v21, %v3826_v49  ;;  %v9246_v52 = vpop.eup %8499  ;;  %v9249_v5 = vmul.bf16 %v4187_v50, %v3931_v42  ;;  %v8205_v13 = vld [vmem:[#allocation7 + $0x394] ss:$24 sps:$4 sm:$0xff]   ;;  %v4105_v60 = vadd.bf16 1065369472, %v9240_v19 }
 0x2c2   :  { %v9251_v11 = vmul.bf16 %v4186_v36, %v3930_v41  ;;  %5513 = vmatpush1.bf16.msra.mxu0 %v8191_v54  ;;  %5739 = vmatpush1.bf16.msra.mxu1 %v8194_v20  ;;  %v8208_v21 = vld [vmem:[#allocation7 + $0x39c] ss:$24 sps:$4 sm:$0xff]   ;;  %v4107_v50 = vadd.bf16 1065369472, %v9246_v52  ;;  %v8502_v7 = vpop.eup %8501  ;;  %v4189_v54 = vmul.bf16 %v9921_v57, %v9093_v51  ;;  %v9922_v20 = vmul.bf16 1065369472, %v9185_v18 }
 0x2c3   :  { %v9254_v56 = vmul.bf16 %v4188_v22, %v3932_v12  ;;  %5514 = vmatprep.subr.bf16.mxu0 %v8199_v9  ;;  %5740 = vmatprep.subr.bf16.mxu1 %v8202_v46  ;;  %v8206_v41 = vld [vmem:[#allocation7 + $0x398] ss:$24 sps:$4 sm:$0xff]   ;;  %v8504_v19 = vpop.eup %8503  ;;  %v9923_v12 = vmul.bf16 1065369472, %v9190_v43  ;;  %v9924_v53 = vmul.bf16 1065369472, %v9195_v62  ;;  %8521 = vpow.bf16 %v7252_v48 }
 0x2c4   :  { %v3495_v36 = vpop.f32.mrb[40].mxu0  ;;  %5439 = vmatprep.mubr.bf16.mxu0 %v9251_v11  ;;  %5665 = vmatprep.mubr.bf16.mxu1 %v9251_v11  ;;  %v3834_v22 = vpop.f32.mrb[40].mxu1  ;;  %v4191_v9 = vmul.bf16 %v9922_v20, %v9095_v25  ;;  %v8211_v25 = vld [vmem:[#allocation7 + $0x3c4] ss:$24 sps:$4 sm:$0xff]   ;;  %8523 = vpow.bf16 %v7254_v55  ;;  %v9928_v58 = vmul.bf16 1065369472, %v9236_v30 }
 0x2c5   :  { %v3497_v49 = vpop.f32.mrb[41].mxu0  ;;  %5440 = vmatmul.mubr.bf16.gmra.mrb[68].mxu0 %v9244_v61  ;;  %5666 = vmatmul.mubr.bf16.gmra.mrb[68].mxu1 %v9244_v61  ;;  %v3836_v46 = vpop.f32.mrb[41].mxu1  ;;  %v4190_v52 = vmul.bf16 %v9923_v12, %v9097_v63  ;;  %v4192_v51 = vmul.bf16 %v9924_v53, %v9099_v17  ;;  %v8214_v0 = vld [vmem:[#allocation7 + $0x3cc] ss:$24 sps:$4 sm:$0xff]   ;;  %v7255_v17 = vmul.bf16 3216621497, %v9149_v35  ;;  %8525 = vrcp.bf16 %v4105_v60 }
 0x2c6   :  { %v3499_v42 = vpop.f32.mrb[42].mxu0  ;;  %5515 = vmatpush1.bf16.msra.mxu0 %v8197_v40  ;;  %5741 = vmatpush1.bf16.msra.mxu1 %v8200_v45  ;;  %v3838_v31 = vpop.f32.mrb[42].mxu1  ;;  %v7253_v45 = vmul.bf16 3216621497, %v9147_v44  ;;  %8527 = vrcp.bf16 %v4107_v50  ;;  %v8215_v53 = vld [vmem:[#allocation7 + $0x3f0] ss:$24 sps:$4 sm:$0xff]  }
 0x2c7   :  { %v3933_v57 = vpack.c.bf16 %v3499_v42, %v3495_v36  ;;  %v3501_v18 = vpop.f32.mrb[43].mxu0  ;;  %5516 = vmatprep.subr.bf16.mxu0 %v8205_v13  ;;  %5742 = vmatprep.subr.bf16.mxu1 %v8208_v21  ;;  %v9276_v40 = vpop.eup %8505  ;;  %v3935_v20 = vpack.c.bf16 %v3838_v31, %v3834_v22  ;;  %v4106_v21 = vadd.bf16 1065369472, %v8502_v7  ;;  %v8209_v31 = vld [vmem:[#allocation7 + $0x3c0] ss:$24 sps:$4 sm:$0xff]  }
 0x2c8   :  { %v3934_v29 = vpack.c.bf16 %v3501_v18, %v3497_v49  ;;  %v3840_v43 = vpop.f32.mrb[43].mxu1  ;;  %v9279_v63 = vpop.eup %8507  ;;  %v8212_v22 = vld [vmem:[#allocation7 + $0x3c8] ss:$24 sps:$4 sm:$0xff]   ;;  %v4108_v49 = vadd.bf16 1065369472, %v8504_v19  ;;  %8529 = vpow.bf16 %v7253_v45 }
 0x2c9   :  { %v9282_v62 = vmul.bf16 %v4189_v54, %v3933_v57  ;;  %v3936_v36 = vpack.c.bf16 %v3840_v43, %v3836_v46  ;;  %v9284_v13 = vpop.eup %8509  ;;  %v9286_v42 = vmul.bf16 %v4191_v9, %v3935_v20  ;;  %v8217_v54 = vld [vmem:[#allocation7 + $0x3f4] ss:$24 sps:$4 sm:$0xff]   ;;  %v4109_v60 = vadd.bf16 1065369472, %v9276_v40 }
 0x2ca   :  { %v9288_v48 = vmul.bf16 %v4190_v52, %v3934_v29  ;;  %5517 = vmatpush1.bf16.msra.mxu0 %v8203_v3  ;;  %5743 = vmatpush1.bf16.msra.mxu1 %v8206_v41  ;;  %v8220_v46 = vld [vmem:[#allocation7 + $0x3fc] ss:$24 sps:$4 sm:$0xff]   ;;  %v9294_v29 = vpop.eup %8511  ;;  %8531 = vpow.bf16 %v7255_v17  ;;  %v4193_v3 = vmul.bf16 %v4142_v37, %v9105_v38  ;;  %v4195_v41 = vmul.bf16 %v4146_v10, %v9107_v16 }
 0x2cb   :  { %9925 = vst [vmem:[#allocation20_spill] sm:$0xff] %v9286_v42  ;;  %v9290_v55 = vmul.bf16 %v4192_v51, %v3936_v36  ;;  %5518 = vmatprep.subr.bf16.mxu0 %v8211_v25  ;;  %5744 = vmatprep.subr.bf16.mxu1 %v8214_v0  ;;  %v9299_v9 = vpop.eup %8513  ;;  %8533 = vrcp.bf16 %v4106_v21  ;;  %v8218_v51 = vld [vmem:[#allocation7 + $0x3f8] ss:$24 sps:$4 sm:$0xff]   ;;  %v9927_v18 = vmul.bf16 1065369472, %v9232_v27  ;;  %v4196_v38 = vmul.bf16 %v9928_v58, %v9111_v33 }
 0x2cc   :  { %v3505_v12 = vpop.f32.mrb[44].mxu0  ;;  %5449 = vmatprep.mubr.bf16.mxu0 %v9288_v48  ;;  %5675 = vmatprep.mubr.bf16.mxu1 %v9288_v48  ;;  %v3844_v7 = vpop.f32.mrb[44].mxu1  ;;  %8535 = vrcp.bf16 %v4108_v49  ;;  %v8223_v10 = vld [vmem:[#allocation7 + $0x424] ss:$24 sps:$4 sm:$0xff]   ;;  %v4150_v45 = vmul.bf16 1065369472, %v9284_v13 }
 0x2cd   :  { %9926 = vst [vmem:[#allocation21_spill] sm:$0xff] %v9290_v55  ;;  %v3507_v50 = vpop.f32.mrb[45].mxu0  ;;  %5450 = vmatmul.mubr.bf16.gmra.mrb[72].mxu0 %v9282_v62  ;;  %5676 = vmatmul.mubr.bf16.gmra.mrb[72].mxu1 %v9282_v62  ;;  %v3846_v19 = vpop.f32.mrb[45].mxu1  ;;  %v4194_v25 = vmul.bf16 %v9927_v18, %v9109_v4  ;;  %v8226_v0 = vld [vmem:[#allocation7 + $0x42c] ss:$24 sps:$4 sm:$0xff]   ;;  %8537 = vrcp.bf16 %v4109_v60 }
 0x2ce   :  { %v3509_v52 = vpop.f32.mrb[46].mxu0  ;;  %5519 = vmatpush1.bf16.msra.mxu0 %v8209_v31  ;;  %5745 = vmatpush1.bf16.msra.mxu1 %v8212_v22  ;;  %v8516_v57 = vpop.eup %8515  ;;  %v4111_v20 = vadd.bf16 1065369472, %v9279_v63  ;;  %v4154_v30 = vmul.bf16 1065369472, %v9294_v29 }
 0x2cf   :  { %v3937_v37 = vpack.c.bf16 %v3509_v52, %v3505_v12  ;;  %v3848_v24 = vpop.f32.mrb[46].mxu1  ;;  %v3511_v16 = vpop.f32.mrb[47].mxu0  ;;  %5520 = vmatprep.subr.bf16.mxu0 %v8217_v54  ;;  %5746 = vmatprep.subr.bf16.mxu1 %v8220_v46  ;;  %v4152_v33 = vmul.bf16 1065369472, %v9299_v9  ;;  %v4110_v31 = vadd.bf16 1065369472, %v8516_v57 }
 0x2d0   :  { %v8518_v40 = vpop.eup %8517  ;;  %v3939_v43 = vpack.c.bf16 %v3848_v24, %v3844_v7  ;;  %v3938_v27 = vpack.c.bf16 %v3511_v16, %v3507_v50  ;;  %v3850_v4 = vpop.f32.mrb[47].mxu1  ;;  %v8221_v13 = vld [vmem:[#allocation7 + $0x420] ss:$24 sps:$4 sm:$0xff]   ;;  %v8229_v29 = vld [vmem:[#allocation7 + $0x454] ss:$24 sps:$4 sm:$0xff]   ;;  %8539 = vrcp.bf16 %v4111_v20 }
 0x2d1   :  { %v8520_v17 = vpop.eup %8519  ;;  %v9317_v36 = vmul.bf16 %v4193_v3, %v3937_v37  ;;  %v3940_v21 = vpack.c.bf16 %v3850_v4, %v3846_v19  ;;  %v8224_v63 = vld [vmem:[#allocation7 + $0x428] ss:$24 sps:$4 sm:$0xff]   ;;  %v4112_v46 = vadd.bf16 1065369472, %v8518_v40  ;;  %v8232_v7 = vld [vmem:[#allocation7 + $0x45c] ss:$24 sps:$4 sm:$0xff]   ;;  %8541 = vrcp.bf16 %v4110_v31 }
 0x2d2   :  { %v9319_v22 = vmul.bf16 %v4195_v41, %v3939_v43  ;;  %v9321_v49 = vmul.bf16 %v4194_v25, %v3938_v27  ;;  %5521 = vmatpush1.bf16.msra.mxu0 %v8215_v53  ;;  %5747 = vmatpush1.bf16.msra.mxu1 %v8218_v51  ;;  %v9323_v54 = vpop.eup %8521  ;;  %v4156_v9 = vmul.bf16 1065369472, %v8520_v17  ;;  %v4197_v51 = vmul.bf16 %v4150_v45, %v9117_v26  ;;  %v8227_v18 = vld [vmem:[#allocation7 + $0x450] ss:$24 sps:$4 sm:$0xff]   ;;  %v8238_v26 = vld [vmem:[#allocation7 + $0x48c] ss:$24 sps:$4 sm:$0xff]  }
 0x2d3   :  { %v9325_v12 = vmul.bf16 %v4196_v38, %v3940_v21  ;;  %5522 = vmatprep.subr.bf16.mxu0 %v8223_v10  ;;  %5748 = vmatprep.subr.bf16.mxu1 %v8226_v0  ;;  %v9327_v50 = vpop.eup %8523  ;;  %v8230_v25 = vld [vmem:[#allocation7 + $0x458] ss:$24 sps:$4 sm:$0xff]   ;;  %v4199_v38 = vmul.bf16 %v4154_v30, %v9119_v32  ;;  %v4198_v37 = vmul.bf16 %v4152_v33, %v9121_v1  ;;  %8543 = vrcp.bf16 %v4112_v46  ;;  %v8235_v0 = vld [vmem:[#allocation7 + $0x484] ss:$24 sps:$4 sm:$0xff]  }
 0x2d4   :  { %9929 = vst [vmem:[#allocation22_spill] sm:$0xff] %v9319_v22  ;;  %v3515_v3 = vpop.f32.mrb[48].mxu0  ;;  %5459 = vmatprep.mubr.bf16.mxu0 %v9321_v49  ;;  %5685 = vmatprep.mubr.bf16.mxu1 %v9321_v49  ;;  %v9331_v41 = vpop.eup %8525  ;;  %v4200_v45 = vmul.bf16 %v4156_v9, %v9124_v47  ;;  %v4113_v20 = vadd.bf16 1065369472, %v9323_v54  ;;  %v4115_v1 = vadd.bf16 1065369472, %v9327_v50 }
 0x2d5   :  { %9930 = vst [vmem:[#allocation23_spill] sm:$0xff] %v9325_v12  ;;  %v3854_v19 = vpop.f32.mrb[48].mxu1  ;;  %v3517_v52 = vpop.f32.mrb[49].mxu0  ;;  %5460 = vmatmul.mubr.bf16.gmra.mrb[76].mxu0 %v9317_v36  ;;  %5686 = vmatmul.mubr.bf16.gmra.mrb[76].mxu1 %v9317_v36  ;;  %v4158_v32 = vmul.bf16 1065369472, %v9331_v41 }
 0x2d6   :  { %v9335_v53 = vpop.eup %8527  ;;  %v3856_v60 = vpop.f32.mrb[49].mxu1  ;;  %5523 = vmatpush1.bf16.msra.mxu0 %v8221_v13  ;;  %5749 = vmatpush1.bf16.msra.mxu1 %v8224_v63  ;;  %v8233_v47 = vld [vmem:[#allocation7 + $0x480] ss:$24 sps:$4 sm:$0xff]   ;;  %v8244_v50 = vld [vmem:[#allocation7 + $0x4bc] ss:$24 sps:$4 sm:$0xff]   ;;  %8545 = vrcp.bf16 %v4113_v20 }
 0x2d7   :  { %v3519_v57 = vpop.f32.mrb[50].mxu0  ;;  %v8530_v58 = vpop.eup %8529  ;;  %5524 = vmatprep.subr.bf16.mxu0 %v8229_v29  ;;  %5750 = vmatprep.subr.bf16.mxu1 %v8232_v7  ;;  %v8236_v54 = vld [vmem:[#allocation7 + $0x488] ss:$24 sps:$4 sm:$0xff]   ;;  %v8241_v7 = vld [vmem:[#allocation7 + $0x4b4] ss:$24 sps:$4 sm:$0xff]   ;;  %8547 = vrcp.bf16 %v4115_v1 }
 0x2d8   :  { %v3941_v24 = vpack.c.bf16 %v3519_v57, %v3515_v3  ;;  %v3858_v16 = vpop.f32.mrb[50].mxu1  ;;  %v3521_v10 = vpop.f32.mrb[51].mxu0  ;;  %v4114_v31 = vadd.bf16 1065369472, %v8530_v58  ;;  %v4162_v9 = vmul.bf16 1065369472, %v9335_v53  ;;  %v4201_v58 = vmul.bf16 %v4158_v32, %v9127_v8 }
 0x2d9   :  { %v8532_v40 = vpop.eup %8531  ;;  %v3943_v43 = vpack.c.bf16 %v3858_v16, %v3854_v19  ;;  %v3942_v27 = vpack.c.bf16 %v3521_v10, %v3517_v52  ;;  %v3860_v4 = vpop.f32.mrb[51].mxu1  ;;  %v8239_v53 = vld [vmem:[#allocation7 + $0x4b0] ss:$24 sps:$4 sm:$0xff]   ;;  %v8247_v16 = vld [vmem:[#allocation7 + $0x4e4] ss:$24 sps:$4 sm:$0xff]  }
 0x2da   :  { %v8534_v17 = vpop.eup %8533  ;;  %v9344_v30 = vmul.bf16 %v4197_v51, %v3941_v24  ;;  %v3944_v33 = vpack.c.bf16 %v3860_v4, %v3856_v60  ;;  %5525 = vmatpush1.bf16.msra.mxu0 %v8227_v18  ;;  %5751 = vmatpush1.bf16.msra.mxu1 %v8230_v25  ;;  %v4116_v46 = vadd.bf16 1065369472, %v8532_v40  ;;  %8549 = vrcp.bf16 %v4114_v31  ;;  %v8242_v18 = vld [vmem:[#allocation7 + $0x4b8] ss:$24 sps:$4 sm:$0xff]   ;;  %v8250_v10 = vld [vmem:[#allocation7 + $0x4ec] ss:$24 sps:$4 sm:$0xff]  }
 0x2db   :  { %v8536_v21 = vpop.eup %8535  ;;  %v9346_v13 = vmul.bf16 %v4199_v38, %v3943_v43  ;;  %v9348_v63 = vmul.bf16 %v4198_v37, %v3942_v27  ;;  %5526 = vmatprep.subr.bf16.mxu0 %v8235_v0  ;;  %5752 = vmatprep.subr.bf16.mxu1 %v8238_v26  ;;  %v4160_v3 = vmul.bf16 1065369472, %v8534_v17  ;;  %v4203_v26 = vmul.bf16 %v4162_v9, %v9129_v28  ;;  %v8248_v28 = vld [vmem:[#allocation7 + $0x4e8] ss:$24 sps:$4 sm:$0xff]  }
 0x2dc   :  { %v9350_v29 = vmul.bf16 %v4200_v45, %v3944_v33  ;;  %v3525_v41 = vpop.f32.mrb[52].mxu0  ;;  %v4164_v19 = vmul.bf16 1065369472, %v8536_v21  ;;  %v3864_v52 = vpop.f32.mrb[52].mxu1  ;;  %8551 = vrcp.bf16 %v4116_v46  ;;  %v8245_v21 = vld [vmem:[#allocation7 + $0x4e0] ss:$24 sps:$4 sm:$0xff]  }
 0x2dd   :  { %5469 = vmatprep.mubr.bf16.mxu0 %v9348_v63  ;;  %5695 = vmatprep.mubr.bf16.mxu1 %v9348_v63  ;;  %v3527_v51 = vpop.f32.mrb[53].mxu0  ;;  %v3866_v60 = vpop.f32.mrb[53].mxu1  ;;  %v4202_v40 = vmul.bf16 %v4160_v3, %v9131_v34 }
 0x2de   :  { %5470 = vmatmul.mubr.bf16.gmra.mrb[80].mxu0 %v9344_v30  ;;  %5696 = vmatmul.mubr.bf16.gmra.mrb[80].mxu1 %v9344_v30  ;;  %v3529_v57 = vpop.f32.mrb[54].mxu0  ;;  %v8538_v25 = vpop.eup %8537  ;;  %v4204_v4 = vmul.bf16 %v4164_v19, %v9133_v59 }
 0x2df   :  { %5527 = vmatpush1.bf16.msra.mxu0 %v8233_v47  ;;  %5753 = vmatpush1.bf16.msra.mxu1 %v8236_v54  ;;  %v3945_v38 = vpack.c.bf16 %v3529_v57, %v3525_v41  ;;  %v3868_v37 = vpop.f32.mrb[54].mxu1  ;;  %v3531_v24 = vpop.f32.mrb[55].mxu0  ;;  %v4166_v31 = vmul.bf16 1065369472, %v8538_v25  ;;  %v8253_v47 = vld [vmem:[#allocation7 + $0x514] ss:$24 sps:$4 sm:$0xff]  }
 0x2e0   :  { %5528 = vmatprep.subr.bf16.mxu0 %v8241_v7  ;;  %5754 = vmatprep.subr.bf16.mxu1 %v8244_v50  ;;  %v8540_v0 = vpop.eup %8539  ;;  %v3947_v45 = vpack.c.bf16 %v3868_v37, %v3864_v52  ;;  %v3946_v20 = vpack.c.bf16 %v3531_v24, %v3527_v51  ;;  %v3870_v43 = vpop.f32.mrb[55].mxu1  ;;  %v8256_v54 = vld [vmem:[#allocation7 + $0x51c] ss:$24 sps:$4 sm:$0xff]   ;;  %v8251_v52 = vld [vmem:[#allocation7 + $0x510] ss:$24 sps:$4 sm:$0xff]  }
 0x2e1   :  { %v8542_v27 = vpop.eup %8541  ;;  %v9361_v8 = vmul.bf16 %v4201_v58, %v3945_v38  ;;  %v3948_v17 = vpack.c.bf16 %v3870_v43, %v3866_v60  ;;  %v4170_v59 = vmul.bf16 1065369472, %v8540_v0  ;;  %v8254_v51 = vld [vmem:[#allocation7 + $0x518] ss:$24 sps:$4 sm:$0xff]   ;;  %v4205_v57 = vmul.bf16 %v4166_v31, %v9135_v39  ;;  %v8259_v58 = vld [vmem:[#allocation7 + $0x544] ss:$24 sps:$4 sm:$0xff]  }
 0x2e2   :  { %v8544_v32 = vpop.eup %8543  ;;  %v9363_v1 = vmul.bf16 %v4203_v26, %v3947_v45  ;;  %v9365_v33 = vmul.bf16 %v4202_v40, %v3946_v20  ;;  %v4168_v46 = vmul.bf16 1065369472, %v8542_v27  ;;  %v8262_v38 = vld [vmem:[#allocation7 + $0x54c] ss:$24 sps:$4 sm:$0xff]  }
 0x2e3   :  { %5529 = vmatpush1.bf16.msra.mxu0 %v8239_v53  ;;  %5755 = vmatpush1.bf16.msra.mxu1 %v8242_v18  ;;  %v9367_v34 = vmul.bf16 %v4204_v4, %v3948_v17  ;;  %v4172_v50 = vmul.bf16 1065369472, %v8544_v32  ;;  %v8546_v60 = vpop.eup %8545  ;;  %v4207_v24 = vmul.bf16 %v4170_v59, %v9137_v15  ;;  %v8257_v17 = vld [vmem:[#allocation7 + $0x540] ss:$24 sps:$4 sm:$0xff]  }
 0x2e4   :  { %5530 = vmatprep.subr.bf16.mxu0 %v8247_v16  ;;  %5756 = vmatprep.subr.bf16.mxu1 %v8250_v10  ;;  %v3535_v7 = vpop.f32.mrb[56].mxu0  ;;  %v3874_v9 = vpop.f32.mrb[56].mxu1  ;;  %v4206_v16 = vmul.bf16 %v4168_v46, %v9139_v2  ;;  %v8260_v15 = vld [vmem:[#allocation7 + $0x548] ss:$24 sps:$4 sm:$0xff]   ;;  %v4174_v32 = vmul.bf16 1065369472, %v8546_v60 }
 0x2e5   :  { %5479 = vmatprep.mubr.bf16.mxu0 %v9365_v33  ;;  %5705 = vmatprep.mubr.bf16.mxu1 %v9365_v33  ;;  %v3537_v3 = vpop.f32.mrb[57].mxu0  ;;  %v3876_v41 = vpop.f32.mrb[57].mxu1  ;;  %v4208_v45 = vmul.bf16 %v4172_v50, %v9141_v14  ;;  %v8271_v60 = vld [vmem:[#allocation7 + $0x5a4] ss:$24 sps:$4 sm:$0xff]  }
 0x2e6   :  { %5480 = vmatmul.mubr.bf16.gmra.mrb[84].mxu0 %v9361_v8  ;;  %5706 = vmatmul.mubr.bf16.gmra.mrb[84].mxu1 %v9361_v8  ;;  %v3539_v19 = vpop.f32.mrb[58].mxu0  ;;  %v3878_v18 = vpop.f32.mrb[58].mxu1 }
 0x2e7   :  { %5531 = vmatpush1.bf16.msra.mxu0 %v8245_v21  ;;  %5757 = vmatpush1.bf16.msra.mxu1 %v8248_v28  ;;  %v3949_v53 = vpack.c.bf16 %v3539_v19, %v3535_v7  ;;  %v3541_v25 = vpop.f32.mrb[59].mxu0  ;;  %v8548_v37 = vpop.eup %8547  ;;  %v3951_v10 = vpack.c.bf16 %v3878_v18, %v3874_v9  ;;  %v8265_v21 = vld [vmem:[#allocation7 + $0x574] ss:$24 sps:$4 sm:$0xff]   ;;  %v8263_v9 = vld [vmem:[#allocation7 + $0x570] ss:$24 sps:$4 sm:$0xff]  }
 0x2e8   :  { %5532 = vmatprep.subr.bf16.mxu0 %v8253_v47  ;;  %5758 = vmatprep.subr.bf16.mxu1 %v8256_v54  ;;  %v3950_v0 = vpack.c.bf16 %v3541_v25, %v3537_v3  ;;  %v3880_v26 = vpop.f32.mrb[59].mxu1  ;;  %v8550_v40 = vpop.eup %8549  ;;  %v8268_v28 = vld [vmem:[#allocation7 + $0x57c] ss:$24 sps:$4 sm:$0xff]   ;;  %v4178_v14 = vmul.bf16 1065369472, %v8548_v37 }
 0x2e9   :  { %v9377_v20 = vmul.bf16 %v4205_v57, %v3949_v53  ;;  %v3952_v39 = vpack.c.bf16 %v3880_v26, %v3876_v41  ;;  %v8552_v43 = vpop.eup %8551  ;;  %v9379_v27 = vmul.bf16 %v4207_v24, %v3951_v10  ;;  %v4176_v31 = vmul.bf16 1065369472, %v8550_v40  ;;  %v8266_v3 = vld [vmem:[#allocation7 + $0x578] ss:$24 sps:$4 sm:$0xff]   ;;  %v8274_v57 = vld [vmem:[#allocation7 + $0x5ac] ss:$24 sps:$4 sm:$0xff]  }
 0x2ea   :  { %v9381_v4 = vmul.bf16 %v4206_v16, %v3950_v0  ;;  %v4180_v54 = vmul.bf16 1065369472, %v8552_v43  ;;  %v4209_v41 = vmul.bf16 %v4174_v32, %v9143_v23  ;;  %v4211_v53 = vmul.bf16 %v4178_v14, %v9145_v6  ;;  %v8269_v0 = vld [vmem:[#allocation7 + $0x5a0] ss:$24 sps:$4 sm:$0xff]   ;;  %v8283_v43 = vld [vmem:[#allocation7 + $0x14] ss:$24 sps:$4 sm:$0xff]  }
 0x2eb   :  { %5533 = vmatpush1.bf16.msra.mxu0 %v8251_v52  ;;  %5759 = vmatpush1.bf16.msra.mxu1 %v8254_v51  ;;  %v9383_v2 = vmul.bf16 %v4208_v45, %v3952_v39  ;;  %v4210_v18 = vmul.bf16 %v4176_v31, %v9147_v44  ;;  %v8272_v6 = vld [vmem:[#allocation7 + $0x5a8] ss:$24 sps:$4 sm:$0xff]   ;;  %v8277_v44 = vld [vmem:[#allocation7 + $0x5d4] ss:$24 sps:$4 sm:$0xff]   ;;  %v8278_v39 = vld [vmem:[#allocation7 + $0x5d8] ss:$24 sps:$4 sm:$0xff]  }
 0x2ec   :  { %5534 = vmatprep.subr.bf16.mxu0 %v8259_v58  ;;  %5760 = vmatprep.subr.bf16.mxu1 %v8262_v38  ;;  %v3545_v47 = vpop.f32.mrb[60].mxu0  ;;  %v3884_v59 = vpop.f32.mrb[60].mxu1  ;;  %v4212_v37 = vmul.bf16 %v4180_v54, %v9149_v35  ;;  %v8280_v35 = vld [vmem:[#allocation7 + $0x5dc] ss:$24 sps:$4 sm:$0xff]   ;;  %v8275_v45 = vld [vmem:[#allocation7 + $0x5d0] ss:$24 sps:$4 sm:$0xff]  }
 0x2ed   :  { %5489 = vmatprep.mubr.bf16.mxu0 %v9381_v4  ;;  %5715 = vmatprep.mubr.bf16.mxu1 %v9381_v4  ;;  %v3547_v46 = vpop.f32.mrb[61].mxu0  ;;  %v3886_v7 = vpop.f32.mrb[61].mxu1  ;;  %v9931_v40 = vld [vmem:[#allocation19_spill] sm:$0xff]  ;;  %v9409_v32 = vld [vmem:[#allocation7 + $0x310] ss:$24 sps:$4 sm:$0xff]  }
 0x2ee   :  { %5490 = vmatmul.mubr.bf16.gmra.mrb[88].mxu0 %v9377_v20  ;;  %5716 = vmatmul.mubr.bf16.gmra.mrb[88].mxu1 %v9377_v20  ;;  %v3549_v50 = vpop.f32.mrb[62].mxu0  ;;  %v3888_v52 = vpop.f32.mrb[62].mxu1  ;;  %v9413_v14 = vld [vmem:[#allocation7 + $0x344] ss:$24 sps:$4 sm:$0xff]   ;;  %v8287_v31 = vld [vmem:[#allocation7 + $0x40] ss:$24 sps:$4 sm:$0xff]  }
 0x2ef   :  { %5535 = vmatpush1.bf16.msra.mxu0 %v8257_v17  ;;  %5761 = vmatpush1.bf16.msra.mxu1 %v8260_v15  ;;  %v3953_v19 = vpack.c.bf16 %v3549_v50, %v3545_v47  ;;  %v3551_v51 = vpop.f32.mrb[63].mxu0  ;;  %v3955_v25 = vpack.c.bf16 %v3888_v52, %v3884_v59  ;;  %v3890_v38 = vpop.f32.mrb[63].mxu1  ;;  %v9407_v17 = vld [vmem:[#allocation7 + $0x314] ss:$24 sps:$4 sm:$0xff]   ;;  %v8281_v15 = vld [vmem:[#allocation7 + $0x10] ss:$24 sps:$4 sm:$0xff]  }
 0x2f0   :  { %5536 = vmatprep.subr.bf16.mxu0 %v8265_v21  ;;  %5762 = vmatprep.subr.bf16.mxu1 %v8268_v28  ;;  %v3954_v58 = vpack.c.bf16 %v3551_v51, %v3547_v46  ;;  %v3956_v16 = vpack.c.bf16 %v3890_v38, %v3886_v7  ;;  %v8289_v21 = vld [vmem:[#allocation7 + $0x44] ss:$24 sps:$4 sm:$0xff]   ;;  %v9932_v28 = vld [vmem:[#allocation17_spill] sm:$0xff]  ;;  %v9419_v47 = vld [vmem:[#allocation7 + $0x340] ss:$24 sps:$4 sm:$0xff]  }
 0x2f1   :  { %v9393_v24 = vmul.bf16 %v4209_v41, %v3953_v19  ;;  %v9395_v23 = vmul.bf16 %v4211_v53, %v3955_v25  ;;  %v8295_v54 = vld [vmem:[#allocation7 + $0x74] ss:$24 sps:$4 sm:$0xff]   ;;  %v8293_v46 = vld [vmem:[#allocation7 + $0x70] ss:$24 sps:$4 sm:$0xff]   ;;  %v8301_v50 = vld [vmem:[#allocation7 + $0xa4] ss:$24 sps:$4 sm:$0xff]  }
 0x2f2   :  { %v9397_v10 = vmul.bf16 %v4210_v18, %v3954_v58  ;;  %v9399_v26 = vmul.bf16 %v4212_v37, %v3956_v16  ;;  %v9422_v59 = vld [vmem:[#allocation7 + $0x374] ss:$24 sps:$4 sm:$0xff]   ;;  %v9425_v7 = vld [vmem:[#allocation7 + $0x370] ss:$24 sps:$4 sm:$0xff]   ;;  %v9435_v41 = vld [vmem:[#allocation7 + $0x3a0] ss:$24 sps:$4 sm:$0xff]  }
 0x2f3   :  { %5537 = vmatpush1.bf16.msra.mxu0 %v8263_v9  ;;  %5763 = vmatpush1.bf16.msra.mxu1 %v8266_v3  ;;  %v9429_v9 = vld [vmem:[#allocation7 + $0x3a4] ss:$24 sps:$4 sm:$0xff]   ;;  %v8299_v3 = vld [vmem:[#allocation7 + $0xa0] ss:$24 sps:$4 sm:$0xff]   ;;  %v8307_v19 = vld [vmem:[#allocation7 + $0xd4] ss:$24 sps:$4 sm:$0xff]  }
 0x2f4   :  { %5538 = vmatprep.subr.bf16.mxu0 %v8271_v60  ;;  %5764 = vmatprep.subr.bf16.mxu1 %v8274_v57  ;;  %v9438_v52 = vld [vmem:[#allocation7 + $0x3d4] ss:$24 sps:$4 sm:$0xff]   ;;  %v8305_v51 = vld [vmem:[#allocation7 + $0xd0] ss:$24 sps:$4 sm:$0xff]   ;;  %v8313_v57 = vld [vmem:[#allocation7 + $0x104] ss:$24 sps:$4 sm:$0xff]  }
 0x2f5   :  { %5499 = vmatprep.mubr.bf16.mxu0 %v9397_v10  ;;  %5725 = vmatprep.mubr.bf16.mxu1 %v9397_v10  ;;  %v9441_v60 = vld [vmem:[#allocation7 + $0x3d0] ss:$24 sps:$4 sm:$0xff]   ;;  %v9445_v53 = vld [vmem:[#allocation7 + $0x404] ss:$24 sps:$4 sm:$0xff]   ;;  %v8311_v18 = vld [vmem:[#allocation7 + $0x100] ss:$24 sps:$4 sm:$0xff]  }
 0x2f6   :  { %5500 = vmatmul.mubr.bf16.gmra.mrb[92].mxu0 %v9393_v24  ;;  %5726 = vmatmul.mubr.bf16.gmra.mrb[92].mxu1 %v9393_v24  ;;  %v9451_v25 = vld [vmem:[#allocation7 + $0x400] ss:$24 sps:$4 sm:$0xff]   ;;  %v8319_v58 = vld [vmem:[#allocation7 + $0x134] ss:$24 sps:$4 sm:$0xff]   ;;  %v8317_v37 = vld [vmem:[#allocation7 + $0x130] ss:$24 sps:$4 sm:$0xff]  }
 0x2f7   :  { %5539 = vmatpush1.bf16.msra.mxu0 %v8269_v0  ;;  %5542 = vmatprep.mubr.bf16.mxu0 %v9931_v40  ;;  %v9454_v38 = vld [vmem:[#allocation7 + $0x434] ss:$24 sps:$4 sm:$0xff]   ;;  %v9457_v16 = vld [vmem:[#allocation7 + $0x430] ss:$24 sps:$4 sm:$0xff]   ;;  %v8325_v0 = vld [vmem:[#allocation7 + $0x164] ss:$24 sps:$4 sm:$0xff]  }
 0x2f8   :  { %5765 = vmatpush1.bf16.msra.mxu1 %v8272_v6  ;;  %5768 = vmatprep.mubr.bf16.mxu1 %v9931_v40  ;;  %v9461_v6 = vld [vmem:[#allocation7 + $0x464] ss:$24 sps:$4 sm:$0xff]  }
 0x2f9   :  { %5540 = vmatprep.subr.bf16.mxu0 %v8277_v44  ;;  %5766 = vmatprep.subr.bf16.mxu1 %v8280_v35  ;;  %v8323_v44 = vld [vmem:[#allocation7 + $0x160] ss:$24 sps:$4 sm:$0xff]  }
 0x2fa   :  { %v9467_v35 = vld [vmem:[#allocation7 + $0x460] ss:$24 sps:$4 sm:$0xff]  }
 0x2fb   :  { %5541 = vmatpush1.bf16.msra.mxu0 %v8275_v45  ;;  %v8331_v45 = vld [vmem:[#allocation7 + $0x194] ss:$24 sps:$4 sm:$0xff]  }
 0x2fc   :  { %5767 = vmatpush1.bf16.msra.mxu1 %v8278_v39  ;;  %5849 = vmatprep.subr.bf16.mxu0 %v8283_v43  ;;  %v9470_v39 = vld [vmem:[#allocation7 + $0x494] ss:$24 sps:$4 sm:$0xff]   ;;  %v8329_v43 = vld [vmem:[#allocation7 + $0x190] ss:$24 sps:$4 sm:$0xff]  }
 0x2fd   :  { %7689 = vmatprep.subr.bf16.mxu1 %v9407_v17 }
 0x2fe   :  { %5543 = vmatmul.mubr.bf16.vlgmr.msra.gmra.mrb[64].mxu0 %v9932_v28 }
 0x2ff   :  { %5769 = vmatmul.mubr.bf16.vlgmr.msra.gmra.mrb[64].mxu1 %v9932_v28  ;;  %5552 = vmatprep.mubr.bf16.mxu0 %v9254_v56 }
 0x300   :  { %5778 = vmatprep.mubr.bf16.mxu1 %v9254_v56  ;;  %5850 = vmatpush1.bf16.msra.mxu0 %v8281_v15  ;;  %v9473_v15 = vld [vmem:[#allocation7 + $0x490] ss:$24 sps:$4 sm:$0xff]  }
 0x301   :  { %7705 = vmatpush1.bf16.msra.mxu1 %v9409_v32  ;;  %5851 = vmatprep.subr.bf16.mxu0 %v8289_v21  ;;  %v8337_v21 = vld [vmem:[#allocation7 + $0x1c4] ss:$24 sps:$4 sm:$0xff]  }
 0x302   :  { %7690 = vmatprep.subr.bf16.mxu1 %v9413_v14 }
 0x304   :  { %5852 = vmatpush1.bf16.msra.mxu0 %v8287_v31  ;;  %v9477_v31 = vld [vmem:[#allocation7 + $0x4c4] ss:$24 sps:$4 sm:$0xff]  }
 0x305   :  { %7706 = vmatpush1.bf16.msra.mxu1 %v9419_v47  ;;  %5853 = vmatprep.subr.bf16.mxu0 %v8295_v54  ;;  %v8335_v54 = vld [vmem:[#allocation7 + $0x1c0] ss:$24 sps:$4 sm:$0xff]  }
 0x306   :  { %5553 = vmatmul.mubr.bf16.gmra.mrb[68].mxu0 %v9249_v5  ;;  %7691 = vmatprep.subr.bf16.mxu1 %v9422_v59 }
 0x307   :  { %5779 = vmatmul.mubr.bf16.gmra.mrb[68].mxu1 %v9249_v5  ;;  %5562 = vmatprep.mubr.bf16.mxu0 %v9290_v55 }
 0x308   :  { %5788 = vmatprep.mubr.bf16.mxu1 %v9290_v55  ;;  %5854 = vmatpush1.bf16.msra.mxu0 %v8293_v46  ;;  %v9483_v46 = vld [vmem:[#allocation7 + $0x4c0] ss:$24 sps:$4 sm:$0xff]  }
 0x309   :  { %7707 = vmatpush1.bf16.msra.mxu1 %v9425_v7  ;;  %5855 = vmatprep.subr.bf16.mxu0 %v8301_v50  ;;  %v8343_v50 = vld [vmem:[#allocation7 + $0x1f4] ss:$24 sps:$4 sm:$0xff]   ;;  %v8378_v55 = vld [vmem:[#allocation8] sm:$0xff]  }
 0x30a   :  { %7692 = vmatprep.subr.bf16.mxu1 %v9429_v9 }
 0x30c   :  { %5856 = vmatpush1.bf16.msra.mxu0 %v8299_v3  ;;  %v9486_v3 = vld [vmem:[#allocation7 + $0x4f4] ss:$24 sps:$4 sm:$0xff]  }
 0x30d   :  { %7708 = vmatpush1.bf16.msra.mxu1 %v9435_v41  ;;  %5857 = vmatprep.subr.bf16.mxu0 %v8307_v19  ;;  %v8341_v19 = vld [vmem:[#allocation7 + $0x1f0] ss:$24 sps:$4 sm:$0xff]  }
 0x30e   :  { %5563 = vmatmul.mubr.bf16.gmra.mrb[72].mxu0 %v9286_v42  ;;  %7693 = vmatprep.subr.bf16.mxu1 %v9438_v52 }
 0x30f   :  { %5789 = vmatmul.mubr.bf16.gmra.mrb[72].mxu1 %v9286_v42  ;;  %5572 = vmatprep.mubr.bf16.mxu0 %v9325_v12  ;;  %v8377_v42 = vld [vmem:[#allocation8 + $0x40] sm:$0xff]  }
 0x310   :  { %5798 = vmatprep.mubr.bf16.mxu1 %v9325_v12  ;;  %5858 = vmatpush1.bf16.msra.mxu0 %v8305_v51  ;;  %v9489_v51 = vld [vmem:[#allocation7 + $0x4f0] ss:$24 sps:$4 sm:$0xff]   ;;  %v8373_v12 = vld [vmem:[#allocation7 + $0x2e4] ss:$24 sps:$4 sm:$0xff]  }
 0x311   :  { %7709 = vmatpush1.bf16.msra.mxu1 %v9441_v60  ;;  %5859 = vmatprep.subr.bf16.mxu0 %v8313_v57  ;;  %v8349_v57 = vld [vmem:[#allocation7 + $0x224] ss:$24 sps:$4 sm:$0xff]  }
 0x312   :  { %7694 = vmatprep.subr.bf16.mxu1 %v9445_v53 }
 0x314   :  { %5860 = vmatpush1.bf16.msra.mxu0 %v8311_v18  ;;  %v9493_v18 = vld [vmem:[#allocation7 + $0x524] ss:$24 sps:$4 sm:$0xff]  }
 0x315   :  { %7710 = vmatpush1.bf16.msra.mxu1 %v9451_v25  ;;  %5861 = vmatprep.subr.bf16.mxu0 %v8319_v58  ;;  %v8347_v58 = vld [vmem:[#allocation7 + $0x220] ss:$24 sps:$4 sm:$0xff]  }
 0x316   :  { %5573 = vmatmul.mubr.bf16.gmra.mrb[76].mxu0 %v9319_v22  ;;  %7695 = vmatprep.subr.bf16.mxu1 %v9454_v38 }
 0x317   :  { %5799 = vmatmul.mubr.bf16.gmra.mrb[76].mxu1 %v9319_v22  ;;  %5582 = vmatprep.mubr.bf16.mxu0 %v9350_v29  ;;  %v9521_v22 = vld [vmem:[#allocation7 + $0x5b0] ss:$24 sps:$4 sm:$0xff]  }
 0x318   :  { %5808 = vmatprep.mubr.bf16.mxu1 %v9350_v29  ;;  %5862 = vmatpush1.bf16.msra.mxu0 %v8317_v37  ;;  %v9499_v37 = vld [vmem:[#allocation7 + $0x520] ss:$24 sps:$4 sm:$0xff]  }
 0x319   :  { %7711 = vmatpush1.bf16.msra.mxu1 %v9457_v16  ;;  %5863 = vmatprep.subr.bf16.mxu0 %v8325_v0  ;;  %v8355_v0 = vld [vmem:[#allocation7 + $0x254] ss:$24 sps:$4 sm:$0xff]  }
 0x31a   :  { %7696 = vmatprep.subr.bf16.mxu1 %v9461_v6 }
 0x31c   :  { %5864 = vmatpush1.bf16.msra.mxu0 %v8323_v44  ;;  %v9502_v44 = vld [vmem:[#allocation7 + $0x554] ss:$24 sps:$4 sm:$0xff]  }
 0x31d   :  { %7712 = vmatpush1.bf16.msra.mxu1 %v9467_v35  ;;  %5865 = vmatprep.subr.bf16.mxu0 %v8331_v45  ;;  %v8353_v45 = vld [vmem:[#allocation7 + $0x250] ss:$24 sps:$4 sm:$0xff]  }
 0x31e   :  { %5583 = vmatmul.mubr.bf16.gmra.mrb[80].mxu0 %v9346_v13  ;;  %7697 = vmatprep.subr.bf16.mxu1 %v9470_v39 }
 0x31f   :  { %5809 = vmatmul.mubr.bf16.gmra.mrb[80].mxu1 %v9346_v13  ;;  %5592 = vmatprep.mubr.bf16.mxu0 %v9367_v34 }
 0x320   :  { %5818 = vmatprep.mubr.bf16.mxu1 %v9367_v34  ;;  %5866 = vmatpush1.bf16.msra.mxu0 %v8329_v43  ;;  %v9505_v43 = vld [vmem:[#allocation7 + $0x550] ss:$24 sps:$4 sm:$0xff]  }
 0x321   :  { %7713 = vmatpush1.bf16.msra.mxu1 %v9473_v15  ;;  %5867 = vmatprep.subr.bf16.mxu0 %v8337_v21  ;;  %v8361_v21 = vld [vmem:[#allocation7 + $0x284] ss:$24 sps:$4 sm:$0xff]  }
 0x322   :  { %7698 = vmatprep.subr.bf16.mxu1 %v9477_v31 }
 0x324   :  { %5868 = vmatpush1.bf16.msra.mxu0 %v8335_v54  ;;  %v9509_v54 = vld [vmem:[#allocation7 + $0x584] ss:$24 sps:$4 sm:$0xff]  }
 0x325   :  { %7714 = vmatpush1.bf16.msra.mxu1 %v9483_v46  ;;  %5869 = vmatprep.subr.bf16.mxu0 %v8343_v50  ;;  %v8359_v50 = vld [vmem:[#allocation7 + $0x280] ss:$24 sps:$4 sm:$0xff]  }
 0x326   :  { %5593 = vmatmul.mubr.bf16.gmra.mrb[84].mxu0 %v9363_v1  ;;  %7699 = vmatprep.subr.bf16.mxu1 %v9486_v3 }
 0x327   :  { %5819 = vmatmul.mubr.bf16.gmra.mrb[84].mxu1 %v9363_v1  ;;  %5602 = vmatprep.mubr.bf16.mxu0 %v9383_v2 }
 0x328   :  { %5828 = vmatprep.mubr.bf16.mxu1 %v9383_v2  ;;  %5870 = vmatpush1.bf16.msra.mxu0 %v8341_v19  ;;  %v9515_v19 = vld [vmem:[#allocation7 + $0x580] ss:$24 sps:$4 sm:$0xff]  }
 0x329   :  { %7715 = vmatpush1.bf16.msra.mxu1 %v9489_v51  ;;  %5871 = vmatprep.subr.bf16.mxu0 %v8349_v57  ;;  %v8367_v57 = vld [vmem:[#allocation7 + $0x2b4] ss:$24 sps:$4 sm:$0xff]  }
 0x32a   :  { %7700 = vmatprep.subr.bf16.mxu1 %v9493_v18 }
 0x32c   :  { %5872 = vmatpush1.bf16.msra.mxu0 %v8347_v58  ;;  %v9518_v58 = vld [vmem:[#allocation7 + $0x5b4] ss:$24 sps:$4 sm:$0xff]  }
 0x32d   :  { %7716 = vmatpush1.bf16.msra.mxu1 %v9499_v37  ;;  %5873 = vmatprep.subr.bf16.mxu0 %v8355_v0  ;;  %v8365_v0 = vld [vmem:[#allocation7 + $0x2b0] ss:$24 sps:$4 sm:$0xff]  }
 0x32e   :  { %5603 = vmatmul.mubr.bf16.gmra.mrb[88].mxu0 %v9379_v27  ;;  %7701 = vmatprep.subr.bf16.mxu1 %v9502_v44 }
 0x32f   :  { %5829 = vmatmul.mubr.bf16.gmra.mrb[88].mxu1 %v9379_v27  ;;  %5612 = vmatprep.mubr.bf16.mxu0 %v9399_v26 }
 0x330   :  { %5838 = vmatprep.mubr.bf16.mxu1 %v9399_v26  ;;  %5874 = vmatpush1.bf16.msra.mxu0 %v8353_v45  ;;  %v9525_v45 = vld [vmem:[#allocation7 + $0x5e4] ss:$24 sps:$4 sm:$0xff]  }
 0x331   :  { %7717 = vmatpush1.bf16.msra.mxu1 %v9505_v43  ;;  %5875 = vmatprep.subr.bf16.mxu0 %v8361_v21  ;;  %v9933_v21 = vld [vmem:[#allocation18_spill] sm:$0xff] }
 0x332   :  { %7702 = vmatprep.subr.bf16.mxu1 %v9509_v54 }
 0x334   :  { %5876 = vmatpush1.bf16.msra.mxu0 %v8359_v50  ;;  %v8371_v50 = vld [vmem:[#allocation7 + $0x2e0] ss:$24 sps:$4 sm:$0xff]  }
 0x335   :  { %7718 = vmatpush1.bf16.msra.mxu1 %v9515_v19  ;;  %5877 = vmatprep.subr.bf16.mxu0 %v8367_v57  ;;  %v9531_v57 = vld [vmem:[#allocation7 + $0x5e0] ss:$24 sps:$4 sm:$0xff]  }
 0x336   :  { %5613 = vmatmul.mubr.bf16.gmra.mrb[92].mxu0 %v9395_v23  ;;  %7703 = vmatprep.subr.bf16.mxu1 %v9518_v58 }
 0x337   :  { %5839 = vmatmul.mubr.bf16.gmra.mrb[92].mxu1 %v9395_v23  ;;  %5881 = vmatprep.mubr.bf16.mxu0 %v9933_v21  ;;  %v9934_v21 = vld [vmem:[#allocation16_spill] sm:$0xff] }
 0x338   :  { %5878 = vmatpush1.bf16.msra.mxu0 %v8365_v0  ;;  %6034 = vmatprep.mubr.bf16.mxu1 %v9350_v29  ;;  %v8379_v0 = vld [vmem:[#allocation8 + $0x48] sm:$0xff]   ;;  %v8381_v29 = vld [vmem:[#allocation8 + $0x50] sm:$0xff]  }
 0x339   :  { %7719 = vmatpush1.bf16.msra.mxu1 %v9521_v22  ;;  %5879 = vmatprep.subr.bf16.mxu0 %v8373_v12  ;;  %v8380_v12 = vld [vmem:[#allocation8 + $0x8] sm:$0xff]  }
 0x33a   :  { %7704 = vmatprep.subr.bf16.mxu1 %v9525_v45 }
 0x33c   :  { %5880 = vmatpush1.bf16.msra.mxu0 %v8371_v50 }
 0x33d   :  { %7720 = vmatpush1.bf16.msra.mxu1 %v9531_v57  ;;  %5962 = vmatprep.subr.bf16.mxu0 %v9407_v17  ;;  %v8420_v17 = vld [vmem:[#allocation8 + $0x128] sm:$0xff]  }
 0x33e   :  { %7497 = vmatprep.subr.bf16.mxu1 %v8377_v42  ;;  %v8382_v42 = vld [vmem:[#allocation8 + $0x10] sm:$0xff]  }
 0x33f   :  { %5882 = vmatmul.mubr.bf16.vlgmr.msra.gmra.mrb[96].mxu0 %v9934_v21 }
 0x340   :  { %6035 = vmatmul.mubr.bf16.vlgmr.msra.gmra.mrb[96].mxu1 %v9346_v13  ;;  %5891 = vmatprep.mubr.bf16.mxu0 %v9251_v11  ;;  %v8383_v11 = vld [vmem:[#allocation8 + $0x58] sm:$0xff]   ;;  %v8385_v13 = vld [vmem:[#allocation8 + $0x60] sm:$0xff]  }
 0x341   :  { %5963 = vmatpush1.bf16.msra.mxu0 %v9409_v32  ;;  %6044 = vmatprep.mubr.bf16.mxu1 %v9367_v34  ;;  %v8389_v34 = vld [vmem:[#allocation8 + $0x70] sm:$0xff]  }
 0x342   :  { %5964 = vmatprep.subr.bf16.mxu0 %v9413_v14  ;;  %7498 = vmatpush3.bf16.msra.mxu1 %v8378_v55  ;;  %v8384_v55 = vld [vmem:[#allocation8 + $0x18] sm:$0xff]   ;;  %v8421_v32 = vld [vmem:[#allocation8 + $0x170] sm:$0xff]  }
 0x343   :  { %7499 = vmatprep.subr.bf16.mxu1 %v8379_v0  ;;  %v8399_v0 = vld [vmem:[#allocation8 + $0xd8] sm:$0xff]  }
 0x345   :  { %5965 = vmatpush1.bf16.msra.mxu0 %v9419_v47 }
 0x346   :  { %5966 = vmatprep.subr.bf16.mxu0 %v9422_v59  ;;  %7500 = vmatpush3.bf16.msra.mxu1 %v8380_v12 }
 0x347   :  { %5892 = vmatmul.mubr.bf16.gmra.mrb[100].mxu0 %v9244_v61  ;;  %7501 = vmatprep.subr.bf16.mxu1 %v8381_v29  ;;  %v8386_v61 = vld [vmem:[#allocation8 + $0x20] sm:$0xff]   ;;  %v8400_v29 = vld [vmem:[#allocation8 + $0x98] sm:$0xff]  }
 0x348   :  { %6045 = vmatmul.mubr.bf16.gmra.mrb[100].mxu1 %v9363_v1  ;;  %5901 = vmatprep.mubr.bf16.mxu0 %v9288_v48  ;;  %v8387_v48 = vld [vmem:[#allocation8 + $0x68] sm:$0xff]  }
 0x349   :  { %5967 = vmatpush1.bf16.msra.mxu0 %v9425_v7  ;;  %6054 = vmatprep.mubr.bf16.mxu1 %v9383_v2  ;;  %v8388_v1 = vld [vmem:[#allocation8 + $0x28] sm:$0xff]  }
 0x34a   :  { %5968 = vmatprep.subr.bf16.mxu0 %v9429_v9  ;;  %7502 = vmatpush3.bf16.msra.mxu1 %v8382_v42  ;;  %v8412_v2 = vld [vmem:[#allocation8 + $0x108] sm:$0xff]   ;;  %v8422_v9 = vld [vmem:[#allocation8 + $0x130] sm:$0xff]  }
 0x34b   :  { %7503 = vmatprep.subr.bf16.mxu1 %v8383_v11 }
 0x34d   :  { %5969 = vmatpush1.bf16.msra.mxu0 %v9435_v41 }
 0x34e   :  { %5970 = vmatprep.subr.bf16.mxu0 %v9438_v52  ;;  %7504 = vmatpush3.bf16.msra.mxu1 %v8384_v55  ;;  %v8401_v55 = vld [vmem:[#allocation8 + $0xe0] sm:$0xff]  }
 0x34f   :  { %5902 = vmatmul.mubr.bf16.gmra.mrb[104].mxu0 %v9282_v62  ;;  %7505 = vmatprep.subr.bf16.mxu1 %v8385_v13  ;;  %v8390_v62 = vld [vmem:[#allocation8 + $0x30] sm:$0xff]  }
 0x350   :  { %6055 = vmatmul.mubr.bf16.gmra.mrb[104].mxu1 %v9379_v27  ;;  %5911 = vmatprep.mubr.bf16.mxu0 %v9321_v49  ;;  %v8391_v49 = vld [vmem:[#allocation8 + $0x78] sm:$0xff]  }
 0x351   :  { %5971 = vmatpush1.bf16.msra.mxu0 %v9441_v60  ;;  %6064 = vmatprep.mubr.bf16.mxu1 %v9399_v26  ;;  %v8392_v27 = vld [vmem:[#allocation8 + $0x38] sm:$0xff]   ;;  %v8418_v26 = vld [vmem:[#allocation8 + $0x120] sm:$0xff]  }
 0x352   :  { %5972 = vmatprep.subr.bf16.mxu0 %v9445_v53  ;;  %7506 = vmatpush3.bf16.msra.mxu1 %v8386_v61 }
 0x353   :  { %7507 = vmatprep.subr.bf16.mxu1 %v8387_v48 }
 0x355   :  { %5973 = vmatpush1.bf16.msra.mxu0 %v9451_v25 }
 0x356   :  { %5974 = vmatprep.subr.bf16.mxu0 %v9454_v38  ;;  %7508 = vmatpush3.bf16.msra.mxu1 %v8388_v1 }
 0x357   :  { %5912 = vmatmul.mubr.bf16.gmra.mrb[108].mxu0 %v9317_v36  ;;  %7509 = vmatprep.subr.bf16.mxu1 %v8389_v34  ;;  %v8393_v36 = vld [vmem:[#allocation8 + $0xc0] sm:$0xff]  }
 0x358   :  { %6065 = vmatmul.mubr.bf16.gmra.mrb[108].mxu1 %v9395_v23  ;;  %5921 = vmatprep.mubr.bf16.mxu0 %v9348_v63  ;;  %v9936_v63 = vld [vmem:[#allocation20_spill] sm:$0xff]  ;;  %v8416_v23 = vld [vmem:[#allocation8 + $0x118] sm:$0xff]  }
 0x359   :  { %5975 = vmatpush1.bf16.msra.mxu0 %v9457_v16  ;;  %v8394_v16 = vld [vmem:[#allocation8 + $0x80] sm:$0xff]  }
 0x35a   :  { %5976 = vmatprep.subr.bf16.mxu0 %v9461_v6  ;;  %7510 = vmatpush3.bf16.msra.mxu1 %v8390_v62 }
 0x35b   :  { %7511 = vmatprep.subr.bf16.mxu1 %v8391_v49 }
 0x35d   :  { %5977 = vmatpush1.bf16.msra.mxu0 %v9467_v35  ;;  %v8395_v35 = vld [vmem:[#allocation8 + $0xc8] sm:$0xff]  }
 0x35e   :  { %5978 = vmatprep.subr.bf16.mxu0 %v9470_v39  ;;  %7512 = vmatpush3.bf16.msra.mxu1 %v8392_v27  ;;  %v8423_v39 = vld [vmem:[#allocation8 + $0x178] sm:$0xff]  }
 0x35f   :  { %5922 = vmatmul.mubr.bf16.gmra.mrb[112].mxu0 %v9344_v30  ;;  %7561 = vmatprep.subr.bf16.mxu1 %v8393_v36  ;;  %v9935_v30 = vld [vmem:[#allocation21_spill] sm:$0xff]  ;;  %v8402_v36 = vld [vmem:[#allocation8 + $0xa0] sm:$0xff]  }
 0x360   :  { %5931 = vmatprep.mubr.bf16.mxu0 %v9365_v33  ;;  %v9938_v33 = vld [vmem:[#allocation22_spill] sm:$0xff] }
 0x361   :  { %5979 = vmatpush1.bf16.msra.mxu0 %v9473_v15  ;;  %v8424_v15 = vld [vmem:[#allocation8 + $0x138] sm:$0xff]  }
 0x362   :  { %5980 = vmatprep.subr.bf16.mxu0 %v9477_v31 }
 0x365   :  { %5981 = vmatpush1.bf16.msra.mxu0 %v9483_v46  ;;  %v8396_v46 = vld [vmem:[#allocation8 + $0x88] sm:$0xff]  }
 0x366   :  { %5982 = vmatprep.subr.bf16.mxu0 %v9486_v3 }
 0x367   :  { %5932 = vmatmul.mubr.bf16.gmra.mrb[116].mxu0 %v9361_v8  ;;  %v9937_v8 = vld [vmem:[#allocation23_spill] sm:$0xff] }
 0x368   :  { %5941 = vmatprep.mubr.bf16.mxu0 %v9381_v4  ;;  %v8411_v4 = vld [vmem:[#allocation8 + $0x148] sm:$0xff]  }
 0x369   :  { %5983 = vmatpush1.bf16.msra.mxu0 %v9489_v51 }
 0x36a   :  { %5984 = vmatprep.subr.bf16.mxu0 %v9493_v18  ;;  %v8397_v18 = vld [vmem:[#allocation8 + $0xd0] sm:$0xff]  }
 0x36d   :  { %5985 = vmatpush1.bf16.msra.mxu0 %v9499_v37 }
 0x36e   :  { %5986 = vmatprep.subr.bf16.mxu0 %v9502_v44 }
 0x36f   :  { %5942 = vmatmul.mubr.bf16.gmra.mrb[120].mxu0 %v9377_v20  ;;  %v8410_v20 = vld [vmem:[#allocation8 + $0x100] sm:$0xff]  }
 0x370   :  { %5951 = vmatprep.mubr.bf16.mxu0 %v9397_v10  ;;  %v8417_v10 = vld [vmem:[#allocation8 + $0x160] sm:$0xff]  }
 0x371   :  { %5987 = vmatpush1.bf16.msra.mxu0 %v9505_v43 }
 0x372   :  { %5988 = vmatprep.subr.bf16.mxu0 %v9509_v54 }
 0x375   :  { %5989 = vmatpush1.bf16.msra.mxu0 %v9515_v19 }
 0x376   :  { %5990 = vmatprep.subr.bf16.mxu0 %v9518_v58 }
 0x377   :  { %5952 = vmatmul.mubr.bf16.gmra.mrb[124].mxu0 %v9393_v24  ;;  %v8413_v24 = vld [vmem:[#allocation8 + $0x150] sm:$0xff]  }
 0x378   :  { %5994 = vmatprep.mubr.bf16.mxu0 %v9931_v40  ;;  %v8419_v40 = vld [vmem:[#allocation8 + $0x168] sm:$0xff]  }
 0x379   :  { %5991 = vmatpush1.bf16.msra.mxu0 %v9521_v22  ;;  %v8409_v22 = vld [vmem:[#allocation8 + $0x140] sm:$0xff]  }
 0x37a   :  { %5992 = vmatprep.subr.bf16.mxu0 %v9525_v45 }
 0x37d   :  { %5993 = vmatpush1.bf16.msra.mxu0 %v9531_v57  ;;  %v8398_v57 = vld [vmem:[#allocation8 + $0x90] sm:$0xff]  }
 0x37e   :  { %7625 = vmatprep.subr.bf16.mxu0 %v8409_v22 }
 0x380   :  { %5995 = vmatmul.mubr.bf16.vlgmr.msra.gmra.mrb[96].mxu0 %v9932_v28 }
 0x381   :  { %6004 = vmatprep.mubr.bf16.mxu0 %v9254_v56  ;;  %7626 = vmatpush3.bf16.msra.mxu0 %v8410_v20  ;;  %v8414_v56 = vld [vmem:[#allocation8 + $0x110] sm:$0xff]  }
 0x382   :  { %7627 = vmatprep.subr.bf16.mxu0 %v8411_v4  ;;  %v8405_v4 = vld [vmem:[#allocation8 + $0xf0] sm:$0xff]  }
 0x385   :  { %7628 = vmatpush3.bf16.msra.mxu0 %v8412_v2 }
 0x386   :  { %7629 = vmatprep.subr.bf16.mxu0 %v8413_v24 }
 0x388   :  { %6005 = vmatmul.mubr.bf16.gmra.mrb[100].mxu0 %v9249_v5  ;;  %v8415_v5 = vld [vmem:[#allocation8 + $0x158] sm:$0xff]  }
 0x389   :  { %6014 = vmatprep.mubr.bf16.mxu0 %v9935_v30  ;;  %7630 = vmatpush3.bf16.msra.mxu0 %v8414_v56 }
 0x38a   :  { %7631 = vmatprep.subr.bf16.mxu0 %v8415_v5 }
 0x38d   :  { %7632 = vmatpush3.bf16.msra.mxu0 %v8416_v23 }
 0x38e   :  { %7633 = vmatprep.subr.bf16.mxu0 %v8417_v10 }
 0x390   :  { %6015 = vmatmul.mubr.bf16.gmra.mrb[104].mxu0 %v9936_v63  ;;  %v8403_v63 = vld [vmem:[#allocation8 + $0xe8] sm:$0xff]  }
 0x391   :  { %6024 = vmatprep.mubr.bf16.mxu0 %v9937_v8  ;;  %7634 = vmatpush3.bf16.msra.mxu0 %v8418_v26 }
 0x392   :  { %7635 = vmatprep.subr.bf16.mxu0 %v8419_v40 }
 0x395   :  { %7636 = vmatpush3.bf16.msra.mxu0 %v8420_v17  ;;  %v8406_v17 = vld [vmem:[#allocation8 + $0xb0] sm:$0xff]  }
 0x396   :  { %7637 = vmatprep.subr.bf16.mxu0 %v8421_v32 }
 0x398   :  { %6025 = vmatmul.mubr.bf16.gmra.mrb[108].mxu0 %v9938_v33  ;;  %v8404_v33 = vld [vmem:[#allocation8 + $0xa8] sm:$0xff]  }
 0x399   :  { %7638 = vmatpush3.bf16.msra.mxu0 %v8422_v9 }
 0x39a   :  { %7639 = vmatprep.subr.bf16.mxu0 %v8423_v39 }
 0x39d   :  { %7640 = vmatpush3.bf16.msra.mxu0 %v8424_v15 }
 0x3d1   :  { %v5544_v28 = vpop.f32.mrb[64].mxu0 }
 0x3d2   :  { %v9597_v14 = vpop.f32.mrb[64].mxu1  ;;  %v5546_v47 = vpop.f32.mrb[65].mxu0 }
 0x3d3   :  { %v9599_v59 = vpop.f32.mrb[65].mxu1  ;;  %v5548_v7 = vpop.f32.mrb[66].mxu0 }
 0x3d4   :  { %v6075_v41 = vpack.c.bf16 %v5548_v7, %v5544_v28  ;;  %v9601_v52 = vpop.f32.mrb[66].mxu1  ;;  %v5550_v60 = vpop.f32.mrb[67].mxu0  ;;  %v8407_v28 = vld [vmem:[#allocation8 + $0xf8] sm:$0xff]  }
 0x3d5   :  { %v6077_v53 = vpack.c.bf16 %v9601_v52, %v9597_v14  ;;  %v6076_v25 = vpack.c.bf16 %v5550_v60, %v5546_v47  ;;  %v9605_v38 = vpop.f32.mrb[67].mxu1  ;;  %v8408_v7 = vld [vmem:[#allocation8 + $0xb8] sm:$0xff]  }
 0x3d6   :  { %v6078_v6 = vpack.c.bf16 %v9605_v38, %v9599_v59 }
 0x3d7   :  { %6546 = vmatprep.mubr.bf16.mxu1 %v6076_v25 }
 0x3d8   :  { %6547 = vmatmul.mubr.bf16.vlgmr.msra.gmra.mrb[112].mxu1 %v6075_v41 }
 0x3d9   :  { %v5554_v31 = vpop.f32.mrb[68].mxu0  ;;  %7562 = vmatpush3.bf16.msra.mxu1 %v8394_v16 }
 0x3da   :  { %v9609_v3 = vpop.f32.mrb[68].mxu1  ;;  %v5556_v51 = vpop.f32.mrb[69].mxu0  ;;  %7563 = vmatprep.subr.bf16.mxu1 %v8395_v35 }
 0x3db   :  { %v9611_v37 = vpop.f32.mrb[69].mxu1  ;;  %v5558_v44 = vpop.f32.mrb[70].mxu0 }
 0x3dc   :  { %v6081_v43 = vpack.c.bf16 %v5558_v44, %v5554_v31  ;;  %v9613_v54 = vpop.f32.mrb[70].mxu1  ;;  %v5560_v19 = vpop.f32.mrb[71].mxu0 }
 0x3dd   :  { %v6083_v58 = vpack.c.bf16 %v9613_v54, %v9609_v3  ;;  %v6082_v45 = vpack.c.bf16 %v5560_v19, %v5556_v51  ;;  %v9617_v50 = vpop.f32.mrb[71].mxu1  ;;  %7564 = vmatpush3.bf16.msra.mxu1 %v8396_v46 }
 0x3de   :  { %v6084_v21 = vpack.c.bf16 %v9617_v50, %v9611_v37  ;;  %7565 = vmatprep.subr.bf16.mxu1 %v8397_v18 }
 0x3df   :  { %6554 = vmatprep.mubr.bf16.mxu1 %v6082_v45 }
 0x3e0   :  { %6555 = vmatmul.mubr.bf16.gmra.mrb[116].mxu1 %v6081_v43 }
 0x3e1   :  { %v5564_v12 = vpop.f32.mrb[72].mxu0  ;;  %7566 = vmatpush3.bf16.msra.mxu1 %v8398_v57 }
 0x3e2   :  { %v9621_v42 = vpop.f32.mrb[72].mxu1  ;;  %v5566_v11 = vpop.f32.mrb[73].mxu0  ;;  %7567 = vmatprep.subr.bf16.mxu1 %v8399_v0 }
 0x3e3   :  { %v9623_v13 = vpop.f32.mrb[73].mxu1  ;;  %v5568_v61 = vpop.f32.mrb[74].mxu0 }
 0x3e4   :  { %v6087_v48 = vpack.c.bf16 %v5568_v61, %v5564_v12  ;;  %v9625_v1 = vpop.f32.mrb[74].mxu1  ;;  %v5570_v34 = vpop.f32.mrb[75].mxu0 }
 0x3e5   :  { %v6089_v62 = vpack.c.bf16 %v9625_v1, %v9621_v42  ;;  %v6088_v49 = vpack.c.bf16 %v5570_v34, %v5566_v11  ;;  %v9629_v27 = vpop.f32.mrb[75].mxu1  ;;  %7568 = vmatpush3.bf16.msra.mxu1 %v8400_v29 }
 0x3e6   :  { %v6090_v30 = vpack.c.bf16 %v9629_v27, %v9623_v13  ;;  %7569 = vmatprep.subr.bf16.mxu1 %v8401_v55 }
 0x3e7   :  { %6562 = vmatprep.mubr.bf16.mxu1 %v6088_v49 }
 0x3e8   :  { %6563 = vmatmul.mubr.bf16.gmra.mrb[120].mxu1 %v6087_v48 }
 0x3e9   :  { %v5574_v8 = vpop.f32.mrb[76].mxu0  ;;  %7570 = vmatpush3.bf16.msra.mxu1 %v8402_v36 }
 0x3ea   :  { %v9633_v22 = vpop.f32.mrb[76].mxu1  ;;  %v5576_v20 = vpop.f32.mrb[77].mxu0  ;;  %7571 = vmatprep.subr.bf16.mxu1 %v8403_v63 }
 0x3eb   :  { %v9635_v2 = vpop.f32.mrb[77].mxu1  ;;  %v5578_v24 = vpop.f32.mrb[78].mxu0 }
 0x3ec   :  { %v6093_v56 = vpack.c.bf16 %v5578_v24, %v5574_v8  ;;  %v9637_v5 = vpop.f32.mrb[78].mxu1  ;;  %v5580_v23 = vpop.f32.mrb[79].mxu0 }
 0x3ed   :  { %v6095_v10 = vpack.c.bf16 %v9637_v5, %v9633_v22  ;;  %v6094_v26 = vpack.c.bf16 %v5580_v23, %v5576_v20  ;;  %v9641_v40 = vpop.f32.mrb[79].mxu1  ;;  %7572 = vmatpush3.bf16.msra.mxu1 %v8404_v33 }
 0x3ee   :  { %v6096_v32 = vpack.c.bf16 %v9641_v40, %v9635_v2  ;;  %7573 = vmatprep.subr.bf16.mxu1 %v8405_v4 }
 0x3ef   :  { %6570 = vmatprep.mubr.bf16.mxu1 %v6094_v26 }
 0x3f0   :  { %6571 = vmatmul.mubr.bf16.gmra.mrb[124].mxu1 %v6093_v56 }
 0x3f1   :  { %v5584_v47 = vpop.f32.mrb[80].mxu0  ;;  %7574 = vmatpush3.bf16.msra.mxu1 %v8406_v17 }
 0x3f2   :  { %v9645_v9 = vpop.f32.mrb[80].mxu1  ;;  %v5586_v41 = vpop.f32.mrb[81].mxu0  ;;  %7575 = vmatprep.subr.bf16.mxu1 %v8407_v28 }
 0x3f3   :  { %v9647_v60 = vpop.f32.mrb[81].mxu1  ;;  %v5588_v25 = vpop.f32.mrb[82].mxu0 }
 0x3f4   :  { %v6099_v16 = vpack.c.bf16 %v5588_v25, %v5584_v47  ;;  %v9649_v35 = vpop.f32.mrb[82].mxu1  ;;  %v5590_v39 = vpop.f32.mrb[83].mxu0 }
 0x3f5   :  { %v6101_v15 = vpack.c.bf16 %v9649_v35, %v9645_v9  ;;  %v6100_v31 = vpack.c.bf16 %v5590_v39, %v5586_v41  ;;  %v9653_v46 = vpop.f32.mrb[83].mxu1  ;;  %7576 = vmatpush3.bf16.msra.mxu1 %v8408_v7 }
 0x3f6   :  { %v6102_v51 = vpack.c.bf16 %v9653_v46, %v9647_v60 }
 0x3f7   :  { %6578 = vmatprep.mubr.bf16.mxu1 %v6100_v31 }
 0x3f8   :  { %6579 = vmatmul.mubr.bf16.gmra.mrb[128].mxu1 %v6099_v16 }
 0x3f9   :  { %v5594_v18 = vpop.f32.mrb[84].mxu0 }
 0x3fa   :  { %v9657_v44 = vpop.f32.mrb[84].mxu1  ;;  %v5596_v43 = vpop.f32.mrb[85].mxu0 }
 0x3fb   :  { %v9659_v19 = vpop.f32.mrb[85].mxu1  ;;  %v5598_v45 = vpop.f32.mrb[86].mxu0 }
 0x3fc   :  { %v6105_v57 = vpack.c.bf16 %v5598_v45, %v5594_v18  ;;  %v9661_v0 = vpop.f32.mrb[86].mxu1  ;;  %v5600_v12 = vpop.f32.mrb[87].mxu0 }
 0x3fd   :  { %v6107_v29 = vpack.c.bf16 %v9661_v0, %v9657_v44  ;;  %v6106_v11 = vpack.c.bf16 %v5600_v12, %v5596_v43  ;;  %v9665_v55 = vpop.f32.mrb[87].mxu1 }
 0x3fe   :  { %v6108_v61 = vpack.c.bf16 %v9665_v55, %v9659_v19 }
 0x3ff   :  { %6586 = vmatprep.mubr.bf16.mxu1 %v6106_v11 }
 0x400   :  { %6587 = vmatmul.mubr.bf16.gmra.mrb[132].mxu1 %v6105_v57 }
 0x401   :  { %v5604_v48 = vpop.f32.mrb[88].mxu0 }
 0x402   :  { %v9669_v34 = vpop.f32.mrb[88].mxu1  ;;  %v5606_v49 = vpop.f32.mrb[89].mxu0 }
 0x403   :  { %v9671_v36 = vpop.f32.mrb[89].mxu1  ;;  %v5608_v63 = vpop.f32.mrb[90].mxu0 }
 0x404   :  { %v6111_v8 = vpack.c.bf16 %v5608_v63, %v5604_v48  ;;  %v9673_v33 = vpop.f32.mrb[90].mxu1  ;;  %v5610_v20 = vpop.f32.mrb[91].mxu0 }
 0x405   :  { %v6113_v4 = vpack.c.bf16 %v9673_v33, %v9669_v34  ;;  %v6112_v24 = vpack.c.bf16 %v5610_v20, %v5606_v49  ;;  %v9677_v56 = vpop.f32.mrb[91].mxu1 }
 0x406   :  { %v6114_v23 = vpack.c.bf16 %v9677_v56, %v9671_v36 }
 0x407   :  { %6594 = vmatprep.mubr.bf16.mxu1 %v6112_v24 }
 0x408   :  { %6595 = vmatmul.mubr.bf16.gmra.mrb[136].mxu1 %v6111_v8 }
 0x409   :  { %v5614_v26 = vpop.f32.mrb[92].mxu0 }
 0x40a   :  { %v9681_v17 = vpop.f32.mrb[92].mxu1  ;;  %v5616_v28 = vpop.f32.mrb[93].mxu0 }
 0x40b   :  { %v9683_v47 = vpop.f32.mrb[93].mxu1  ;;  %v5618_v7 = vpop.f32.mrb[94].mxu0 }
 0x40c   :  { %v6117_v41 = vpack.c.bf16 %v5618_v7, %v5614_v26  ;;  %v9685_v25 = vpop.f32.mrb[94].mxu1  ;;  %v5620_v16 = vpop.f32.mrb[95].mxu0 }
 0x40d   :  { %v6119_v39 = vpack.c.bf16 %v9685_v25, %v9681_v17  ;;  %v6118_v31 = vpack.c.bf16 %v5620_v16, %v5616_v28  ;;  %v9689_v18 = vpop.f32.mrb[95].mxu1 }
 0x40e   :  { %v6120_v43 = vpack.c.bf16 %v9689_v18, %v9683_v47 }
 0x40f   :  { %6602 = vmatprep.mubr.bf16.mxu1 %v6118_v31 }
 0x410   :  { %6603 = vmatmul.mubr.bf16.gmra.mrb[140].mxu1 %v6117_v41 }
 0x411   :  { %6643 = vmatprep.mubr.bf16.mxu1 %v6078_v6 }
 0x413   :  { %v6036_v45 = vpop.f32.mrb[96].mxu1 }
 0x414   :  { %v6038_v57 = vpop.f32.mrb[97].mxu1 }
 0x415   :  { %v6040_v12 = vpop.f32.mrb[98].mxu1 }
 0x416   :  { %v6042_v11 = vpop.f32.mrb[99].mxu1 }
 0x418   :  { %6644 = vmatmul.mubr.bf16.vlgmr.msra.gmra.mrb[144].mxu1 %v6077_v53 }
 0x419   :  { %6651 = vmatprep.mubr.bf16.mxu1 %v6084_v21 }
 0x41b   :  { %v6046_v48 = vpop.f32.mrb[100].mxu1 }
 0x41c   :  { %v6048_v49 = vpop.f32.mrb[101].mxu1 }
 0x41d   :  { %v6050_v63 = vpop.f32.mrb[102].mxu1 }
 0x41e   :  { %v6052_v8 = vpop.f32.mrb[103].mxu1 }
 0x420   :  { %6652 = vmatmul.mubr.bf16.gmra.mrb[148].mxu1 %v6083_v58 }
 0x421   :  { %6659 = vmatprep.mubr.bf16.mxu1 %v6090_v30 }
 0x423   :  { %v6056_v59 = vpop.f32.mrb[104].mxu1 }
 0x424   :  { %v6058_v38 = vpop.f32.mrb[105].mxu1 }
 0x425   :  { %v6060_v14 = vpop.f32.mrb[106].mxu1 }
 0x426   :  { %v6062_v52 = vpop.f32.mrb[107].mxu1 }
 0x428   :  { %6660 = vmatmul.mubr.bf16.gmra.mrb[152].mxu1 %v6089_v62 }
 0x429   :  { %6667 = vmatprep.mubr.bf16.mxu1 %v6096_v32 }
 0x42b   :  { %v6066_v53 = vpop.f32.mrb[108].mxu1 }
 0x42c   :  { %v6068_v6 = vpop.f32.mrb[109].mxu1 }
 0x42d   :  { %v6070_v3 = vpop.f32.mrb[110].mxu1 }
 0x42e   :  { %v6072_v37 = vpop.f32.mrb[111].mxu1 }
 0x430   :  { %6668 = vmatmul.mubr.bf16.gmra.mrb[156].mxu1 %v6095_v10 }
 0x431   :  { %6675 = vmatprep.mubr.bf16.mxu1 %v6102_v51 }
 0x432   :  { %v5923_v54 = vpop.f32.mrb[112].mxu0 }
 0x433   :  { %v9720_v58 = vadd.f32 %v6036_v45, %v5923_v54  ;;  %v5925_v50 = vpop.f32.mrb[113].mxu0 }
 0x434   :  { %v9722_v21 = vadd.f32 %v6038_v57, %v5925_v50  ;;  %v5927_v42 = vpop.f32.mrb[114].mxu0 }
 0x435   :  { %v9724_v13 = vadd.f32 %v6040_v12, %v5927_v42  ;;  %v5929_v1 = vpop.f32.mrb[115].mxu0 }
 0x436   :  { %v9726_v62 = vadd.f32 %v6042_v11, %v5929_v1 }
 0x437   :  { %v6103_v27 = vpack.c.bf16 %v9724_v13, %v9720_v58 }
 0x438   :  { %v6104_v30 = vpack.c.bf16 %v9726_v62, %v9722_v21  ;;  %6676 = vmatmul.mubr.bf16.gmra.mrb[160].mxu1 %v6101_v15 }
 0x439   :  { %6683 = vmatprep.mubr.bf16.mxu1 %v6108_v61 }
 0x43a   :  { %v5933_v22 = vpop.f32.mrb[116].mxu0 }
 0x43b   :  { %v9738_v2 = vadd.f32 %v6046_v48, %v5933_v22  ;;  %v5935_v5 = vpop.f32.mrb[117].mxu0 }
 0x43c   :  { %v9740_v10 = vadd.f32 %v6048_v49, %v5935_v5  ;;  %v5937_v40 = vpop.f32.mrb[118].mxu0 }
 0x43d   :  { %v9742_v32 = vadd.f32 %v6050_v63, %v5937_v40  ;;  %v5939_v60 = vpop.f32.mrb[119].mxu0 }
 0x43e   :  { %v6053_v46 = vadd.f32 %v6052_v8, %v5939_v60 }
 0x43f   :  { %v6109_v51 = vpack.c.bf16 %v9742_v32, %v9738_v2 }
 0x440   :  { %v6110_v9 = vpack.c.bf16 %v6053_v46, %v9740_v10  ;;  %6684 = vmatmul.mubr.bf16.gmra.mrb[164].mxu1 %v6107_v29 }
 0x441   :  { %6691 = vmatprep.mubr.bf16.mxu1 %v6114_v23 }
 0x442   :  { %v5943_v35 = vpop.f32.mrb[120].mxu0 }
 0x443   :  { %v6057_v15 = vadd.f32 %v6056_v59, %v5943_v35  ;;  %v5945_v19 = vpop.f32.mrb[121].mxu0 }
 0x444   :  { %v6059_v55 = vadd.f32 %v6058_v38, %v5945_v19  ;;  %v5947_v61 = vpop.f32.mrb[122].mxu0 }
 0x445   :  { %v6061_v20 = vadd.f32 %v6060_v14, %v5947_v61  ;;  %v5949_v24 = vpop.f32.mrb[123].mxu0 }
 0x446   :  { %v6063_v26 = vadd.f32 %v6062_v52, %v5949_v24 }
 0x447   :  { %v6115_v28 = vpack.c.bf16 %v6061_v20, %v6057_v15 }
 0x448   :  { %v6116_v47 = vpack.c.bf16 %v6063_v26, %v6059_v55  ;;  %6692 = vmatmul.mubr.bf16.gmra.mrb[168].mxu1 %v6113_v4 }
 0x449   :  { %6699 = vmatprep.mubr.bf16.mxu1 %v6120_v43 }
 0x44a   :  { %v5953_v44 = vpop.f32.mrb[124].mxu0 }
 0x44b   :  { %v6067_v0 = vadd.f32 %v6066_v53, %v5953_v44  ;;  %v5955_v29 = vpop.f32.mrb[125].mxu0 }
 0x44c   :  { %v6069_v36 = vadd.f32 %v6068_v6, %v5955_v29  ;;  %v5957_v56 = vpop.f32.mrb[126].mxu0 }
 0x44d   :  { %v6071_v23 = vadd.f32 %v6070_v3, %v5957_v56  ;;  %v5959_v7 = vpop.f32.mrb[127].mxu0 }
 0x44e   :  { %v6073_v41 = vadd.f32 %v6072_v37, %v5959_v7 }
 0x44f   :  { %v6121_v16 = vpack.c.bf16 %v6071_v23, %v6067_v0 }
 0x450   :  { %v6122_v31 = vpack.c.bf16 %v6073_v41, %v6069_v36  ;;  %6700 = vmatmul.mubr.bf16.gmra.mrb[172].mxu1 %v6119_v39 }
 0x453   :  { %v5996_v18 = vpop.f32.mrb[96].mxu0 }
 0x454   :  { %v5998_v45 = vpop.f32.mrb[97].mxu0 }
 0x455   :  { %v6000_v57 = vpop.f32.mrb[98].mxu0 }
 0x456   :  { %v6079_v34 = vpack.c.bf16 %v6000_v57, %v5996_v18  ;;  %v6002_v33 = vpop.f32.mrb[99].mxu0 }
 0x457   :  { %v6080_v4 = vpack.c.bf16 %v6002_v33, %v5998_v45 }
 0x459   :  { %6740 = vmatprep.mubr.bf16.mxu0 %v6080_v4 }
 0x45a   :  { %6741 = vmatmul.mubr.bf16.vlgmr.msra.gmra.mrb[128].mxu0 %v6079_v34 }
 0x45b   :  { %v6006_v43 = vpop.f32.mrb[100].mxu0 }
 0x45c   :  { %v6008_v12 = vpop.f32.mrb[101].mxu0 }
 0x45d   :  { %v6010_v11 = vpop.f32.mrb[102].mxu0 }
 0x45e   :  { %v6085_v48 = vpack.c.bf16 %v6010_v11, %v6006_v43  ;;  %v6012_v49 = vpop.f32.mrb[103].mxu0  ;;  %v9781_v11 = vld [vmem:[#allocation10] ss:$0 sm:$0xff] }
 0x45f   :  { %v6086_v63 = vpack.c.bf16 %v6012_v49, %v6008_v12 }
 0x461   :  { %6748 = vmatprep.mubr.bf16.mxu0 %v6086_v63 }
 0x462   :  { %6749 = vmatmul.mubr.bf16.gmra.mrb[132].mxu0 %v6085_v48 }
 0x463   :  { %v6016_v8 = vpop.f32.mrb[104].mxu0 }
 0x464   :  { %v6018_v59 = vpop.f32.mrb[105].mxu0 }
 0x465   :  { %v6020_v17 = vpop.f32.mrb[106].mxu0 }
 0x466   :  { %v6091_v25 = vpack.c.bf16 %v6020_v17, %v6016_v8  ;;  %v6022_v39 = vpop.f32.mrb[107].mxu0 }
 0x467   :  { %v6092_v38 = vpack.c.bf16 %v6022_v39, %v6018_v59 }
 0x469   :  { %6756 = vmatprep.mubr.bf16.mxu0 %v6092_v38 }
 0x46a   :  { %6757 = vmatmul.mubr.bf16.gmra.mrb[136].mxu0 %v6091_v25 }
 0x46b   :  { %v6026_v14 = vpop.f32.mrb[108].mxu0 }
 0x46c   :  { %v6028_v52 = vpop.f32.mrb[109].mxu0 }
 0x46d   :  { %v6030_v53 = vpop.f32.mrb[110].mxu0 }
 0x46e   :  { %v6097_v6 = vpack.c.bf16 %v6030_v53, %v6026_v14  ;;  %v6032_v3 = vpop.f32.mrb[111].mxu0 }
 0x46f   :  { %v6098_v37 = vpack.c.bf16 %v6032_v3, %v6028_v52 }
 0x471   :  { %6764 = vmatprep.mubr.bf16.mxu0 %v6098_v37 }
 0x472   :  { %6765 = vmatmul.mubr.bf16.gmra.mrb[140].mxu0 %v6097_v6 }
 0x473   :  { %6772 = vmatprep.mubr.bf16.mxu0 %v6104_v30 }
 0x47a   :  { %6773 = vmatmul.mubr.bf16.gmra.mrb[144].mxu0 %v6103_v27 }
 0x47b   :  { %6780 = vmatprep.mubr.bf16.mxu0 %v6110_v9 }
 0x482   :  { %6781 = vmatmul.mubr.bf16.gmra.mrb[148].mxu0 %v6109_v51 }
 0x483   :  { %6788 = vmatprep.mubr.bf16.mxu0 %v6116_v47 }
 0x48a   :  { %6789 = vmatmul.mubr.bf16.gmra.mrb[152].mxu0 %v6115_v28 }
 0x48b   :  { %6796 = vmatprep.mubr.bf16.mxu0 %v6122_v31 }
 0x492   :  { %6797 = vmatmul.mubr.bf16.gmra.mrb[156].mxu0 %v6121_v16 }
 0x4ab   :  { %v7513_v54 = vpop.f32.mrb[112].mxu1 }
 0x4ac   :  { %v7514_v50 = vpop.f32.mrb[113].mxu1 }
 0x4ad   :  { %v7515_v42 = vadd.f32 %v7514_v50, %v7513_v54  ;;  %v7516_v1 = vpop.f32.mrb[114].mxu1 }
 0x4ae   :  { %v7517_v22 = vpop.f32.mrb[115].mxu1 }
 0x4af   :  { %v7518_v2 = vadd.f32 %v7517_v22, %v7516_v1  ;;  %v6549_v63 = vadd.f32 %v7515_v42, %v9781_v11 }
 0x4b1   :  { %v6552_v25 = vadd.f32 %v7518_v2, %v9781_v11 }
 0x4b3   :  { %v7519_v5 = vpop.f32.mrb[116].mxu1 }
 0x4b4   :  { %v7520_v10 = vpop.f32.mrb[117].mxu1 }
 0x4b5   :  { %v7521_v21 = vadd.f32 %v7520_v10, %v7519_v5  ;;  %v7522_v62 = vpop.f32.mrb[118].mxu1 }
 0x4b6   :  { %v7523_v30 = vpop.f32.mrb[119].mxu1 }
 0x4b7   :  { %v7524_v40 = vadd.f32 %v7523_v30, %v7522_v62  ;;  %v6557_v6 = vadd.f32 %v7521_v21, %v9781_v11 }
 0x4b9   :  { %v6560_v50 = vadd.f32 %v7524_v40, %v9781_v11 }
 0x4bb   :  { %v7525_v58 = vpop.f32.mrb[120].mxu1 }
 0x4bc   :  { %v7526_v13 = vpop.f32.mrb[121].mxu1 }
 0x4bd   :  { %v7527_v27 = vadd.f32 %v7526_v13, %v7525_v58  ;;  %v7528_v32 = vpop.f32.mrb[122].mxu1 }
 0x4be   :  { %v7529_v60 = vpop.f32.mrb[123].mxu1 }
 0x4bf   :  { %v7530_v46 = vadd.f32 %v7529_v60, %v7528_v32  ;;  %v6565_v10 = vadd.f32 %v7527_v27, %v9781_v11 }
 0x4c1   :  { %v6568_v13 = vadd.f32 %v7530_v46, %v9781_v11 }
 0x4c3   :  { %v7531_v51 = vpop.f32.mrb[124].mxu1 }
 0x4c4   :  { %v7532_v9 = vpop.f32.mrb[125].mxu1 }
 0x4c5   :  { %v7533_v35 = vadd.f32 %v7532_v9, %v7531_v51  ;;  %v7534_v15 = vpop.f32.mrb[126].mxu1 }
 0x4c6   :  { %v7535_v19 = vpop.f32.mrb[127].mxu1 }
 0x4c7   :  { %v7536_v55 = vadd.f32 %v7535_v19, %v7534_v15  ;;  %v6573_v9 = vadd.f32 %v7533_v35, %v9781_v11 }
 0x4cb   :  { %v7537_v61 = vpop.f32.mrb[128].mxu1 }
 0x4cc   :  { %v7538_v20 = vpop.f32.mrb[129].mxu1 }
 0x4cd   :  { %v9765_v24 = vadd.f32 %v7538_v20, %v7537_v61  ;;  %v7540_v26 = vpop.f32.mrb[130].mxu1  ;;  %v6576_v20 = vadd.f32 %v7536_v55, %v9781_v11 }
 0x4ce   :  { %v7541_v28 = vpop.f32.mrb[131].mxu1 }
 0x4cf   :  { %v9767_v47 = vadd.f32 %v7541_v28, %v7540_v26 }
 0x4d1   :  { %v6584_v35 = vadd.f32 %v9767_v47, %v9781_v11 }
 0x4d3   :  { %v7543_v44 = vpop.f32.mrb[132].mxu1 }
 0x4d4   :  { %v7544_v0 = vpop.f32.mrb[133].mxu1 }
 0x4d5   :  { %v9769_v29 = vadd.f32 %v7544_v0, %v7543_v44  ;;  %v7546_v36 = vpop.f32.mrb[134].mxu1  ;;  %v6581_v0 = vadd.f32 %v9765_v24, %v9781_v11 }
 0x4d6   :  { %v7547_v56 = vpop.f32.mrb[135].mxu1 }
 0x4d7   :  { %v9771_v23 = vadd.f32 %v7547_v56, %v7546_v36 }
 0x4d9   :  { %v6592_v24 = vadd.f32 %v9771_v23, %v9781_v11 }
 0x4db   :  { %v7549_v7 = vpop.f32.mrb[136].mxu1 }
 0x4dc   :  { %v7550_v41 = vpop.f32.mrb[137].mxu1 }
 0x4dd   :  { %v9773_v16 = vadd.f32 %v7550_v41, %v7549_v7  ;;  %v7552_v31 = vpop.f32.mrb[138].mxu1 }
 0x4de   :  { %v7553_v18 = vpop.f32.mrb[139].mxu1 }
 0x4df   :  { %v9775_v45 = vadd.f32 %v7553_v18, %v7552_v31 }
 0x4e3   :  { %v7555_v57 = vpop.f32.mrb[140].mxu1 }
 0x4e4   :  { %v7556_v34 = vpop.f32.mrb[141].mxu1 }
 0x4e5   :  { %v9777_v33 = vadd.f32 %v7556_v34, %v7555_v57  ;;  %v7558_v4 = vpop.f32.mrb[142].mxu1  ;;  %v6589_v34 = vadd.f32 %v9769_v29, %v9781_v11  ;;  %v6600_v29 = vadd.f32 %v9775_v45, %v9781_v11 }
 0x4e6   :  { %v7559_v43 = vpop.f32.mrb[143].mxu1 }
 0x4e7   :  { %v9779_v12 = vadd.f32 %v7559_v43, %v7558_v4 }
 0x4eb   :  { %v7577_v48 = vpop.f32.mrb[144].mxu1 }
 0x4ec   :  { %v7578_v49 = vpop.f32.mrb[145].mxu1 }
 0x4ed   :  { %v7579_v8 = vadd.f32 %v7578_v49, %v7577_v48  ;;  %v7580_v59 = vpop.f32.mrb[146].mxu1 }
 0x4ee   :  { %v7581_v17 = vpop.f32.mrb[147].mxu1 }
 0x4ef   :  { %v9785_v39 = vadd.f32 %v7579_v8, %v6549_v63  ;;  %v7582_v38 = vadd.f32 %v7581_v17, %v7580_v59  ;;  %v6597_v17 = vadd.f32 %v9773_v16, %v9781_v11  ;;  %v6608_v16 = vadd.f32 %v9779_v12, %v9781_v11 }
 0x4f1   :  { %v9787_v14 = vadd.f32 %v7582_v38, %v6552_v25 }
 0x4f3   :  { %v7583_v52 = vpop.f32.mrb[148].mxu1 }
 0x4f4   :  { %v7584_v53 = vpop.f32.mrb[149].mxu1 }
 0x4f5   :  { %v7585_v3 = vadd.f32 %v7584_v53, %v7583_v52  ;;  %v7586_v37 = vpop.f32.mrb[150].mxu1 }
 0x4f6   :  { %v7587_v54 = vpop.f32.mrb[151].mxu1 }
 0x4f7   :  { %v9791_v42 = vadd.f32 %v7585_v3, %v6557_v6  ;;  %v7588_v1 = vadd.f32 %v7587_v54, %v7586_v37  ;;  %v6605_v54 = vadd.f32 %v9777_v33, %v9781_v11 }
 0x4f9   :  { %v9793_v22 = vadd.f32 %v7588_v1, %v6560_v50 }
 0x4fb   :  { %v7589_v2 = vpop.f32.mrb[152].mxu1 }
 0x4fc   :  { %v7590_v5 = vpop.f32.mrb[153].mxu1 }
 0x4fd   :  { %v7591_v62 = vadd.f32 %v7590_v5, %v7589_v2  ;;  %v7592_v30 = vpop.f32.mrb[154].mxu1 }
 0x4fe   :  { %v7593_v58 = vpop.f32.mrb[155].mxu1 }
 0x4ff   :  { %v9797_v21 = vadd.f32 %v7591_v62, %v6565_v10  ;;  %v7594_v32 = vadd.f32 %v7593_v58, %v7592_v30 }
 0x501   :  { %v9799_v60 = vadd.f32 %v7594_v32, %v6568_v13 }
 0x503   :  { %v7595_v40 = vpop.f32.mrb[156].mxu1 }
 0x504   :  { %v7596_v51 = vpop.f32.mrb[157].mxu1 }
 0x505   :  { %v7597_v15 = vadd.f32 %v7596_v51, %v7595_v40  ;;  %v7598_v19 = vpop.f32.mrb[158].mxu1 }
 0x506   :  { %v7599_v61 = vpop.f32.mrb[159].mxu1 }
 0x507   :  { %v9803_v27 = vadd.f32 %v7597_v15, %v6573_v9  ;;  %v7600_v26 = vadd.f32 %v7599_v61, %v7598_v19 }
 0x509   :  { %v9805_v28 = vadd.f32 %v7600_v26, %v6576_v20 }
 0x50b   :  { %v7601_v46 = vpop.f32.mrb[160].mxu1 }
 0x50c   :  { %v7602_v44 = vpop.f32.mrb[161].mxu1 }
 0x50d   :  { %v7603_v36 = vadd.f32 %v7602_v44, %v7601_v46  ;;  %v7604_v56 = vpop.f32.mrb[162].mxu1 }
 0x50e   :  { %v7605_v7 = vpop.f32.mrb[163].mxu1 }
 0x50f   :  { %v9811_v41 = vadd.f32 %v7603_v36, %v6581_v0  ;;  %v7606_v31 = vadd.f32 %v7605_v7, %v7604_v56 }
 0x511   :  { %v9813_v55 = vadd.f32 %v7606_v31, %v6584_v35 }
 0x513   :  { %v7607_v18 = vpop.f32.mrb[164].mxu1 }
 0x514   :  { %v7608_v57 = vpop.f32.mrb[165].mxu1 }
 0x515   :  { %v7609_v4 = vadd.f32 %v7608_v57, %v7607_v18  ;;  %v7610_v43 = vpop.f32.mrb[166].mxu1 }
 0x516   :  { %v7611_v48 = vpop.f32.mrb[167].mxu1 }
 0x517   :  { %v9819_v49 = vadd.f32 %v7609_v4, %v6589_v34  ;;  %v7612_v63 = vadd.f32 %v7611_v48, %v7610_v43 }
 0x519   :  { %v9821_v47 = vadd.f32 %v7612_v63, %v6592_v24 }
 0x51b   :  { %v7613_v8 = vpop.f32.mrb[168].mxu1 }
 0x51c   :  { %v7614_v59 = vpop.f32.mrb[169].mxu1 }
 0x51d   :  { %v7615_v25 = vadd.f32 %v7614_v59, %v7613_v8  ;;  %v7616_v38 = vpop.f32.mrb[170].mxu1 }
 0x51e   :  { %v7617_v52 = vpop.f32.mrb[171].mxu1 }
 0x51f   :  { %v9827_v53 = vadd.f32 %v7615_v25, %v6597_v17  ;;  %v7618_v6 = vadd.f32 %v7617_v52, %v7616_v38 }
 0x521   :  { %v9829_v23 = vadd.f32 %v7618_v6, %v6600_v29 }
 0x523   :  { %v7619_v3 = vpop.f32.mrb[172].mxu1 }
 0x524   :  { %v7620_v37 = vpop.f32.mrb[173].mxu1 }
 0x525   :  { %v7621_v50 = vadd.f32 %v7620_v37, %v7619_v3  ;;  %v7622_v1 = vpop.f32.mrb[174].mxu1 }
 0x526   :  { %v7623_v2 = vpop.f32.mrb[175].mxu1 }
 0x527   :  { %v9835_v5 = vadd.f32 %v7621_v50, %v6605_v54  ;;  %v7624_v10 = vadd.f32 %v7623_v2, %v7622_v1 }
 0x529   :  { %v9837_v45 = vadd.f32 %v7624_v10, %v6608_v16 }
 0x52d   :  { %v7641_v62 = vpop.f32.mrb[128].mxu0 }
 0x52e   :  { %v7642_v30 = vpop.f32.mrb[129].mxu0 }
 0x52f   :  { %v7643_v58 = vadd.f32 %v7642_v30, %v7641_v62  ;;  %v7644_v13 = vpop.f32.mrb[130].mxu0 }
 0x530   :  { %v7645_v32 = vpop.f32.mrb[131].mxu0 }
 0x531   :  { %v6743_v40 = vadd.f32 %v7643_v58, %v9785_v39  ;;  %v7646_v51 = vadd.f32 %v7645_v32, %v7644_v13 }
 0x533   :  { %6805 = vst [vmem:[#allocation11] sm:$0xff] %v6743_v40  ;;  %v6746_v33 = vadd.f32 %v7646_v51, %v9787_v14 }
 0x535   :  { %6806 = vst [vmem:[#allocation11 + $0x8] sm:$0xff] %v6746_v33  ;;  %v7647_v9 = vpop.f32.mrb[132].mxu0 }
 0x536   :  { %v7648_v15 = vpop.f32.mrb[133].mxu0 }
 0x537   :  { %v7649_v12 = vadd.f32 %v7648_v15, %v7647_v9  ;;  %v7650_v11 = vpop.f32.mrb[134].mxu0 }
 0x538   :  { %v7651_v19 = vpop.f32.mrb[135].mxu0 }
 0x539   :  { %v6751_v61 = vadd.f32 %v7649_v12, %v9791_v42  ;;  %v7652_v20 = vadd.f32 %v7651_v19, %v7650_v11 }
 0x53b   :  { %6807 = vst [vmem:[#allocation11 + $0x10] sm:$0xff] %v6751_v61  ;;  %v6754_v26 = vadd.f32 %v7652_v20, %v9793_v22 }
 0x53d   :  { %6808 = vst [vmem:[#allocation11 + $0x18] sm:$0xff] %v6754_v26  ;;  %v7653_v46 = vpop.f32.mrb[136].mxu0 }
 0x53e   :  { %v7654_v44 = vpop.f32.mrb[137].mxu0 }
 0x53f   :  { %v7655_v39 = vadd.f32 %v7654_v44, %v7653_v46  ;;  %v7656_v0 = vpop.f32.mrb[138].mxu0 }
 0x540   :  { %v7657_v36 = vpop.f32.mrb[139].mxu0 }
 0x541   :  { %v6759_v14 = vadd.f32 %v7655_v39, %v9797_v21  ;;  %v7658_v56 = vadd.f32 %v7657_v36, %v7656_v0 }
 0x543   :  { %6809 = vst [vmem:[#allocation11 + $0x20] sm:$0xff] %v6759_v14  ;;  %v6762_v7 = vadd.f32 %v7658_v56, %v9799_v60 }
 0x545   :  { %6810 = vst [vmem:[#allocation11 + $0x28] sm:$0xff] %v6762_v7  ;;  %v7659_v35 = vpop.f32.mrb[140].mxu0 }
 0x546   :  { %v7660_v31 = vpop.f32.mrb[141].mxu0 }
 0x547   :  { %v7661_v42 = vadd.f32 %v7660_v31, %v7659_v35  ;;  %v7662_v18 = vpop.f32.mrb[142].mxu0 }
 0x548   :  { %v7663_v57 = vpop.f32.mrb[143].mxu0 }
 0x549   :  { %v6767_v22 = vadd.f32 %v7661_v42, %v9803_v27  ;;  %v7664_v34 = vadd.f32 %v7663_v57, %v7662_v18 }
 0x54b   :  { %6811 = vst [vmem:[#allocation11 + $0x30] sm:$0xff] %v6767_v22  ;;  %v6770_v4 = vadd.f32 %v7664_v34, %v9805_v28 }
 0x54d   :  { %6812 = vst [vmem:[#allocation11 + $0x38] sm:$0xff] %v6770_v4  ;;  %v7665_v43 = vpop.f32.mrb[144].mxu0 }
 0x54e   :  { %v7666_v48 = vpop.f32.mrb[145].mxu0 }
 0x54f   :  { %v7667_v21 = vadd.f32 %v7666_v48, %v7665_v43  ;;  %v7668_v24 = vpop.f32.mrb[146].mxu0 }
 0x550   :  { %v7669_v63 = vpop.f32.mrb[147].mxu0 }
 0x551   :  { %v6775_v60 = vadd.f32 %v7667_v21, %v9811_v41  ;;  %v7670_v8 = vadd.f32 %v7669_v63, %v7668_v24 }
 0x553   :  { %6813 = vst [vmem:[#allocation11 + $0x40] sm:$0xff] %v6775_v60  ;;  %v6778_v59 = vadd.f32 %v7670_v8, %v9813_v55 }
 0x555   :  { %6814 = vst [vmem:[#allocation11 + $0x48] sm:$0xff] %v6778_v59  ;;  %v7671_v17 = vpop.f32.mrb[148].mxu0 }
 0x556   :  { %v7672_v25 = vpop.f32.mrb[149].mxu0 }
 0x557   :  { %v7673_v27 = vadd.f32 %v7672_v25, %v7671_v17  ;;  %v7674_v38 = vpop.f32.mrb[150].mxu0 }
 0x558   :  { %v7675_v52 = vpop.f32.mrb[151].mxu0 }
 0x559   :  { %v6783_v28 = vadd.f32 %v7673_v27, %v9819_v49  ;;  %v7676_v29 = vadd.f32 %v7675_v52, %v7674_v38 }
 0x55b   :  { %6815 = vst [vmem:[#allocation11 + $0x50] sm:$0xff] %v6783_v28  ;;  %v6786_v6 = vadd.f32 %v7676_v29, %v9821_v47 }
 0x55d   :  { %6816 = vst [vmem:[#allocation11 + $0x58] sm:$0xff] %v6786_v6  ;;  %v7677_v3 = vpop.f32.mrb[152].mxu0 }
 0x55e   :  { %v7678_v37 = vpop.f32.mrb[153].mxu0 }
 0x55f   :  { %v7679_v41 = vadd.f32 %v7678_v37, %v7677_v3  ;;  %v7680_v54 = vpop.f32.mrb[154].mxu0 }
 0x560   :  { %v7681_v50 = vpop.f32.mrb[155].mxu0 }
 0x561   :  { %v6791_v55 = vadd.f32 %v7679_v41, %v9827_v53  ;;  %v7682_v1 = vadd.f32 %v7681_v50, %v7680_v54 }
 0x563   :  { %6817 = vst [vmem:[#allocation11 + $0x60] sm:$0xff] %v6791_v55  ;;  %v6794_v2 = vadd.f32 %v7682_v1, %v9829_v23 }
 0x565   :  { %6818 = vst [vmem:[#allocation11 + $0x68] sm:$0xff] %v6794_v2  ;;  %v7683_v16 = vpop.f32.mrb[156].mxu0 }
 0x566   :  { %v7684_v10 = vpop.f32.mrb[157].mxu0 }
 0x567   :  { %v7685_v49 = vadd.f32 %v7684_v10, %v7683_v16  ;;  %v7686_v62 = vpop.f32.mrb[158].mxu0 }
 0x568   :  { %v7687_v30 = vpop.f32.mrb[159].mxu0 }
 0x569   :  { %v6799_v47 = vadd.f32 %v7685_v49, %v9835_v5  ;;  %v7688_v58 = vadd.f32 %v7687_v30, %v7686_v62 }
 0x56b   :  { %6819 = vst [vmem:[#allocation11 + $0x70] sm:$0xff] %v6799_v47  ;;  %v6802_v13 = vadd.f32 %v7688_v58, %v9837_v45 }
 0x56d   :  { %6820 = vst [vmem:[#allocation11 + $0x78] sm:$0xff] %v6802_v13 }
 0x56e   :  { %8674 = shalt.err (!%p8671_p2)
}
 0x56f   :  { %s8675_s10 = scalar_lea.hbm %s9872_s5, 2048 }
 0x570   :  { %p8676_p3 = scmp.ne.s32.totalorder %s9872_s5, %s8675_s10  ;;  %p8679_p4 = scmp.lt.u32.totalorder %s8675_s10, %s9872_s5 }
 0x572   :  { %p8681_p5 = pnand %p8679_p4, %p8676_p3 }
 0x574   :  { %8684 = shalt.err (!%p8681_p5)
}
 0x575   :  { %s8707_s15 = smov 128   ;;  %s8708_s16 = smov 8  }
 0x576   :  { %6832 = dma.vmem_to_hbm [thread:$0]  %s6827_s6, 2048, %s9872_s5, [#allocation4], %s8707_s15, %s8707_s15, %s8708_s16  }
 0x577   :  { %8691 = dma.done.wait [#allocation4], 2048  }
 0x578   :  { %8692 = vsyncadd [#allocation4], 4294965248 }
 0x579   :  { %6836 = vsyncpa [#allocation3], 1 }
 0x57a   :  { %6837 = vsyncpa [#allocation6], 1 }
 0x57b   :  { %6838 = vsyncpa [#allocation9], 1 }
 0x57c   :  { %6839 = vsyncpa [#allocation4], 1 }

</bundles_post_ra>
